<compile_context>
chip_gen: v7x
topology: tpu7x:2x2x1
jax: 0.10.0
libtpu: 0.0.40
codegen_flags: <defaults>
</compile_context>

<pallas_src>
import functools

import jax
import jax.numpy as jnp
import numpy as np
from jax.experimental import pallas as pl
from jax.experimental.pallas import tpu as pltpu


# ----------------------------------------------------------------------------
# Fused kernel.
#   user_ref : [U, D]   item_ref : [I, D]   adj_ref : [tile_rows, N] row block
#   user_out : [U, D]   item_out : [I, D]
#   ego_ref / nxt_ref / acc_ref : [N, D] f32 VMEM scratch (persist across grid)
# Grid: (n_layers, N // tile_rows), last axis fastest.
# ----------------------------------------------------------------------------
def _sgl_kernel(user_ref, item_ref, adj_ref, user_out_ref, item_out_ref,
                ego_ref, nxt_ref, acc_ref, *, n_layers, user_rows, tile_rows):
    l = pl.program_id(0)
    i = pl.program_id(1)
    n_tiles = pl.num_programs(1)

    # Layer-0 init: build ego_0 = concat(user, item) in VMEM, seed running sum.
    @pl.when((l == 0) & (i == 0))
    def _init():
        ego_ref[:user_rows, :] = user_ref[...].astype(jnp.float32)
        ego_ref[user_rows:, :] = item_ref[...].astype(jnp.float32)
        acc_ref[...] = ego_ref[...]

    # One row tile of the next layer: rows [i*T, (i+1)*T) of (adj @ ego_l).
    row0 = pl.multiple_of(i * tile_rows, tile_rows)
    nxt_ref[pl.ds(row0, tile_rows), :] = jnp.dot(
        adj_ref[...], ego_ref[...], preferred_element_type=jnp.float32)

    # Layer carry once every row tile of this layer has been produced.
    @pl.when(i == n_tiles - 1)
    def _carry():
        new = nxt_ref[...]
        ego_ref[...] = new
        acc_ref[...] = acc_ref[...] + new

    # Final store: mean over the (n_layers + 1) layer embeddings, user/item split.
    @pl.when((l == pl.num_programs(0) - 1) & (i == n_tiles - 1))
    def _finalize():
        mean = acc_ref[...] * (1.0 / float(n_layers + 1))
        user_out_ref[...] = mean[:user_rows, :].astype(user_out_ref.dtype)
        item_out_ref[...] = mean[user_rows:, :].astype(item_out_ref.dtype)


def _pick_tile_rows(n_total):
    """Largest row tile that divides N and keeps the double-buffered adjacency
    block <= 4 MiB (ample headroom on v7x's 64 MiB VMEM and under v5e's 16 MiB
    default scoped limit), while amortizing the ~0.35us per-grid-step cost."""
    max_block_bytes = 4 * 1024 * 1024
    for cand in (512, 256, 128, 64, 32, 16, 8):
        if n_total % cand == 0 and 2 * cand * n_total * 4 <= max_block_bytes:
            return cand
    return n_total  # tiny / oddly-shaped graphs: whole adjacency resident


def _vmem_limit_bytes(user_rows, item_rows, n_total, emb_dim, tile_rows):
    def buf_bytes(rows, cols):  # (8,128)-padded f32 buffer
        return ((rows + 7) // 8 * 8) * ((cols + 127) // 128 * 128) * 4
    need = (2 * buf_bytes(tile_rows, n_total)                                  # adj block x2
            + 2 * (buf_bytes(user_rows, emb_dim) + buf_bytes(item_rows, emb_dim))   # inputs
            + 2 * (buf_bytes(user_rows, emb_dim) + buf_bytes(item_rows, emb_dim))   # outputs
            + 3 * buf_bytes(n_total, emb_dim))                                 # ego/nxt/acc
    return min(2 * need + (2 << 20), 48 << 20)


# ----------------------------------------------------------------------------
# SGL_Encoder.forward (Pallas-backed): one pallas_call, no wrapper plumbing.
# ----------------------------------------------------------------------------
def sgl_encoder_forward(user_emb, item_emb, norm_adj, n_layers):
    user_rows, emb_dim = user_emb.shape
    item_rows = item_emb.shape[0]
    n_total = user_rows + item_rows
    assert norm_adj.shape == (n_total, n_total)

    if n_layers == 0:  # mean over a single layer is ego itself
        return user_emb, item_emb

    tile_rows = _pick_tile_rows(n_total)
    n_tiles = n_total // tile_rows

    kernel = functools.partial(_sgl_kernel, n_layers=n_layers,
                               user_rows=user_rows, tile_rows=tile_rows)

    cost = pl.CostEstimate(
        flops=2 * n_layers * n_total * n_total * emb_dim,
        bytes_accessed=4 * (n_layers * n_total * n_total + 4 * n_total * emb_dim),
        transcendentals=0)

    user_all, item_all = pl.pallas_call(
        kernel,
        out_shape=(jax.ShapeDtypeStruct((user_rows, emb_dim), user_emb.dtype),
                   jax.ShapeDtypeStruct((item_rows, emb_dim), item_emb.dtype)),
        grid_spec=pltpu.PrefetchScalarGridSpec(
            num_scalar_prefetch=0,
            grid=(n_layers, n_tiles),
            in_specs=[
                pl.BlockSpec((user_rows, emb_dim), lambda l, i: (0, 0)),
                pl.BlockSpec((item_rows, emb_dim), lambda l, i: (0, 0)),
                pl.BlockSpec((tile_rows, n_total), lambda l, i: (i, 0)),
            ],
            out_specs=[
                pl.BlockSpec((user_rows, emb_dim), lambda l, i: (0, 0)),
                pl.BlockSpec((item_rows, emb_dim), lambda l, i: (0, 0)),
            ],
            scratch_shapes=[
                pltpu.VMEM((n_total, emb_dim), jnp.float32),   # ego_l
                pltpu.VMEM((n_total, emb_dim), jnp.float32),   # next layer
                pltpu.VMEM((n_total, emb_dim), jnp.float32),   # running sum
            ],
        ),
        compiler_params=pltpu.CompilerParams(
            dimension_semantics=("arbitrary", "arbitrary"),
            vmem_limit_bytes=_vmem_limit_bytes(user_rows, item_rows, n_total,
                                               emb_dim, tile_rows),
        ),
        cost_estimate=cost,
    )(user_emb, item_emb, norm_adj)
    return user_all, item_all


# ----------------------------------------------------------------------------
# Deterministic parameter / graph construction
# ----------------------------------------------------------------------------
def xavier_uniform(key, shape, dtype=jnp.float32):
    fan_out, fan_in = shape  # torch: fan_in = size(1), fan_out = size(0)
    bound = float(np.sqrt(6.0 / (fan_in + fan_out)))
    return jax.random.uniform(key, shape, dtype, minval=-bound, maxval=bound)


def build_norm_adj(key, user_num, item_num, density=0.05):
    """Dense symmetric-normalized bipartite adjacency D^-1/2 [[0,R],[R^T,0]] D^-1/2."""
    N = user_num + item_num
    R = (jax.random.uniform(key, (user_num, item_num)) < density).astype(jnp.float32)
    A = jnp.zeros((N, N), jnp.float32)
    A = A.at[:user_num, user_num:].set(R)
    A = A.at[user_num:, :user_num].set(R.T)
    deg = jnp.sum(A, axis=1)
    d_inv_sqrt = jnp.where(deg > 0, 1.0 / jnp.sqrt(jnp.maximum(deg, 1e-12)), 0.0)
    return A * d_inv_sqrt[:, None] * d_inv_sqrt[None, :]


# ----------------------------------------------------------------------------
# Main
# ----------------------------------------------------------------------------
if __name__ == "__main__":
    user_num = 384
    item_num = 640          # N = 1024 -> tile_rows = 512, grid = (n_layers, 2)
    emb_size = 32
    n_layers = 2

    key = jax.random.PRNGKey(0)
    k_user, k_item, k_adj = jax.random.split(key, 3)

    user_emb = xavier_uniform(k_user, (user_num, emb_size))
    item_emb = xavier_uniform(k_item, (item_num, emb_size))
    norm_adj = build_norm_adj(k_adj, user_num, item_num)

    fwd = jax.jit(functools.partial(sgl_encoder_forward, n_layers=n_layers))
    user_all, item_all = fwd(user_emb, item_emb, norm_adj)
    jax.block_until_ready((user_all, item_all))

    # Pure-JAX reference to verify semantics.
    ego_ref = jnp.concatenate([user_emb, item_emb], axis=0)
    accs = [ego_ref]
    e = ego_ref
    for _ in range(n_layers):
        e = jnp.dot(norm_adj, e, precision=jax.lax.Precision.HIGHEST)
        accs.append(e)
    mean_ref = jnp.mean(jnp.stack(accs, axis=1), axis=1)
    user_ref, item_ref = mean_ref[:user_num], mean_ref[user_num:]

    assert user_all.shape == (user_num, emb_size)
    assert item_all.shape == (item_num, emb_size)
    np.testing.assert_allclose(np.asarray(user_all), np.asarray(user_ref),
                               rtol=1e-5, atol=1e-5)
    np.testing.assert_allclose(np.asarray(item_all), np.asarray(item_ref),
                               rtol=1e-5, atol=1e-5)

    print("KERNEL_OK")
</pallas_src>

<mosaic_0001>
module attributes {stable_mosaic.version = 11 : i64} {
  func.func @_sgl_kernel(%arg0: i32, %arg1: i32, %arg2: memref<384x32xf32, #tpu.memory_space<vmem>>, %arg3: memref<640x32xf32, #tpu.memory_space<vmem>>, %arg4: memref<512x1024xf32, #tpu.memory_space<vmem>>, %arg5: memref<384x32xf32, #tpu.memory_space<vmem>>, %arg6: memref<640x32xf32, #tpu.memory_space<vmem>>, %arg7: memref<1024x32xf32, #tpu.memory_space<vmem>>, %arg8: memref<1024x32xf32, #tpu.memory_space<vmem>>, %arg9: memref<1024x32xf32, #tpu.memory_space<vmem>>) attributes {dimension_semantics = [#tpu.dimension_semantics<arbitrary>, #tpu.dimension_semantics<arbitrary>], iteration_bounds = array<i64: 2, 2>, scalar_prefetch = 0 : i64, scratch_operands = 3 : i64, tpu.core_type = #tpu.core_type<tc>, window_params = [{pipeline_mode = #tpu.pipeline_mode<synchronous>, transform_indices = @transform_0, window_bounds = array<i64: 384, 32>}, {pipeline_mode = #tpu.pipeline_mode<synchronous>, transform_indices = @transform_1, window_bounds = array<i64: 640, 32>}, {transform_indices = @transform_2, window_bounds = array<i64: 512, 1024>}, {pipeline_mode = #tpu.pipeline_mode<synchronous>, transform_indices = @transform_3, window_bounds = array<i64: 384, 32>}, {pipeline_mode = #tpu.pipeline_mode<synchronous>, transform_indices = @transform_4, window_bounds = array<i64: 640, 32>}]} {
    %c0_i32 = arith.constant 0 : i32
    %0 = arith.cmpi eq, %arg0, %c0_i32 : i32
    %c0_i32_0 = arith.constant 0 : i32
    %1 = arith.cmpi eq, %arg1, %c0_i32_0 : i32
    %2 = arith.andi %0, %1 : i1
    %3 = arith.extui %2 : i1 to i32
    %c0_i32_1 = arith.constant 0 : i32
    %4 = arith.cmpi ne, %3, %c0_i32_1 : i32
    scf.if %4 {
      %c0_10 = arith.constant 0 : index
      %c0_11 = arith.constant 0 : index
      %20 = vector.load %arg2[%c0_10, %c0_11] : memref<384x32xf32, #tpu.memory_space<vmem>>, vector<384x32xf32>
      %c0_12 = arith.constant 0 : index
      %c0_13 = arith.constant 0 : index
      %21 = vector.load %arg7[%c0_12, %c0_13] : memref<1024x32xf32, #tpu.memory_space<vmem>>, vector<384x32xf32>
      tpu.vector_store %arg7[%c0_12, %c0_13], %20 {strides = array<i32>} : memref<1024x32xf32, #tpu.memory_space<vmem>>, vector<384x32xf32>,
      %c0_14 = arith.constant 0 : index
      %c0_15 = arith.constant 0 : index
      %22 = vector.load %arg3[%c0_14, %c0_15] : memref<640x32xf32, #tpu.memory_space<vmem>>, vector<640x32xf32>
      %c384 = arith.constant 384 : index
      %c0_16 = arith.constant 0 : index
      %23 = vector.load %arg7[%c384, %c0_16] : memref<1024x32xf32, #tpu.memory_space<vmem>>, vector<640x32xf32>
      tpu.vector_store %arg7[%c384, %c0_16], %22 {strides = array<i32>} : memref<1024x32xf32, #tpu.memory_space<vmem>>, vector<640x32xf32>,
      %c0_17 = arith.constant 0 : index
      %c0_18 = arith.constant 0 : index
      %24 = vector.load %arg7[%c0_17, %c0_18] : memref<1024x32xf32, #tpu.memory_space<vmem>>, vector<1024x32xf32>
      %c0_19 = arith.constant 0 : index
      %c0_20 = arith.constant 0 : index
      %25 = vector.load %arg9[%c0_19, %c0_20] : memref<1024x32xf32, #tpu.memory_space<vmem>>, vector<1024x32xf32>
      tpu.vector_store %arg9[%c0_19, %c0_20], %24 {strides = array<i32>} : memref<1024x32xf32, #tpu.memory_space<vmem>>, vector<1024x32xf32>,
    } else {
    }
    %c512_i32 = arith.constant 512 : i32
    %5 = arith.muli %arg1, %c512_i32 : i32
    %6 = tpu.assume_multiple %5, 512 : i32
    %c0 = arith.constant 0 : index
    %c0_2 = arith.constant 0 : index
    %7 = vector.load %arg4[%c0, %c0_2] : memref<512x1024xf32, #tpu.memory_space<vmem>>, vector<512x1024xf32>
    %c0_3 = arith.constant 0 : index
    %c0_4 = arith.constant 0 : index
    %8 = vector.load %arg7[%c0_3, %c0_4] : memref<1024x32xf32, #tpu.memory_space<vmem>>, vector<1024x32xf32>
    %cst = arith.constant dense<0.000000e+00> : vector<512x32xf32>
    %9 = tpu.matmul %7, %8, %cst {dimension_numbers = #tpu.dot_dimension_numbers<[1], [0], [0], [1], [0, 0, 1, 1], [], []>} : vector<512x1024xf32>, vector<1024x32xf32>, vector<512x32xf32> -> vector<512x32xf32>
    %10 = arith.index_cast %6 : i32 to index
    %c0_5 = arith.constant 0 : index
    %11 = vector.load %arg8[%10, %c0_5] : memref<1024x32xf32, #tpu.memory_space<vmem>>, vector<512x32xf32>
    tpu.vector_store %arg8[%10, %c0_5], %9 {strides = array<i32>} : memref<1024x32xf32, #tpu.memory_space<vmem>>, vector<512x32xf32>,
    %c1_i32 = arith.constant 1 : i32
    %12 = arith.cmpi eq, %arg1, %c1_i32 : i32
    %13 = arith.extui %12 : i1 to i32
    %c0_i32_6 = arith.constant 0 : i32
    %14 = arith.cmpi ne, %13, %c0_i32_6 : i32
    scf.if %14 {
      %c0_10 = arith.constant 0 : index
      %c0_11 = arith.constant 0 : index
      %20 = vector.load %arg8[%c0_10, %c0_11] : memref<1024x32xf32, #tpu.memory_space<vmem>>, vector<1024x32xf32>
      %c0_12 = arith.constant 0 : index
      %c0_13 = arith.constant 0 : index
      %21 = vector.load %arg7[%c0_12, %c0_13] : memref<1024x32xf32, #tpu.memory_space<vmem>>, vector<1024x32xf32>
      tpu.vector_store %arg7[%c0_12, %c0_13], %20 {strides = array<i32>} : memref<1024x32xf32, #tpu.memory_space<vmem>>, vector<1024x32xf32>,
      %c0_14 = arith.constant 0 : index
      %c0_15 = arith.constant 0 : index
      %22 = vector.load %arg9[%c0_14, %c0_15] : memref<1024x32xf32, #tpu.memory_space<vmem>>, vector<1024x32xf32>
      %23 = arith.addf %22, %20 : vector<1024x32xf32>
      %c0_16 = arith.constant 0 : index
      %c0_17 = arith.constant 0 : index
      %24 = vector.load %arg9[%c0_16, %c0_17] : memref<1024x32xf32, #tpu.memory_space<vmem>>, vector<1024x32xf32>
      tpu.vector_store %arg9[%c0_16, %c0_17], %23 {strides = array<i32>} : memref<1024x32xf32, #tpu.memory_space<vmem>>, vector<1024x32xf32>,
    } else {
    }
    %c1_i32_7 = arith.constant 1 : i32
    %15 = arith.cmpi eq, %arg0, %c1_i32_7 : i32
    %c1_i32_8 = arith.constant 1 : i32
    %16 = arith.cmpi eq, %arg1, %c1_i32_8 : i32
    %17 = arith.andi %15, %16 : i1
    %18 = arith.extui %17 : i1 to i32
    %c0_i32_9 = arith.constant 0 : i32
    %19 = arith.cmpi ne, %18, %c0_i32_9 : i32
    scf.if %19 {
      %c0_10 = arith.constant 0 : index
      %c0_11 = arith.constant 0 : index
      %20 = vector.load %arg9[%c0_10, %c0_11] : memref<1024x32xf32, #tpu.memory_space<vmem>>, vector<1024x32xf32>
      %cst_12 = arith.constant 0.333333343 : f32
      %21 = vector.broadcast %cst_12 : f32 to vector<1024x32xf32>
      %22 = arith.mulf %20, %21 : vector<1024x32xf32>
      %23 = vector.extract_strided_slice %22 {offsets = [0, 0], sizes = [384, 32], strides = [1, 1]} : vector<1024x32xf32> to vector<384x32xf32>
      %c0_13 = arith.constant 0 : index
      %c0_14 = arith.constant 0 : index
      %24 = vector.load %arg5[%c0_13, %c0_14] : memref<384x32xf32, #tpu.memory_space<vmem>>, vector<384x32xf32>
      tpu.vector_store %arg5[%c0_13, %c0_14], %23 {strides = array<i32>} : memref<384x32xf32, #tpu.memory_space<vmem>>, vector<384x32xf32>,
      %25 = vector.extract_strided_slice %22 {offsets = [384, 0], sizes = [640, 32], strides = [1, 1]} : vector<1024x32xf32> to vector<640x32xf32>
      %c0_15 = arith.constant 0 : index
      %c0_16 = arith.constant 0 : index
      %26 = vector.load %arg6[%c0_15, %c0_16] : memref<640x32xf32, #tpu.memory_space<vmem>>, vector<640x32xf32>
      tpu.vector_store %arg6[%c0_15, %c0_16], %25 {strides = array<i32>} : memref<640x32xf32, #tpu.memory_space<vmem>>, vector<640x32xf32>,
    } else {
    }
    return
  }
  func.func @transform_0(%arg0: i32, %arg1: i32) -> (i32, i32) {
    %c0_i32 = arith.constant 0 : i32
    %c0_i32_0 = arith.constant 0 : i32
    %c0_i32_1 = arith.constant 0 : i32
    return %c0_i32, %c0_i32_0 : i32, i32
  }
  func.func @transform_1(%arg0: i32, %arg1: i32) -> (i32, i32) {
    %c0_i32 = arith.constant 0 : i32
    %c0_i32_0 = arith.constant 0 : i32
    %c0_i32_1 = arith.constant 0 : i32
    return %c0_i32, %c0_i32_0 : i32, i32
  }
  func.func @transform_2(%arg0: i32, %arg1: i32) -> (i32, i32) {
    %c0_i32 = arith.constant 0 : i32
    %c0_i32_0 = arith.constant 0 : i32
    return %arg1, %c0_i32 : i32, i32
  }
  func.func @transform_3(%arg0: i32, %arg1: i32) -> (i32, i32) {
    %c0_i32 = arith.constant 0 : i32
    %c0_i32_0 = arith.constant 0 : i32
    %c0_i32_1 = arith.constant 0 : i32
    return %c0_i32, %c0_i32_0 : i32, i32
  }
  func.func @transform_4(%arg0: i32, %arg1: i32) -> (i32, i32) {
    %c0_i32 = arith.constant 0 : i32
    %c0_i32_0 = arith.constant 0 : i32
    %c0_i32_1 = arith.constant 0 : i32
    return %c0_i32, %c0_i32_0 : i32, i32
  }
}

</mosaic_0001>

<bundles_post_ra>
// kernel: sgl_encoder_forward.1
= control target key start
LH: loop header
LB: loop body
LE: loop exit
PB: predicated region body
PF: predicated region fallthrough
CT: control target
= control target key end

     0   :  { %10 = vsyncpa [#allocation6], 0  ;;  %s7576_s0 = inlined_call_operand.vmem [shape: f32[384,32], index: 0, kind: input, shape index: {}]   ;;  %s7577_s1 = inlined_call_operand.vmem [shape: f32[640,32], index: 1, kind: input, shape index: {}]   ;;  %s7578_s2 = inlined_call_operand.hbm [shape: f32[1024,1024], index: 2, kind: input, shape index: {}]   ;;  %s7579_s3 = inlined_call_operand.vmem [shape: f32[384,32], index: 3, kind: output, shape index: {0}]   ;;  %s7580_s4 = inlined_call_operand.vmem [shape: f32[640,32], index: 4, kind: output, shape index: {1}]  }
   0x1   :  { %12 = vsyncpa [#allocation6 + $0x1], 0  ;;  %s4801_s15 = smov 0   ;;  %s4803_s16 = smov 0  }
   0x2   :  { %s4805_s17 = smov 0   ;;  %s4807_s18 = smov 0  }
   0x3   :  { %s4809_s19 = smov 0   ;;  %s4811_s20 = smov 0  }
   0x4   :  { %s4813_s21 = smov 0   ;;  %s4815_s22 = smov 0  }
   0x5 LB: > { %s4073_s23 = sadd.s32 4294967295, %s4770_s22   ;;  %s27_s24 = sadd.s32 1, %s4762_s20  ;;  %s4770_s22 = sphi %s4815_s22, %s18_s22   ;;  %s4766_s21 = sphi %s4813_s21, %s7827_s21   ;;  %s4762_s20 = sphi %s4811_s20, %s7826_s20   ;;  %s4758_s19 = sphi %s4809_s19, %s7825_s19   ;;  %s4754_s18 = sphi %s4807_s18, %s7824_s18   ;;  %s4750_s17 = sphi %s4805_s17, %s7823_s17   ;;  %s4746_s16 = sphi %s4803_s16, %s7822_s16   ;;  %s4742_s15 = sphi %s4801_s15, %s7821_s15  }
   0x6   : > { %p28_p0 = scmp.ge.s32.totalorder %s27_s24, 2  ;;  %s30_s25 = sadd.s32 1, %s4766_s21 }
   0x7   : > { %s79_s26 = sadd.s32 1, %s4750_s17  ;;  %p86_p1 = scmp.ne.s32.totalorder %s4750_s17, %s4746_s16 }
   0x8   : > { %s7829_s24 = smov (%p28_p0, %s27_s24), 0  ;;  %s7831_s25 = smov (!%p28_p0, %s30_s25), %s4766_s21 }
   0x9   : > { %s76_s27 = ssub.s32 %s4762_s20, %s7829_s24  ;;  %p87_p2 = scmp.eq.s32.totalorder %s4770_s22, 0 }
   0xa   : > { %p32_p3 = scmp.ge.s32.totalorder %s7831_s25, 2  ;;  %p77_p4 = scmp.eq.s32.totalorder %s76_s27, 0 }
   0xb   : > { %p4851_p5 = por %p87_p2, %p86_p1  ;;  %p92_p6 = scmp.ne.s32.totalorder %s4746_s16, %s4742_s15 }
   0xc   : > { %s7833_s25 = smov (%p32_p3, %s7831_s25), 0  ;;  %p93_p7 = scmp.eq.s32.totalorder %s4073_s23, 0 }
   0xd   : > { %s4859_s29 = scalar_select %p77_p4, %s4750_s17, %s79_s26  }
   0xe   : > { %p4606_p8 = scmp.lt.s32.totalorder %s4770_s22, 4  ;;  %s164_s30 = sand.u32 1, %s4750_s17  }
   0xf   : > { %p4863_p9 = por %p93_p7, %p92_p6  ;;  %s4076_s6 = sshll.u32 %s164_s30, 12 }
  0x10   : > { %s4087_s7 = sshll.u32 %s4762_s20, 16  ;;  %s168_s11 = scalar_lea.vmem [#allocation5], %s4076_s6 }
  0x11   : > { %s4871_s10 = scalar_lea.hbm %s7578_s2, %s4087_s7  ;;  %s176_s12 = sshll.u32 %s168_s11, 4  ;;  %s4879_s12 = int_to_ptr.vmem [resolvable:$true] %s176_s12 }
  0x12   : > { %p4875_p10 = pnand %p4606_p8, %p4851_p5  ;;  %s4881_s14 = scalar_lea.sflag [#allocation6], %s164_s30 }
  0x13   : > { %s4674_s15 = scalar_lea.hbm %s4871_s10, 65536  ;;  %s4679_s27 = scalar_lea.hbm %s7578_s2, 131072 }
  0x14   : > { %p4675_p11 = scmp.ne.s32.totalorder %s4871_s10, %s4674_s15  ;;  %p4676_p12 = pneg %p4875_p10 }
  0x15   : > { %p4680_p1 = scmp.lt.u32.totalorder %s4871_s10, %s7578_s2  ;;  %p4681_p2 = scmp.lt.u32.totalorder %s4679_s27, %s4674_s15 }
  0x16   : > { %p4677_p13 = pnand %p4676_p12, %p4675_p11  ;;  %p4683_p4 = scmp.lt.u32.totalorder %s4674_s15, %s4871_s10 }
  0x17   : > { %p4682_p3 = por %p4681_p2, %p4680_p1 }
  0x18   : > { %p4678_p0 = pneg %p4677_p13 }
  0x19   : > { %p4684_p5 = por %p4683_p4, %p4682_p3 }
  0x1b   : > { %p4685_p6 = pnand %p4684_p5, %p4678_p0 }
  0x1d   : > { %4688 = shalt.err (!%p4685_p6)
}
  0x1e   : > { %s4689_s30 = scalar_lea.vmem %s4879_s12, 65536  ;;  %s4772_s7 = smov [#allocation5]  }
  0x1f   : > { %p4690_p7 = scmp.ne.s32.totalorder %s4879_s12, %s4689_s30  ;;  %s4694_s8 = sshll.u32 %s4772_s7, 4  ;;  %s4695_s8 = int_to_ptr.vmem [resolvable:$false] %s4694_s8 }
  0x20   : > { %s4696_s9 = scalar_lea.vmem %s4695_s8, 131072  ;;  %p4697_p13 = scmp.lt.s32.totalorder %s4879_s12, %s4695_s8 }
  0x21   : > { %p4692_p8 = pnand %p4690_p7, %p4676_p12  ;;  %p4698_p1 = scmp.lt.s32.totalorder %s4696_s9, %s4689_s30 }
  0x23   : > { %p4693_p11 = pneg %p4692_p8  ;;  %p4699_p2 = por %p4698_p1, %p4697_p13 }
  0x25   : > { %p4700_p3 = pnand %p4699_p2, %p4693_p11 }
  0x27   : > { %4703 = shalt.err (!%p4700_p3)
}
  0x28   : > { %s4773_s11 = smov 1024   ;;  %s4774_s15 = smov 64  }
  0x29   : > { %4605 = dma.hbm_to_vmem [thread:$0]  (!%p4875_p10), %s4871_s10, 65536, %s4879_s12, %s4881_s14, %s4773_s11, %s4773_s11, %s4774_s15  }
  0x2a   : > { %p4080_p12 = scmp.ge.s32.totalorder %s4770_s22, 1  ;;  %p184_p0 = scmp.lt.s32.totalorder %s4770_s22, 5 }
  0x2c   : > { %p185_p4 = pnand %p4080_p12, %p184_p0 }
  0x2d   : > { %s190_s23 = sand.u32 (!%p185_p4), 1, %s4746_s16  }
  0x2e   : > { %188 = sbr.rel (%p185_p4) target bundleno = 1259 (0x4eb), region = 32  ;;  %s4081_s26 = sshll.u32 (!%p185_p4), %s190_s23, 12 }
  0x2f   : > { %s191_s27 = scalar_lea.sflag (!%p185_p4), [#allocation6], %s190_s23  ;;  %s4912_s28 = scalar_lea.vmem (!%p185_p4), [#allocation5], %s4081_s26 }
  0x35   : > { %4737 = dma.done.wait (%p4863_p9), %s191_s27, 65536  }
  0x36   : > { %4739 = vsyncadd (%p4863_p9), %s191_s27, 4294901760  ;;  %p215_p5 = scmp.eq.s32.totalorder %s4758_s19, 0  ;;  %p216_p10 = scmp.eq.s32.totalorder %s4754_s18, 0 }
  0x38   : > { %p217_p6 = pnand %p216_p10, %p215_p5 }
  0x39   : > { %v221_v0 = vld [vmem:[%s7576_s0] sm:$0xff] (!%p217_p6)  ;;  %vm269_vm0 = vcmask (!%p217_p6), 261120   ;;  %v222_v1 = vld [vmem:[%s7576_s0 + $0x8] sm:$0xff] (!%p217_p6)  ;;  %v223_v2 = vld [vmem:[%s7576_s0 + $0x10] sm:$0xff] (!%p217_p6) }
  0x3a   : > { %220 = sbr.rel (%p217_p6) target bundleno = 186 (0xba), region = 40  ;;  %270 = vst.msk [vmem:[#allocation2] sm:$0xff] (!%p217_p6), %vm269_vm0, %v221_v0  ;;  %271 = vst.msk [vmem:[#allocation2 + $0x8] sm:$0xff] (!%p217_p6), %vm269_vm0, %v222_v1  ;;  %v224_v3 = vld [vmem:[%s7576_s0 + $0x18] sm:$0xff] (!%p217_p6)  ;;  %v225_v4 = vld [vmem:[%s7576_s0 + $0x20] sm:$0xff] (!%p217_p6) }
  0x3b   : > { %272 = vst.msk [vmem:[#allocation2 + $0x10] sm:$0xff] (!%p217_p6), %vm269_vm0, %v223_v2  ;;  %v226_v5 = vld [vmem:[%s7576_s0 + $0x28] sm:$0xff] (!%p217_p6)  ;;  %273 = vst.msk [vmem:[#allocation2 + $0x18] sm:$0xff] (!%p217_p6), %vm269_vm0, %v224_v3  ;;  %v227_v6 = vld [vmem:[%s7576_s0 + $0x30] sm:$0xff] (!%p217_p6) }
  0x3c   : > { %274 = vst.msk [vmem:[#allocation2 + $0x20] sm:$0xff] (!%p217_p6), %vm269_vm0, %v225_v4  ;;  %275 = vst.msk [vmem:[#allocation2 + $0x28] sm:$0xff] (!%p217_p6), %vm269_vm0, %v226_v5  ;;  %v228_v7 = vld [vmem:[%s7576_s0 + $0x38] sm:$0xff] (!%p217_p6)  ;;  %v229_v8 = vld [vmem:[%s7576_s0 + $0x40] sm:$0xff] (!%p217_p6) }
  0x3d   : > { %276 = vst.msk [vmem:[#allocation2 + $0x30] sm:$0xff] (!%p217_p6), %vm269_vm0, %v227_v6  ;;  %277 = vst.msk [vmem:[#allocation2 + $0x38] sm:$0xff] (!%p217_p6), %vm269_vm0, %v228_v7  ;;  %v230_v9 = vld [vmem:[%s7576_s0 + $0x48] sm:$0xff] (!%p217_p6)  ;;  %v231_v10 = vld [vmem:[%s7576_s0 + $0x50] sm:$0xff] (!%p217_p6) }
  0x3e   : > { %278 = vst.msk [vmem:[#allocation2 + $0x40] sm:$0xff] (!%p217_p6), %vm269_vm0, %v229_v8  ;;  %v232_v11 = vld [vmem:[%s7576_s0 + $0x58] sm:$0xff] (!%p217_p6)  ;;  %279 = vst.msk [vmem:[#allocation2 + $0x48] sm:$0xff] (!%p217_p6), %vm269_vm0, %v230_v9  ;;  %v233_v12 = vld [vmem:[%s7576_s0 + $0x60] sm:$0xff] (!%p217_p6) }
  0x3f   : > { %280 = vst.msk [vmem:[#allocation2 + $0x50] sm:$0xff] (!%p217_p6), %vm269_vm0, %v231_v10  ;;  %281 = vst.msk [vmem:[#allocation2 + $0x58] sm:$0xff] (!%p217_p6), %vm269_vm0, %v232_v11  ;;  %v234_v13 = vld [vmem:[%s7576_s0 + $0x68] sm:$0xff] (!%p217_p6)  ;;  %v235_v14 = vld [vmem:[%s7576_s0 + $0x70] sm:$0xff] (!%p217_p6) }
  0x40   : > { %282 = vst.msk [vmem:[#allocation2 + $0x60] sm:$0xff] (!%p217_p6), %vm269_vm0, %v233_v12  ;;  %283 = vst.msk [vmem:[#allocation2 + $0x68] sm:$0xff] (!%p217_p6), %vm269_vm0, %v234_v13  ;;  %v236_v15 = vld [vmem:[%s7576_s0 + $0x78] sm:$0xff] (!%p217_p6)  ;;  %v237_v16 = vld [vmem:[%s7576_s0 + $0x80] sm:$0xff] (!%p217_p6) }
  0x41   : > { %284 = vst.msk [vmem:[#allocation2 + $0x70] sm:$0xff] %vm269_vm0, %v235_v14  ;;  %v238_v17 = vld [vmem:[%s7576_s0 + $0x88] sm:$0xff]  ;;  %285 = vst.msk [vmem:[#allocation2 + $0x78] sm:$0xff] %vm269_vm0, %v236_v15  ;;  %v239_v18 = vld [vmem:[%s7576_s0 + $0x90] sm:$0xff] }
  0x42   : > { %286 = vst.msk [vmem:[#allocation2 + $0x80] sm:$0xff] %vm269_vm0, %v237_v16  ;;  %287 = vst.msk [vmem:[#allocation2 + $0x88] sm:$0xff] %vm269_vm0, %v238_v17  ;;  %v240_v19 = vld [vmem:[%s7576_s0 + $0x98] sm:$0xff]  ;;  %v241_v20 = vld [vmem:[%s7576_s0 + $0xa0] sm:$0xff] }
  0x43   : > { %288 = vst.msk [vmem:[#allocation2 + $0x90] sm:$0xff] %vm269_vm0, %v239_v18  ;;  %289 = vst.msk [vmem:[#allocation2 + $0x98] sm:$0xff] %vm269_vm0, %v240_v19  ;;  %v242_v21 = vld [vmem:[%s7576_s0 + $0xa8] sm:$0xff]  ;;  %v243_v22 = vld [vmem:[%s7576_s0 + $0xb0] sm:$0xff] }
  0x44   : > { %290 = vst.msk [vmem:[#allocation2 + $0xa0] sm:$0xff] %vm269_vm0, %v241_v20  ;;  %v244_v23 = vld [vmem:[%s7576_s0 + $0xb8] sm:$0xff]  ;;  %291 = vst.msk [vmem:[#allocation2 + $0xa8] sm:$0xff] %vm269_vm0, %v242_v21  ;;  %v245_v24 = vld [vmem:[%s7576_s0 + $0xc0] sm:$0xff] }
  0x45   : > { %292 = vst.msk [vmem:[#allocation2 + $0xb0] sm:$0xff] %vm269_vm0, %v243_v22  ;;  %293 = vst.msk [vmem:[#allocation2 + $0xb8] sm:$0xff] %vm269_vm0, %v244_v23  ;;  %v246_v25 = vld [vmem:[%s7576_s0 + $0xc8] sm:$0xff]  ;;  %v247_v26 = vld [vmem:[%s7576_s0 + $0xd0] sm:$0xff] }
  0x46   : > { %294 = vst.msk [vmem:[#allocation2 + $0xc0] sm:$0xff] %vm269_vm0, %v245_v24  ;;  %295 = vst.msk [vmem:[#allocation2 + $0xc8] sm:$0xff] %vm269_vm0, %v246_v25  ;;  %v248_v27 = vld [vmem:[%s7576_s0 + $0xd8] sm:$0xff]  ;;  %v249_v28 = vld [vmem:[%s7576_s0 + $0xe0] sm:$0xff] }
  0x47   : > { %296 = vst.msk [vmem:[#allocation2 + $0xd0] sm:$0xff] %vm269_vm0, %v247_v26  ;;  %v250_v29 = vld [vmem:[%s7576_s0 + $0xe8] sm:$0xff]  ;;  %297 = vst.msk [vmem:[#allocation2 + $0xd8] sm:$0xff] %vm269_vm0, %v248_v27  ;;  %v251_v30 = vld [vmem:[%s7576_s0 + $0xf0] sm:$0xff] }
  0x48   : > { %298 = vst.msk [vmem:[#allocation2 + $0xe0] sm:$0xff] %vm269_vm0, %v249_v28  ;;  %299 = vst.msk [vmem:[#allocation2 + $0xe8] sm:$0xff] %vm269_vm0, %v250_v29  ;;  %v252_v31 = vld [vmem:[%s7576_s0 + $0xf8] sm:$0xff]  ;;  %v253_v32 = vld [vmem:[%s7576_s0 + $0x100] sm:$0xff] }
  0x49   : > { %300 = vst.msk [vmem:[#allocation2 + $0xf0] sm:$0xff] %vm269_vm0, %v251_v30  ;;  %301 = vst.msk [vmem:[#allocation2 + $0xf8] sm:$0xff] %vm269_vm0, %v252_v31  ;;  %v254_v33 = vld [vmem:[%s7576_s0 + $0x108] sm:$0xff]  ;;  %v255_v34 = vld [vmem:[%s7576_s0 + $0x110] sm:$0xff] }
  0x4a   : > { %302 = vst.msk [vmem:[#allocation2 + $0x100] sm:$0xff] %vm269_vm0, %v253_v32  ;;  %v256_v35 = vld [vmem:[%s7576_s0 + $0x118] sm:$0xff]  ;;  %303 = vst.msk [vmem:[#allocation2 + $0x108] sm:$0xff] %vm269_vm0, %v254_v33  ;;  %v257_v36 = vld [vmem:[%s7576_s0 + $0x120] sm:$0xff] }
  0x4b   : > { %304 = vst.msk [vmem:[#allocation2 + $0x110] sm:$0xff] %vm269_vm0, %v255_v34  ;;  %305 = vst.msk [vmem:[#allocation2 + $0x118] sm:$0xff] %vm269_vm0, %v256_v35  ;;  %v258_v37 = vld [vmem:[%s7576_s0 + $0x128] sm:$0xff]  ;;  %v259_v38 = vld [vmem:[%s7576_s0 + $0x130] sm:$0xff] }
  0x4c   : > { %306 = vst.msk [vmem:[#allocation2 + $0x120] sm:$0xff] %vm269_vm0, %v257_v36  ;;  %307 = vst.msk [vmem:[#allocation2 + $0x128] sm:$0xff] %vm269_vm0, %v258_v37  ;;  %v260_v39 = vld [vmem:[%s7576_s0 + $0x138] sm:$0xff]  ;;  %v261_v40 = vld [vmem:[%s7576_s0 + $0x140] sm:$0xff] }
  0x4d   : > { %308 = vst.msk [vmem:[#allocation2 + $0x130] sm:$0xff] %vm269_vm0, %v259_v38  ;;  %v262_v41 = vld [vmem:[%s7576_s0 + $0x148] sm:$0xff]  ;;  %309 = vst.msk [vmem:[#allocation2 + $0x138] sm:$0xff] %vm269_vm0, %v260_v39  ;;  %v263_v42 = vld [vmem:[%s7576_s0 + $0x150] sm:$0xff] }
  0x4e   : > { %310 = vst.msk [vmem:[#allocation2 + $0x140] sm:$0xff] %vm269_vm0, %v261_v40  ;;  %311 = vst.msk [vmem:[#allocation2 + $0x148] sm:$0xff] %vm269_vm0, %v262_v41  ;;  %v264_v43 = vld [vmem:[%s7576_s0 + $0x158] sm:$0xff]  ;;  %v265_v44 = vld [vmem:[%s7576_s0 + $0x160] sm:$0xff] }
  0x4f   : > { %312 = vst.msk [vmem:[#allocation2 + $0x150] sm:$0xff] %vm269_vm0, %v263_v42  ;;  %313 = vst.msk [vmem:[#allocation2 + $0x158] sm:$0xff] %vm269_vm0, %v264_v43  ;;  %v266_v45 = vld [vmem:[%s7576_s0 + $0x168] sm:$0xff]  ;;  %v267_v46 = vld [vmem:[%s7576_s0 + $0x170] sm:$0xff] }
  0x50   : > { %314 = vst.msk [vmem:[#allocation2 + $0x160] sm:$0xff] %vm269_vm0, %v265_v44  ;;  %v268_v47 = vld [vmem:[%s7576_s0 + $0x178] sm:$0xff]  ;;  %315 = vst.msk [vmem:[#allocation2 + $0x168] sm:$0xff] %vm269_vm0, %v266_v45  ;;  %v318_v48 = vld [vmem:[%s7577_s1] sm:$0xff] }
  0x51   : > { %316 = vst.msk [vmem:[#allocation2 + $0x170] sm:$0xff] %vm269_vm0, %v267_v46  ;;  %317 = vst.msk [vmem:[#allocation2 + $0x178] sm:$0xff] %vm269_vm0, %v268_v47  ;;  %v319_v49 = vld [vmem:[%s7577_s1 + $0x8] sm:$0xff]  ;;  %v320_v50 = vld [vmem:[%s7577_s1 + $0x10] sm:$0xff] }
  0x52   : > { %398 = vst.msk [vmem:[#allocation2 + $0x180] sm:$0xff] %vm269_vm0, %v318_v48  ;;  %399 = vst.msk [vmem:[#allocation2 + $0x188] sm:$0xff] %vm269_vm0, %v319_v49  ;;  %v321_v51 = vld [vmem:[%s7577_s1 + $0x18] sm:$0xff]  ;;  %v322_v52 = vld [vmem:[%s7577_s1 + $0x20] sm:$0xff] }
  0x53   : > { %400 = vst.msk [vmem:[#allocation2 + $0x190] sm:$0xff] %vm269_vm0, %v320_v50  ;;  %v323_v53 = vld [vmem:[%s7577_s1 + $0x28] sm:$0xff]  ;;  %401 = vst.msk [vmem:[#allocation2 + $0x198] sm:$0xff] %vm269_vm0, %v321_v51  ;;  %v324_v54 = vld [vmem:[%s7577_s1 + $0x30] sm:$0xff] }
  0x54   : > { %402 = vst.msk [vmem:[#allocation2 + $0x1a0] sm:$0xff] %vm269_vm0, %v322_v52  ;;  %403 = vst.msk [vmem:[#allocation2 + $0x1a8] sm:$0xff] %vm269_vm0, %v323_v53  ;;  %v325_v55 = vld [vmem:[%s7577_s1 + $0x38] sm:$0xff]  ;;  %v326_v56 = vld [vmem:[%s7577_s1 + $0x40] sm:$0xff] }
  0x55   : > { %404 = vst.msk [vmem:[#allocation2 + $0x1b0] sm:$0xff] %vm269_vm0, %v324_v54  ;;  %405 = vst.msk [vmem:[#allocation2 + $0x1b8] sm:$0xff] %vm269_vm0, %v325_v55  ;;  %v327_v57 = vld [vmem:[%s7577_s1 + $0x48] sm:$0xff]  ;;  %v328_v58 = vld [vmem:[%s7577_s1 + $0x50] sm:$0xff] }
  0x56   : > { %406 = vst.msk [vmem:[#allocation2 + $0x1c0] sm:$0xff] %vm269_vm0, %v326_v56  ;;  %v329_v59 = vld [vmem:[%s7577_s1 + $0x58] sm:$0xff]  ;;  %407 = vst.msk [vmem:[#allocation2 + $0x1c8] sm:$0xff] %vm269_vm0, %v327_v57  ;;  %v330_v60 = vld [vmem:[%s7577_s1 + $0x60] sm:$0xff] }
  0x57   : > { %408 = vst.msk [vmem:[#allocation2 + $0x1d0] sm:$0xff] %vm269_vm0, %v328_v58  ;;  %409 = vst.msk [vmem:[#allocation2 + $0x1d8] sm:$0xff] %vm269_vm0, %v329_v59  ;;  %v331_v61 = vld [vmem:[%s7577_s1 + $0x68] sm:$0xff]  ;;  %v332_v62 = vld [vmem:[%s7577_s1 + $0x70] sm:$0xff] }
  0x58   : > { %410 = vst.msk [vmem:[#allocation2 + $0x1e0] sm:$0xff] %vm269_vm0, %v330_v60  ;;  %411 = vst.msk [vmem:[#allocation2 + $0x1e8] sm:$0xff] %vm269_vm0, %v331_v61  ;;  %v333_v63 = vld [vmem:[%s7577_s1 + $0x78] sm:$0xff]  ;;  %v334_v0 = vld [vmem:[%s7577_s1 + $0x80] sm:$0xff] }
  0x59   : > { %412 = vst.msk [vmem:[#allocation2 + $0x1f0] sm:$0xff] %vm269_vm0, %v332_v62  ;;  %v335_v1 = vld [vmem:[%s7577_s1 + $0x88] sm:$0xff]  ;;  %413 = vst.msk [vmem:[#allocation2 + $0x1f8] sm:$0xff] %vm269_vm0, %v333_v63  ;;  %v336_v2 = vld [vmem:[%s7577_s1 + $0x90] sm:$0xff] }
  0x5a   : > { %414 = vst.msk [vmem:[#allocation2 + $0x200] sm:$0xff] %vm269_vm0, %v334_v0  ;;  %415 = vst.msk [vmem:[#allocation2 + $0x208] sm:$0xff] %vm269_vm0, %v335_v1  ;;  %v337_v3 = vld [vmem:[%s7577_s1 + $0x98] sm:$0xff]  ;;  %v338_v4 = vld [vmem:[%s7577_s1 + $0xa0] sm:$0xff] }
  0x5b   : > { %416 = vst.msk [vmem:[#allocation2 + $0x210] sm:$0xff] %vm269_vm0, %v336_v2  ;;  %417 = vst.msk [vmem:[#allocation2 + $0x218] sm:$0xff] %vm269_vm0, %v337_v3  ;;  %v339_v5 = vld [vmem:[%s7577_s1 + $0xa8] sm:$0xff]  ;;  %v340_v6 = vld [vmem:[%s7577_s1 + $0xb0] sm:$0xff] }
  0x5c   : > { %418 = vst.msk [vmem:[#allocation2 + $0x220] sm:$0xff] %vm269_vm0, %v338_v4  ;;  %v341_v7 = vld [vmem:[%s7577_s1 + $0xb8] sm:$0xff]  ;;  %419 = vst.msk [vmem:[#allocation2 + $0x228] sm:$0xff] %vm269_vm0, %v339_v5  ;;  %v342_v8 = vld [vmem:[%s7577_s1 + $0xc0] sm:$0xff] }
  0x5d   : > { %420 = vst.msk [vmem:[#allocation2 + $0x230] sm:$0xff] %vm269_vm0, %v340_v6  ;;  %421 = vst.msk [vmem:[#allocation2 + $0x238] sm:$0xff] %vm269_vm0, %v341_v7  ;;  %v343_v9 = vld [vmem:[%s7577_s1 + $0xc8] sm:$0xff]  ;;  %v344_v10 = vld [vmem:[%s7577_s1 + $0xd0] sm:$0xff] }
  0x5e   : > { %422 = vst.msk [vmem:[#allocation2 + $0x240] sm:$0xff] %vm269_vm0, %v342_v8  ;;  %423 = vst.msk [vmem:[#allocation2 + $0x248] sm:$0xff] %vm269_vm0, %v343_v9  ;;  %v345_v11 = vld [vmem:[%s7577_s1 + $0xd8] sm:$0xff]  ;;  %v346_v12 = vld [vmem:[%s7577_s1 + $0xe0] sm:$0xff] }
  0x5f   : > { %424 = vst.msk [vmem:[#allocation2 + $0x250] sm:$0xff] %vm269_vm0, %v344_v10  ;;  %v347_v13 = vld [vmem:[%s7577_s1 + $0xe8] sm:$0xff]  ;;  %425 = vst.msk [vmem:[#allocation2 + $0x258] sm:$0xff] %vm269_vm0, %v345_v11  ;;  %v348_v14 = vld [vmem:[%s7577_s1 + $0xf0] sm:$0xff] }
  0x60   : > { %426 = vst.msk [vmem:[#allocation2 + $0x260] sm:$0xff] %vm269_vm0, %v346_v12  ;;  %427 = vst.msk [vmem:[#allocation2 + $0x268] sm:$0xff] %vm269_vm0, %v347_v13  ;;  %v349_v15 = vld [vmem:[%s7577_s1 + $0xf8] sm:$0xff]  ;;  %v350_v16 = vld [vmem:[%s7577_s1 + $0x100] sm:$0xff] }
  0x61   : > { %428 = vst.msk [vmem:[#allocation2 + $0x270] sm:$0xff] %vm269_vm0, %v348_v14  ;;  %429 = vst.msk [vmem:[#allocation2 + $0x278] sm:$0xff] %vm269_vm0, %v349_v15  ;;  %v351_v17 = vld [vmem:[%s7577_s1 + $0x108] sm:$0xff]  ;;  %v352_v18 = vld [vmem:[%s7577_s1 + $0x110] sm:$0xff] }
  0x62   : > { %430 = vst.msk [vmem:[#allocation2 + $0x280] sm:$0xff] %vm269_vm0, %v350_v16  ;;  %v353_v19 = vld [vmem:[%s7577_s1 + $0x118] sm:$0xff]  ;;  %431 = vst.msk [vmem:[#allocation2 + $0x288] sm:$0xff] %vm269_vm0, %v351_v17  ;;  %v354_v20 = vld [vmem:[%s7577_s1 + $0x120] sm:$0xff] }
  0x63   : > { %432 = vst.msk [vmem:[#allocation2 + $0x290] sm:$0xff] %vm269_vm0, %v352_v18  ;;  %433 = vst.msk [vmem:[#allocation2 + $0x298] sm:$0xff] %vm269_vm0, %v353_v19  ;;  %v355_v21 = vld [vmem:[%s7577_s1 + $0x128] sm:$0xff]  ;;  %v356_v22 = vld [vmem:[%s7577_s1 + $0x130] sm:$0xff] }
  0x64   : > { %434 = vst.msk [vmem:[#allocation2 + $0x2a0] sm:$0xff] %vm269_vm0, %v354_v20  ;;  %435 = vst.msk [vmem:[#allocation2 + $0x2a8] sm:$0xff] %vm269_vm0, %v355_v21  ;;  %v357_v23 = vld [vmem:[%s7577_s1 + $0x138] sm:$0xff]  ;;  %v358_v24 = vld [vmem:[%s7577_s1 + $0x140] sm:$0xff] }
  0x65   : > { %436 = vst.msk [vmem:[#allocation2 + $0x2b0] sm:$0xff] %vm269_vm0, %v356_v22  ;;  %v359_v25 = vld [vmem:[%s7577_s1 + $0x148] sm:$0xff]  ;;  %437 = vst.msk [vmem:[#allocation2 + $0x2b8] sm:$0xff] %vm269_vm0, %v357_v23  ;;  %v360_v26 = vld [vmem:[%s7577_s1 + $0x150] sm:$0xff] }
  0x66   : > { %438 = vst.msk [vmem:[#allocation2 + $0x2c0] sm:$0xff] %vm269_vm0, %v358_v24  ;;  %439 = vst.msk [vmem:[#allocation2 + $0x2c8] sm:$0xff] %vm269_vm0, %v359_v25  ;;  %v361_v27 = vld [vmem:[%s7577_s1 + $0x158] sm:$0xff]  ;;  %v362_v28 = vld [vmem:[%s7577_s1 + $0x160] sm:$0xff] }
  0x67   : > { %440 = vst.msk [vmem:[#allocation2 + $0x2d0] sm:$0xff] %vm269_vm0, %v360_v26  ;;  %441 = vst.msk [vmem:[#allocation2 + $0x2d8] sm:$0xff] %vm269_vm0, %v361_v27  ;;  %v363_v29 = vld [vmem:[%s7577_s1 + $0x168] sm:$0xff]  ;;  %v364_v30 = vld [vmem:[%s7577_s1 + $0x170] sm:$0xff] }
  0x68   : > { %442 = vst.msk [vmem:[#allocation2 + $0x2e0] sm:$0xff] %vm269_vm0, %v362_v28  ;;  %v365_v31 = vld [vmem:[%s7577_s1 + $0x178] sm:$0xff]  ;;  %443 = vst.msk [vmem:[#allocation2 + $0x2e8] sm:$0xff] %vm269_vm0, %v363_v29  ;;  %v366_v32 = vld [vmem:[%s7577_s1 + $0x180] sm:$0xff] }
  0x69   : > { %444 = vst.msk [vmem:[#allocation2 + $0x2f0] sm:$0xff] %vm269_vm0, %v364_v30  ;;  %445 = vst.msk [vmem:[#allocation2 + $0x2f8] sm:$0xff] %vm269_vm0, %v365_v31  ;;  %v367_v33 = vld [vmem:[%s7577_s1 + $0x188] sm:$0xff]  ;;  %v368_v34 = vld [vmem:[%s7577_s1 + $0x190] sm:$0xff] }
  0x6a   : > { %446 = vst.msk [vmem:[#allocation2 + $0x300] sm:$0xff] %vm269_vm0, %v366_v32  ;;  %447 = vst.msk [vmem:[#allocation2 + $0x308] sm:$0xff] %vm269_vm0, %v367_v33  ;;  %v369_v35 = vld [vmem:[%s7577_s1 + $0x198] sm:$0xff]  ;;  %v370_v36 = vld [vmem:[%s7577_s1 + $0x1a0] sm:$0xff] }
  0x6b   : > { %448 = vst.msk [vmem:[#allocation2 + $0x310] sm:$0xff] %vm269_vm0, %v368_v34  ;;  %v371_v37 = vld [vmem:[%s7577_s1 + $0x1a8] sm:$0xff]  ;;  %449 = vst.msk [vmem:[#allocation2 + $0x318] sm:$0xff] %vm269_vm0, %v369_v35  ;;  %v372_v38 = vld [vmem:[%s7577_s1 + $0x1b0] sm:$0xff] }
  0x6c   : > { %450 = vst.msk [vmem:[#allocation2 + $0x320] sm:$0xff] %vm269_vm0, %v370_v36  ;;  %451 = vst.msk [vmem:[#allocation2 + $0x328] sm:$0xff] %vm269_vm0, %v371_v37  ;;  %v373_v39 = vld [vmem:[%s7577_s1 + $0x1b8] sm:$0xff]  ;;  %v374_v40 = vld [vmem:[%s7577_s1 + $0x1c0] sm:$0xff] }
  0x6d   : > { %452 = vst.msk [vmem:[#allocation2 + $0x330] sm:$0xff] %vm269_vm0, %v372_v38  ;;  %453 = vst.msk [vmem:[#allocation2 + $0x338] sm:$0xff] %vm269_vm0, %v373_v39  ;;  %v375_v41 = vld [vmem:[%s7577_s1 + $0x1c8] sm:$0xff]  ;;  %v376_v42 = vld [vmem:[%s7577_s1 + $0x1d0] sm:$0xff] }
  0x6e   : > { %454 = vst.msk [vmem:[#allocation2 + $0x340] sm:$0xff] %vm269_vm0, %v374_v40  ;;  %v377_v43 = vld [vmem:[%s7577_s1 + $0x1d8] sm:$0xff]  ;;  %455 = vst.msk [vmem:[#allocation2 + $0x348] sm:$0xff] %vm269_vm0, %v375_v41  ;;  %v378_v44 = vld [vmem:[%s7577_s1 + $0x1e0] sm:$0xff] }
  0x6f   : > { %456 = vst.msk [vmem:[#allocation2 + $0x350] sm:$0xff] %vm269_vm0, %v376_v42  ;;  %457 = vst.msk [vmem:[#allocation2 + $0x358] sm:$0xff] %vm269_vm0, %v377_v43  ;;  %v379_v45 = vld [vmem:[%s7577_s1 + $0x1e8] sm:$0xff]  ;;  %v380_v46 = vld [vmem:[%s7577_s1 + $0x1f0] sm:$0xff] }
  0x70   : > { %458 = vst.msk [vmem:[#allocation2 + $0x360] sm:$0xff] %vm269_vm0, %v378_v44  ;;  %459 = vst.msk [vmem:[#allocation2 + $0x368] sm:$0xff] %vm269_vm0, %v379_v45  ;;  %v381_v47 = vld [vmem:[%s7577_s1 + $0x1f8] sm:$0xff]  ;;  %v382_v48 = vld [vmem:[%s7577_s1 + $0x200] sm:$0xff] }
  0x71   : > { %460 = vst.msk [vmem:[#allocation2 + $0x370] sm:$0xff] %vm269_vm0, %v380_v46  ;;  %v383_v49 = vld [vmem:[%s7577_s1 + $0x208] sm:$0xff]  ;;  %461 = vst.msk [vmem:[#allocation2 + $0x378] sm:$0xff] %vm269_vm0, %v381_v47  ;;  %v384_v50 = vld [vmem:[%s7577_s1 + $0x210] sm:$0xff] }
  0x72   : > { %462 = vst.msk [vmem:[#allocation2 + $0x380] sm:$0xff] %vm269_vm0, %v382_v48  ;;  %463 = vst.msk [vmem:[#allocation2 + $0x388] sm:$0xff] %vm269_vm0, %v383_v49  ;;  %v385_v51 = vld [vmem:[%s7577_s1 + $0x218] sm:$0xff]  ;;  %v386_v52 = vld [vmem:[%s7577_s1 + $0x220] sm:$0xff] }
  0x73   : > { %464 = vst.msk [vmem:[#allocation2 + $0x390] sm:$0xff] %vm269_vm0, %v384_v50  ;;  %465 = vst.msk [vmem:[#allocation2 + $0x398] sm:$0xff] %vm269_vm0, %v385_v51  ;;  %v387_v53 = vld [vmem:[%s7577_s1 + $0x228] sm:$0xff]  ;;  %v388_v54 = vld [vmem:[%s7577_s1 + $0x230] sm:$0xff] }
  0x74   : > { %466 = vst.msk [vmem:[#allocation2 + $0x3a0] sm:$0xff] %vm269_vm0, %v386_v52  ;;  %v389_v55 = vld [vmem:[%s7577_s1 + $0x238] sm:$0xff]  ;;  %467 = vst.msk [vmem:[#allocation2 + $0x3a8] sm:$0xff] %vm269_vm0, %v387_v53  ;;  %v390_v56 = vld [vmem:[%s7577_s1 + $0x240] sm:$0xff] }
  0x75   : > { %468 = vst.msk [vmem:[#allocation2 + $0x3b0] sm:$0xff] %vm269_vm0, %v388_v54  ;;  %469 = vst.msk [vmem:[#allocation2 + $0x3b8] sm:$0xff] %vm269_vm0, %v389_v55  ;;  %v391_v57 = vld [vmem:[%s7577_s1 + $0x248] sm:$0xff]  ;;  %v392_v58 = vld [vmem:[%s7577_s1 + $0x250] sm:$0xff] }
  0x76   : > { %470 = vst.msk [vmem:[#allocation2 + $0x3c0] sm:$0xff] %vm269_vm0, %v390_v56  ;;  %471 = vst.msk [vmem:[#allocation2 + $0x3c8] sm:$0xff] %vm269_vm0, %v391_v57  ;;  %v393_v59 = vld [vmem:[%s7577_s1 + $0x258] sm:$0xff]  ;;  %v394_v60 = vld [vmem:[%s7577_s1 + $0x260] sm:$0xff] }
  0x77   : > { %472 = vst.msk [vmem:[#allocation2 + $0x3d0] sm:$0xff] %vm269_vm0, %v392_v58  ;;  %v395_v61 = vld [vmem:[%s7577_s1 + $0x268] sm:$0xff]  ;;  %473 = vst.msk [vmem:[#allocation2 + $0x3d8] sm:$0xff] %vm269_vm0, %v393_v59  ;;  %v396_v62 = vld [vmem:[%s7577_s1 + $0x270] sm:$0xff] }
  0x78   : > { %474 = vst.msk [vmem:[#allocation2 + $0x3e0] sm:$0xff] %vm269_vm0, %v394_v60  ;;  %475 = vst.msk [vmem:[#allocation2 + $0x3e8] sm:$0xff] %vm269_vm0, %v395_v61  ;;  %v397_v63 = vld [vmem:[%s7577_s1 + $0x278] sm:$0xff]  ;;  %v478_v0 = vld [vmem:[#allocation2] sm:$0xff] }
  0x79   : > { %476 = vst.msk [vmem:[#allocation2 + $0x3f0] sm:$0xff] %vm269_vm0, %v396_v62  ;;  %477 = vst.msk [vmem:[#allocation2 + $0x3f8] sm:$0xff] %vm269_vm0, %v397_v63  ;;  %v479_v1 = vld [vmem:[#allocation2 + $0x8] sm:$0xff]  ;;  %v480_v2 = vld [vmem:[#allocation2 + $0x10] sm:$0xff] }
  0x7a   : > { %606 = vst.msk [vmem:[#allocation4] sm:$0xff] %vm269_vm0, %v478_v0  ;;  %v481_v3 = vld [vmem:[#allocation2 + $0x18] sm:$0xff]  ;;  %607 = vst.msk [vmem:[#allocation4 + $0x8] sm:$0xff] %vm269_vm0, %v479_v1  ;;  %v482_v4 = vld [vmem:[#allocation2 + $0x20] sm:$0xff] }
  0x7b   : > { %608 = vst.msk [vmem:[#allocation4 + $0x10] sm:$0xff] %vm269_vm0, %v480_v2  ;;  %609 = vst.msk [vmem:[#allocation4 + $0x18] sm:$0xff] %vm269_vm0, %v481_v3  ;;  %v483_v5 = vld [vmem:[#allocation2 + $0x28] sm:$0xff]  ;;  %v484_v6 = vld [vmem:[#allocation2 + $0x30] sm:$0xff] }
  0x7c   : > { %610 = vst.msk [vmem:[#allocation4 + $0x20] sm:$0xff] %vm269_vm0, %v482_v4  ;;  %611 = vst.msk [vmem:[#allocation4 + $0x28] sm:$0xff] %vm269_vm0, %v483_v5  ;;  %v485_v7 = vld [vmem:[#allocation2 + $0x38] sm:$0xff]  ;;  %v486_v8 = vld [vmem:[#allocation2 + $0x40] sm:$0xff] }
  0x7d   : > { %612 = vst.msk [vmem:[#allocation4 + $0x30] sm:$0xff] %vm269_vm0, %v484_v6  ;;  %v487_v9 = vld [vmem:[#allocation2 + $0x48] sm:$0xff]  ;;  %613 = vst.msk [vmem:[#allocation4 + $0x38] sm:$0xff] %vm269_vm0, %v485_v7  ;;  %v488_v10 = vld [vmem:[#allocation2 + $0x50] sm:$0xff] }
  0x7e   : > { %614 = vst.msk [vmem:[#allocation4 + $0x40] sm:$0xff] %vm269_vm0, %v486_v8  ;;  %615 = vst.msk [vmem:[#allocation4 + $0x48] sm:$0xff] %vm269_vm0, %v487_v9  ;;  %v489_v11 = vld [vmem:[#allocation2 + $0x58] sm:$0xff]  ;;  %v490_v12 = vld [vmem:[#allocation2 + $0x60] sm:$0xff] }
  0x7f   : > { %616 = vst.msk [vmem:[#allocation4 + $0x50] sm:$0xff] %vm269_vm0, %v488_v10  ;;  %617 = vst.msk [vmem:[#allocation4 + $0x58] sm:$0xff] %vm269_vm0, %v489_v11  ;;  %v491_v13 = vld [vmem:[#allocation2 + $0x68] sm:$0xff]  ;;  %v492_v14 = vld [vmem:[#allocation2 + $0x70] sm:$0xff] }
  0x80   : > { %618 = vst.msk [vmem:[#allocation4 + $0x60] sm:$0xff] %vm269_vm0, %v490_v12  ;;  %v493_v15 = vld [vmem:[#allocation2 + $0x78] sm:$0xff]  ;;  %619 = vst.msk [vmem:[#allocation4 + $0x68] sm:$0xff] %vm269_vm0, %v491_v13  ;;  %v494_v16 = vld [vmem:[#allocation2 + $0x80] sm:$0xff] }
  0x81   : > { %620 = vst.msk [vmem:[#allocation4 + $0x70] sm:$0xff] %vm269_vm0, %v492_v14  ;;  %621 = vst.msk [vmem:[#allocation4 + $0x78] sm:$0xff] %vm269_vm0, %v493_v15  ;;  %v495_v17 = vld [vmem:[#allocation2 + $0x88] sm:$0xff]  ;;  %v496_v18 = vld [vmem:[#allocation2 + $0x90] sm:$0xff] }
  0x82   : > { %622 = vst.msk [vmem:[#allocation4 + $0x80] sm:$0xff] %vm269_vm0, %v494_v16  ;;  %623 = vst.msk [vmem:[#allocation4 + $0x88] sm:$0xff] %vm269_vm0, %v495_v17  ;;  %v497_v19 = vld [vmem:[#allocation2 + $0x98] sm:$0xff]  ;;  %v498_v20 = vld [vmem:[#allocation2 + $0xa0] sm:$0xff] }
  0x83   : > { %624 = vst.msk [vmem:[#allocation4 + $0x90] sm:$0xff] %vm269_vm0, %v496_v18  ;;  %v499_v21 = vld [vmem:[#allocation2 + $0xa8] sm:$0xff]  ;;  %625 = vst.msk [vmem:[#allocation4 + $0x98] sm:$0xff] %vm269_vm0, %v497_v19  ;;  %v500_v22 = vld [vmem:[#allocation2 + $0xb0] sm:$0xff] }
  0x84   : > { %626 = vst.msk [vmem:[#allocation4 + $0xa0] sm:$0xff] %vm269_vm0, %v498_v20  ;;  %627 = vst.msk [vmem:[#allocation4 + $0xa8] sm:$0xff] %vm269_vm0, %v499_v21  ;;  %v501_v23 = vld [vmem:[#allocation2 + $0xb8] sm:$0xff]  ;;  %v502_v24 = vld [vmem:[#allocation2 + $0xc0] sm:$0xff] }
  0x85   : > { %628 = vst.msk [vmem:[#allocation4 + $0xb0] sm:$0xff] %vm269_vm0, %v500_v22  ;;  %629 = vst.msk [vmem:[#allocation4 + $0xb8] sm:$0xff] %vm269_vm0, %v501_v23  ;;  %v503_v25 = vld [vmem:[#allocation2 + $0xc8] sm:$0xff]  ;;  %v504_v26 = vld [vmem:[#allocation2 + $0xd0] sm:$0xff] }
  0x86   : > { %630 = vst.msk [vmem:[#allocation4 + $0xc0] sm:$0xff] %vm269_vm0, %v502_v24  ;;  %v505_v27 = vld [vmem:[#allocation2 + $0xd8] sm:$0xff]  ;;  %631 = vst.msk [vmem:[#allocation4 + $0xc8] sm:$0xff] %vm269_vm0, %v503_v25  ;;  %v506_v28 = vld [vmem:[#allocation2 + $0xe0] sm:$0xff] }
  0x87   : > { %632 = vst.msk [vmem:[#allocation4 + $0xd0] sm:$0xff] %vm269_vm0, %v504_v26  ;;  %633 = vst.msk [vmem:[#allocation4 + $0xd8] sm:$0xff] %vm269_vm0, %v505_v27  ;;  %v507_v29 = vld [vmem:[#allocation2 + $0xe8] sm:$0xff]  ;;  %v508_v30 = vld [vmem:[#allocation2 + $0xf0] sm:$0xff] }
  0x88   : > { %634 = vst.msk [vmem:[#allocation4 + $0xe0] sm:$0xff] %vm269_vm0, %v506_v28  ;;  %635 = vst.msk [vmem:[#allocation4 + $0xe8] sm:$0xff] %vm269_vm0, %v507_v29  ;;  %v509_v31 = vld [vmem:[#allocation2 + $0xf8] sm:$0xff]  ;;  %v510_v32 = vld [vmem:[#allocation2 + $0x100] sm:$0xff] }
  0x89   : > { %636 = vst.msk [vmem:[#allocation4 + $0xf0] sm:$0xff] %vm269_vm0, %v508_v30  ;;  %v511_v33 = vld [vmem:[#allocation2 + $0x108] sm:$0xff]  ;;  %637 = vst.msk [vmem:[#allocation4 + $0xf8] sm:$0xff] %vm269_vm0, %v509_v31  ;;  %v512_v34 = vld [vmem:[#allocation2 + $0x110] sm:$0xff] }
  0x8a   : > { %638 = vst.msk [vmem:[#allocation4 + $0x100] sm:$0xff] %vm269_vm0, %v510_v32  ;;  %639 = vst.msk [vmem:[#allocation4 + $0x108] sm:$0xff] %vm269_vm0, %v511_v33  ;;  %v513_v35 = vld [vmem:[#allocation2 + $0x118] sm:$0xff]  ;;  %v514_v36 = vld [vmem:[#allocation2 + $0x120] sm:$0xff] }
  0x8b   : > { %640 = vst.msk [vmem:[#allocation4 + $0x110] sm:$0xff] %vm269_vm0, %v512_v34  ;;  %641 = vst.msk [vmem:[#allocation4 + $0x118] sm:$0xff] %vm269_vm0, %v513_v35  ;;  %v515_v37 = vld [vmem:[#allocation2 + $0x128] sm:$0xff]  ;;  %v516_v38 = vld [vmem:[#allocation2 + $0x130] sm:$0xff] }
  0x8c   : > { %642 = vst.msk [vmem:[#allocation4 + $0x120] sm:$0xff] %vm269_vm0, %v514_v36  ;;  %v517_v39 = vld [vmem:[#allocation2 + $0x138] sm:$0xff]  ;;  %643 = vst.msk [vmem:[#allocation4 + $0x128] sm:$0xff] %vm269_vm0, %v515_v37  ;;  %v518_v40 = vld [vmem:[#allocation2 + $0x140] sm:$0xff] }
  0x8d   : > { %644 = vst.msk [vmem:[#allocation4 + $0x130] sm:$0xff] %vm269_vm0, %v516_v38  ;;  %645 = vst.msk [vmem:[#allocation4 + $0x138] sm:$0xff] %vm269_vm0, %v517_v39  ;;  %v519_v41 = vld [vmem:[#allocation2 + $0x148] sm:$0xff]  ;;  %v520_v42 = vld [vmem:[#allocation2 + $0x150] sm:$0xff] }
  0x8e   : > { %646 = vst.msk [vmem:[#allocation4 + $0x140] sm:$0xff] %vm269_vm0, %v518_v40  ;;  %647 = vst.msk [vmem:[#allocation4 + $0x148] sm:$0xff] %vm269_vm0, %v519_v41  ;;  %v521_v43 = vld [vmem:[#allocation2 + $0x158] sm:$0xff]  ;;  %v522_v44 = vld [vmem:[#allocation2 + $0x160] sm:$0xff] }
  0x8f   : > { %648 = vst.msk [vmem:[#allocation4 + $0x150] sm:$0xff] %vm269_vm0, %v520_v42  ;;  %v523_v45 = vld [vmem:[#allocation2 + $0x168] sm:$0xff]  ;;  %649 = vst.msk [vmem:[#allocation4 + $0x158] sm:$0xff] %vm269_vm0, %v521_v43  ;;  %v524_v46 = vld [vmem:[#allocation2 + $0x170] sm:$0xff] }
  0x90   : > { %650 = vst.msk [vmem:[#allocation4 + $0x160] sm:$0xff] %vm269_vm0, %v522_v44  ;;  %651 = vst.msk [vmem:[#allocation4 + $0x168] sm:$0xff] %vm269_vm0, %v523_v45  ;;  %v525_v47 = vld [vmem:[#allocation2 + $0x178] sm:$0xff]  ;;  %v526_v48 = vld [vmem:[#allocation2 + $0x180] sm:$0xff] }
  0x91   : > { %652 = vst.msk [vmem:[#allocation4 + $0x170] sm:$0xff] %vm269_vm0, %v524_v46  ;;  %653 = vst.msk [vmem:[#allocation4 + $0x178] sm:$0xff] %vm269_vm0, %v525_v47  ;;  %v527_v49 = vld [vmem:[#allocation2 + $0x188] sm:$0xff]  ;;  %v528_v50 = vld [vmem:[#allocation2 + $0x190] sm:$0xff] }
  0x92   : > { %654 = vst.msk [vmem:[#allocation4 + $0x180] sm:$0xff] %vm269_vm0, %v526_v48  ;;  %v529_v51 = vld [vmem:[#allocation2 + $0x198] sm:$0xff]  ;;  %655 = vst.msk [vmem:[#allocation4 + $0x188] sm:$0xff] %vm269_vm0, %v527_v49  ;;  %v530_v52 = vld [vmem:[#allocation2 + $0x1a0] sm:$0xff] }
  0x93   : > { %656 = vst.msk [vmem:[#allocation4 + $0x190] sm:$0xff] %vm269_vm0, %v528_v50  ;;  %657 = vst.msk [vmem:[#allocation4 + $0x198] sm:$0xff] %vm269_vm0, %v529_v51  ;;  %v531_v53 = vld [vmem:[#allocation2 + $0x1a8] sm:$0xff]  ;;  %v532_v54 = vld [vmem:[#allocation2 + $0x1b0] sm:$0xff] }
  0x94   : > { %658 = vst.msk [vmem:[#allocation4 + $0x1a0] sm:$0xff] %vm269_vm0, %v530_v52  ;;  %659 = vst.msk [vmem:[#allocation4 + $0x1a8] sm:$0xff] %vm269_vm0, %v531_v53  ;;  %v533_v55 = vld [vmem:[#allocation2 + $0x1b8] sm:$0xff]  ;;  %v534_v56 = vld [vmem:[#allocation2 + $0x1c0] sm:$0xff] }
  0x95   : > { %660 = vst.msk [vmem:[#allocation4 + $0x1b0] sm:$0xff] %vm269_vm0, %v532_v54  ;;  %v535_v57 = vld [vmem:[#allocation2 + $0x1c8] sm:$0xff]  ;;  %661 = vst.msk [vmem:[#allocation4 + $0x1b8] sm:$0xff] %vm269_vm0, %v533_v55  ;;  %v536_v58 = vld [vmem:[#allocation2 + $0x1d0] sm:$0xff] }
  0x96   : > { %662 = vst.msk [vmem:[#allocation4 + $0x1c0] sm:$0xff] %vm269_vm0, %v534_v56  ;;  %663 = vst.msk [vmem:[#allocation4 + $0x1c8] sm:$0xff] %vm269_vm0, %v535_v57  ;;  %v537_v59 = vld [vmem:[#allocation2 + $0x1d8] sm:$0xff]  ;;  %v538_v60 = vld [vmem:[#allocation2 + $0x1e0] sm:$0xff] }
  0x97   : > { %664 = vst.msk [vmem:[#allocation4 + $0x1d0] sm:$0xff] %vm269_vm0, %v536_v58  ;;  %665 = vst.msk [vmem:[#allocation4 + $0x1d8] sm:$0xff] %vm269_vm0, %v537_v59  ;;  %v539_v61 = vld [vmem:[#allocation2 + $0x1e8] sm:$0xff]  ;;  %v540_v62 = vld [vmem:[#allocation2 + $0x1f0] sm:$0xff] }
  0x98   : > { %666 = vst.msk [vmem:[#allocation4 + $0x1e0] sm:$0xff] %vm269_vm0, %v538_v60  ;;  %v541_v63 = vld [vmem:[#allocation2 + $0x1f8] sm:$0xff]  ;;  %667 = vst.msk [vmem:[#allocation4 + $0x1e8] sm:$0xff] %vm269_vm0, %v539_v61  ;;  %v542_v0 = vld [vmem:[#allocation2 + $0x200] sm:$0xff] }
  0x99   : > { %668 = vst.msk [vmem:[#allocation4 + $0x1f0] sm:$0xff] %vm269_vm0, %v540_v62  ;;  %669 = vst.msk [vmem:[#allocation4 + $0x1f8] sm:$0xff] %vm269_vm0, %v541_v63  ;;  %v543_v1 = vld [vmem:[#allocation2 + $0x208] sm:$0xff]  ;;  %v544_v2 = vld [vmem:[#allocation2 + $0x210] sm:$0xff] }
  0x9a   : > { %670 = vst.msk [vmem:[#allocation4 + $0x200] sm:$0xff] %vm269_vm0, %v542_v0  ;;  %671 = vst.msk [vmem:[#allocation4 + $0x208] sm:$0xff] %vm269_vm0, %v543_v1  ;;  %v545_v3 = vld [vmem:[#allocation2 + $0x218] sm:$0xff]  ;;  %v546_v4 = vld [vmem:[#allocation2 + $0x220] sm:$0xff] }
  0x9b   : > { %672 = vst.msk [vmem:[#allocation4 + $0x210] sm:$0xff] %vm269_vm0, %v544_v2  ;;  %v547_v5 = vld [vmem:[#allocation2 + $0x228] sm:$0xff]  ;;  %673 = vst.msk [vmem:[#allocation4 + $0x218] sm:$0xff] %vm269_vm0, %v545_v3  ;;  %v548_v6 = vld [vmem:[#allocation2 + $0x230] sm:$0xff] }
  0x9c   : > { %674 = vst.msk [vmem:[#allocation4 + $0x220] sm:$0xff] %vm269_vm0, %v546_v4  ;;  %675 = vst.msk [vmem:[#allocation4 + $0x228] sm:$0xff] %vm269_vm0, %v547_v5  ;;  %v549_v7 = vld [vmem:[#allocation2 + $0x238] sm:$0xff]  ;;  %v550_v8 = vld [vmem:[#allocation2 + $0x240] sm:$0xff] }
  0x9d   : > { %676 = vst.msk [vmem:[#allocation4 + $0x230] sm:$0xff] %vm269_vm0, %v548_v6  ;;  %677 = vst.msk [vmem:[#allocation4 + $0x238] sm:$0xff] %vm269_vm0, %v549_v7  ;;  %v551_v9 = vld [vmem:[#allocation2 + $0x248] sm:$0xff]  ;;  %v552_v10 = vld [vmem:[#allocation2 + $0x250] sm:$0xff] }
  0x9e   : > { %678 = vst.msk [vmem:[#allocation4 + $0x240] sm:$0xff] %vm269_vm0, %v550_v8  ;;  %v553_v11 = vld [vmem:[#allocation2 + $0x258] sm:$0xff]  ;;  %679 = vst.msk [vmem:[#allocation4 + $0x248] sm:$0xff] %vm269_vm0, %v551_v9  ;;  %v554_v12 = vld [vmem:[#allocation2 + $0x260] sm:$0xff] }
  0x9f   : > { %680 = vst.msk [vmem:[#allocation4 + $0x250] sm:$0xff] %vm269_vm0, %v552_v10  ;;  %681 = vst.msk [vmem:[#allocation4 + $0x258] sm:$0xff] %vm269_vm0, %v553_v11  ;;  %v555_v13 = vld [vmem:[#allocation2 + $0x268] sm:$0xff]  ;;  %v556_v14 = vld [vmem:[#allocation2 + $0x270] sm:$0xff] }
  0xa0   : > { %682 = vst.msk [vmem:[#allocation4 + $0x260] sm:$0xff] %vm269_vm0, %v554_v12  ;;  %683 = vst.msk [vmem:[#allocation4 + $0x268] sm:$0xff] %vm269_vm0, %v555_v13  ;;  %v557_v15 = vld [vmem:[#allocation2 + $0x278] sm:$0xff]  ;;  %v558_v16 = vld [vmem:[#allocation2 + $0x280] sm:$0xff] }
  0xa1   : > { %684 = vst.msk [vmem:[#allocation4 + $0x270] sm:$0xff] %vm269_vm0, %v556_v14  ;;  %v559_v17 = vld [vmem:[#allocation2 + $0x288] sm:$0xff]  ;;  %685 = vst.msk [vmem:[#allocation4 + $0x278] sm:$0xff] %vm269_vm0, %v557_v15  ;;  %v560_v18 = vld [vmem:[#allocation2 + $0x290] sm:$0xff] }
  0xa2   : > { %686 = vst.msk [vmem:[#allocation4 + $0x280] sm:$0xff] %vm269_vm0, %v558_v16  ;;  %687 = vst.msk [vmem:[#allocation4 + $0x288] sm:$0xff] %vm269_vm0, %v559_v17  ;;  %v561_v19 = vld [vmem:[#allocation2 + $0x298] sm:$0xff]  ;;  %v562_v20 = vld [vmem:[#allocation2 + $0x2a0] sm:$0xff] }
  0xa3   : > { %688 = vst.msk [vmem:[#allocation4 + $0x290] sm:$0xff] %vm269_vm0, %v560_v18  ;;  %689 = vst.msk [vmem:[#allocation4 + $0x298] sm:$0xff] %vm269_vm0, %v561_v19  ;;  %v563_v21 = vld [vmem:[#allocation2 + $0x2a8] sm:$0xff]  ;;  %v564_v22 = vld [vmem:[#allocation2 + $0x2b0] sm:$0xff] }
  0xa4   : > { %690 = vst.msk [vmem:[#allocation4 + $0x2a0] sm:$0xff] %vm269_vm0, %v562_v20  ;;  %v565_v23 = vld [vmem:[#allocation2 + $0x2b8] sm:$0xff]  ;;  %691 = vst.msk [vmem:[#allocation4 + $0x2a8] sm:$0xff] %vm269_vm0, %v563_v21  ;;  %v566_v24 = vld [vmem:[#allocation2 + $0x2c0] sm:$0xff] }
  0xa5   : > { %692 = vst.msk [vmem:[#allocation4 + $0x2b0] sm:$0xff] %vm269_vm0, %v564_v22  ;;  %693 = vst.msk [vmem:[#allocation4 + $0x2b8] sm:$0xff] %vm269_vm0, %v565_v23  ;;  %v567_v25 = vld [vmem:[#allocation2 + $0x2c8] sm:$0xff]  ;;  %v568_v26 = vld [vmem:[#allocation2 + $0x2d0] sm:$0xff] }
  0xa6   : > { %694 = vst.msk [vmem:[#allocation4 + $0x2c0] sm:$0xff] %vm269_vm0, %v566_v24  ;;  %695 = vst.msk [vmem:[#allocation4 + $0x2c8] sm:$0xff] %vm269_vm0, %v567_v25  ;;  %v569_v27 = vld [vmem:[#allocation2 + $0x2d8] sm:$0xff]  ;;  %v570_v28 = vld [vmem:[#allocation2 + $0x2e0] sm:$0xff] }
  0xa7   : > { %696 = vst.msk [vmem:[#allocation4 + $0x2d0] sm:$0xff] %vm269_vm0, %v568_v26  ;;  %v571_v29 = vld [vmem:[#allocation2 + $0x2e8] sm:$0xff]  ;;  %697 = vst.msk [vmem:[#allocation4 + $0x2d8] sm:$0xff] %vm269_vm0, %v569_v27  ;;  %v572_v30 = vld [vmem:[#allocation2 + $0x2f0] sm:$0xff] }
  0xa8   : > { %698 = vst.msk [vmem:[#allocation4 + $0x2e0] sm:$0xff] %vm269_vm0, %v570_v28  ;;  %699 = vst.msk [vmem:[#allocation4 + $0x2e8] sm:$0xff] %vm269_vm0, %v571_v29  ;;  %v573_v31 = vld [vmem:[#allocation2 + $0x2f8] sm:$0xff]  ;;  %v574_v32 = vld [vmem:[#allocation2 + $0x300] sm:$0xff] }
  0xa9   : > { %700 = vst.msk [vmem:[#allocation4 + $0x2f0] sm:$0xff] %vm269_vm0, %v572_v30  ;;  %701 = vst.msk [vmem:[#allocation4 + $0x2f8] sm:$0xff] %vm269_vm0, %v573_v31  ;;  %v575_v33 = vld [vmem:[#allocation2 + $0x308] sm:$0xff]  ;;  %v576_v34 = vld [vmem:[#allocation2 + $0x310] sm:$0xff] }
  0xaa   : > { %702 = vst.msk [vmem:[#allocation4 + $0x300] sm:$0xff] %vm269_vm0, %v574_v32  ;;  %v577_v35 = vld [vmem:[#allocation2 + $0x318] sm:$0xff]  ;;  %703 = vst.msk [vmem:[#allocation4 + $0x308] sm:$0xff] %vm269_vm0, %v575_v33  ;;  %v578_v36 = vld [vmem:[#allocation2 + $0x320] sm:$0xff] }
  0xab   : > { %704 = vst.msk [vmem:[#allocation4 + $0x310] sm:$0xff] %vm269_vm0, %v576_v34  ;;  %705 = vst.msk [vmem:[#allocation4 + $0x318] sm:$0xff] %vm269_vm0, %v577_v35  ;;  %v579_v37 = vld [vmem:[#allocation2 + $0x328] sm:$0xff]  ;;  %v580_v38 = vld [vmem:[#allocation2 + $0x330] sm:$0xff] }
  0xac   : > { %706 = vst.msk [vmem:[#allocation4 + $0x320] sm:$0xff] %vm269_vm0, %v578_v36  ;;  %707 = vst.msk [vmem:[#allocation4 + $0x328] sm:$0xff] %vm269_vm0, %v579_v37  ;;  %v581_v39 = vld [vmem:[#allocation2 + $0x338] sm:$0xff]  ;;  %v582_v40 = vld [vmem:[#allocation2 + $0x340] sm:$0xff] }
  0xad   : > { %708 = vst.msk [vmem:[#allocation4 + $0x330] sm:$0xff] %vm269_vm0, %v580_v38  ;;  %v583_v41 = vld [vmem:[#allocation2 + $0x348] sm:$0xff]  ;;  %709 = vst.msk [vmem:[#allocation4 + $0x338] sm:$0xff] %vm269_vm0, %v581_v39  ;;  %v584_v42 = vld [vmem:[#allocation2 + $0x350] sm:$0xff] }
  0xae   : > { %710 = vst.msk [vmem:[#allocation4 + $0x340] sm:$0xff] %vm269_vm0, %v582_v40  ;;  %711 = vst.msk [vmem:[#allocation4 + $0x348] sm:$0xff] %vm269_vm0, %v583_v41  ;;  %v585_v43 = vld [vmem:[#allocation2 + $0x358] sm:$0xff]  ;;  %v586_v44 = vld [vmem:[#allocation2 + $0x360] sm:$0xff] }
  0xaf   : > { %712 = vst.msk [vmem:[#allocation4 + $0x350] sm:$0xff] %vm269_vm0, %v584_v42  ;;  %713 = vst.msk [vmem:[#allocation4 + $0x358] sm:$0xff] %vm269_vm0, %v585_v43  ;;  %v587_v45 = vld [vmem:[#allocation2 + $0x368] sm:$0xff]  ;;  %v588_v46 = vld [vmem:[#allocation2 + $0x370] sm:$0xff] }
  0xb0   : > { %714 = vst.msk [vmem:[#allocation4 + $0x360] sm:$0xff] %vm269_vm0, %v586_v44  ;;  %v589_v47 = vld [vmem:[#allocation2 + $0x378] sm:$0xff]  ;;  %715 = vst.msk [vmem:[#allocation4 + $0x368] sm:$0xff] %vm269_vm0, %v587_v45  ;;  %v590_v48 = vld [vmem:[#allocation2 + $0x380] sm:$0xff] }
  0xb1   : > { %716 = vst.msk [vmem:[#allocation4 + $0x370] sm:$0xff] %vm269_vm0, %v588_v46  ;;  %717 = vst.msk [vmem:[#allocation4 + $0x378] sm:$0xff] %vm269_vm0, %v589_v47  ;;  %v591_v49 = vld [vmem:[#allocation2 + $0x388] sm:$0xff]  ;;  %v592_v50 = vld [vmem:[#allocation2 + $0x390] sm:$0xff] }
  0xb2   : > { %718 = vst.msk [vmem:[#allocation4 + $0x380] sm:$0xff] %vm269_vm0, %v590_v48  ;;  %719 = vst.msk [vmem:[#allocation4 + $0x388] sm:$0xff] %vm269_vm0, %v591_v49  ;;  %v593_v51 = vld [vmem:[#allocation2 + $0x398] sm:$0xff]  ;;  %v594_v52 = vld [vmem:[#allocation2 + $0x3a0] sm:$0xff] }
  0xb3   : > { %720 = vst.msk [vmem:[#allocation4 + $0x390] sm:$0xff] %vm269_vm0, %v592_v50  ;;  %v595_v53 = vld [vmem:[#allocation2 + $0x3a8] sm:$0xff]  ;;  %721 = vst.msk [vmem:[#allocation4 + $0x398] sm:$0xff] %vm269_vm0, %v593_v51  ;;  %v596_v54 = vld [vmem:[#allocation2 + $0x3b0] sm:$0xff] }
  0xb4   : > { %722 = vst.msk [vmem:[#allocation4 + $0x3a0] sm:$0xff] %vm269_vm0, %v594_v52  ;;  %723 = vst.msk [vmem:[#allocation4 + $0x3a8] sm:$0xff] %vm269_vm0, %v595_v53  ;;  %v597_v55 = vld [vmem:[#allocation2 + $0x3b8] sm:$0xff]  ;;  %v598_v56 = vld [vmem:[#allocation2 + $0x3c0] sm:$0xff] }
  0xb5   : > { %724 = vst.msk [vmem:[#allocation4 + $0x3b0] sm:$0xff] %vm269_vm0, %v596_v54  ;;  %725 = vst.msk [vmem:[#allocation4 + $0x3b8] sm:$0xff] %vm269_vm0, %v597_v55  ;;  %v599_v57 = vld [vmem:[#allocation2 + $0x3c8] sm:$0xff]  ;;  %v600_v58 = vld [vmem:[#allocation2 + $0x3d0] sm:$0xff] }
  0xb6   : > { %726 = vst.msk [vmem:[#allocation4 + $0x3c0] sm:$0xff] %vm269_vm0, %v598_v56  ;;  %v601_v59 = vld [vmem:[#allocation2 + $0x3d8] sm:$0xff]  ;;  %727 = vst.msk [vmem:[#allocation4 + $0x3c8] sm:$0xff] %vm269_vm0, %v599_v57  ;;  %v602_v60 = vld [vmem:[#allocation2 + $0x3e0] sm:$0xff] }
  0xb7   : > { %728 = vst.msk [vmem:[#allocation4 + $0x3d0] sm:$0xff] %vm269_vm0, %v600_v58  ;;  %729 = vst.msk [vmem:[#allocation4 + $0x3d8] sm:$0xff] %vm269_vm0, %v601_v59  ;;  %v603_v61 = vld [vmem:[#allocation2 + $0x3e8] sm:$0xff]  ;;  %v604_v62 = vld [vmem:[#allocation2 + $0x3f0] sm:$0xff] }
  0xb8   : > { %730 = vst.msk [vmem:[#allocation4 + $0x3e0] sm:$0xff] %vm269_vm0, %v602_v60  ;;  %731 = vst.msk [vmem:[#allocation4 + $0x3e8] sm:$0xff] %vm269_vm0, %v603_v61  ;;  %v605_v63 = vld [vmem:[#allocation2 + $0x3f8] sm:$0xff] }
  0xb9   : > { %732 = vst.msk [vmem:[#allocation4 + $0x3f0] sm:$0xff] %vm269_vm0, %v604_v62  ;;  %733 = vst.msk [vmem:[#allocation4 + $0x3f8] sm:$0xff] %vm269_vm0, %v605_v63 }
  0xba PF: > { %v1247_v0 = vld [vmem:[#allocation2] sm:$0xff]  ;;  %v1248_v1 = vld [vmem:[#allocation2 + $0x8] sm:$0xff]  ;;  %v4775_v3 = vmov 0.0|0.0   ;;  %v1313_v9 = vld [vmem:[#allocation2 + $0x210] sm:$0xff]  ;;  %s4082_s12 = sshll.u32 %s4754_s18, 9  ;;  %vm2916_vm1 = vcmask 261120  }
  0xbb   : > { %v1311_v2 = vld [vmem:[#allocation2 + $0x200] sm:$0xff]  ;;  %4088 = vmatprep.subr.bf16.mxu1 %v4775_v3  ;;  %4184 = vmatprep.subr.bf16.mxu0 %v4775_v3  ;;  %v4089_v4 = vpack.c.bf16 %v1248_v1, %v1247_v0  ;;  %v1312_v5 = vld [vmem:[#allocation2 + $0x208] sm:$0xff]  ;;  %v1249_v6 = vld [vmem:[#allocation2 + $0x10] sm:$0xff]  ;;  %s6102_s13 = scalar_lea.vmem [#allocation3], %s4082_s12  ;;  %p2981_p9 = scmp.eq.s32.totalorder %s4754_s18, 1 }
  0xbc   : > { %v1250_v7 = vld [vmem:[#allocation2 + $0x18] sm:$0xff]  ;;  %v4185_v8 = vpack.c.bf16 %v1312_v5, %v1311_v2  ;;  %v1251_v13 = vld [vmem:[#allocation2 + $0x20] sm:$0xff]  ;;  %v1252_v14 = vld [vmem:[#allocation2 + $0x28] sm:$0xff]  ;;  %p4083_p7 = scmp.ne.s32.totalorder %s4754_s18, 1 }
  0xbd   : > { %v1314_v10 = vld [vmem:[#allocation2 + $0x218] sm:$0xff]  ;;  %4090 = vmatpush1.bf16.msra.mxu1 %v4089_v4  ;;  %v4092_v11 = vpack.c.bf16 %v1250_v7, %v1249_v6  ;;  %v1315_v15 = vld [vmem:[#allocation2 + $0x220] sm:$0xff]  ;;  %v1316_v16 = vld [vmem:[#allocation2 + $0x228] sm:$0xff]  ;;  %v4095_v17 = vpack.c.bf16 %v1252_v14, %v1251_v13 }
  0xbe   : > { %4186 = vmatpush1.bf16.msra.mxu0 %v4185_v8  ;;  %4091 = vmatprep.subr.bf16.mxu1 %v4775_v3  ;;  %v4188_v12 = vpack.c.bf16 %v1314_v10, %v1313_v9  ;;  %v4191_v18 = vpack.c.bf16 %v1316_v16, %v1315_v15  ;;  %v1253_v19 = vld [vmem:[#allocation2 + $0x30] sm:$0xff]  ;;  %v1254_v20 = vld [vmem:[#allocation2 + $0x38] sm:$0xff]  ;;  %v1255_v25 = vld [vmem:[#allocation2 + $0x40] sm:$0xff] }
  0xbf   : > { %4187 = vmatprep.subr.bf16.mxu0 %v4775_v3  ;;  %v1317_v21 = vld [vmem:[#allocation2 + $0x230] sm:$0xff]  ;;  %v1318_v22 = vld [vmem:[#allocation2 + $0x238] sm:$0xff]  ;;  %v4098_v23 = vpack.c.bf16 %v1254_v20, %v1253_v19  ;;  %v1256_v26 = vld [vmem:[#allocation2 + $0x48] sm:$0xff] }
  0xc0   : > { %v4194_v24 = vpack.c.bf16 %v1318_v22, %v1317_v21  ;;  %v1319_v27 = vld [vmem:[#allocation2 + $0x240] sm:$0xff]  ;;  %v1320_v28 = vld [vmem:[#allocation2 + $0x248] sm:$0xff]  ;;  %v4101_v29 = vpack.c.bf16 %v1256_v26, %v1255_v25  ;;  %v1257_v31 = vld [vmem:[#allocation2 + $0x50] sm:$0xff] }
  0xc1   : > { %4093 = vmatpush1.bf16.msra.mxu1 %v4092_v11  ;;  %v4197_v30 = vpack.c.bf16 %v1320_v28, %v1319_v27  ;;  %v1258_v32 = vld [vmem:[#allocation2 + $0x58] sm:$0xff]  ;;  %v1321_v33 = vld [vmem:[#allocation2 + $0x250] sm:$0xff]  ;;  %v1259_v37 = vld [vmem:[#allocation2 + $0x60] sm:$0xff] }
  0xc2   : > { %4189 = vmatpush1.bf16.msra.mxu0 %v4188_v12  ;;  %4094 = vmatprep.subr.bf16.mxu1 %v4775_v3  ;;  %v1322_v34 = vld [vmem:[#allocation2 + $0x258] sm:$0xff]  ;;  %v4104_v35 = vpack.c.bf16 %v1258_v32, %v1257_v31  ;;  %v1260_v38 = vld [vmem:[#allocation2 + $0x68] sm:$0xff]  ;;  %v1323_v39 = vld [vmem:[#allocation2 + $0x260] sm:$0xff] }
  0xc3   : > { %4190 = vmatprep.subr.bf16.mxu0 %v4775_v3  ;;  %v4200_v36 = vpack.c.bf16 %v1322_v34, %v1321_v33  ;;  %v1324_v40 = vld [vmem:[#allocation2 + $0x268] sm:$0xff]  ;;  %v4107_v43 = vpack.c.bf16 %v1260_v38, %v1259_v37  ;;  %v1261_v45 = vld [vmem:[#allocation2 + $0x70] sm:$0xff]  ;;  %v1262_v46 = vld [vmem:[#allocation2 + $0x78] sm:$0xff] }
  0xc4   : > { %v736_v41 = vld [vmem:[%s4912_s28 + $0x8] sm:$0xff]  ;;  %v4203_v44 = vpack.c.bf16 %v1324_v40, %v1323_v39  ;;  %v1325_v47 = vld [vmem:[#allocation2 + $0x270] sm:$0xff]  ;;  %v1326_v48 = vld [vmem:[#allocation2 + $0x278] sm:$0xff]  ;;  %v4110_v49 = vpack.c.bf16 %v1262_v46, %v1261_v45 }
  0xc5   : > { %4096 = vmatpush1.bf16.msra.mxu1 %v4095_v17  ;;  %v740_v42 = vld [vmem:[%s4912_s28 + $0x28] sm:$0xff]  ;;  %1439 = vmatprep.mubr.f32.mxu1 %v736_v41  ;;  %v4206_v50 = vpack.c.bf16 %v1326_v48, %v1325_v47  ;;  %v1263_v51 = vld [vmem:[#allocation2 + $0x80] sm:$0xff]  ;;  %v1265_v57 = vld [vmem:[#allocation2 + $0x90] sm:$0xff] }
  0xc6   : > { %4192 = vmatpush1.bf16.msra.mxu0 %v4191_v18  ;;  %4097 = vmatprep.subr.bf16.mxu1 %v4775_v3  ;;  %v1264_v52 = vld [vmem:[#allocation2 + $0x88] sm:$0xff]  ;;  %v1327_v53 = vld [vmem:[#allocation2 + $0x280] sm:$0xff]  ;;  %v1266_v58 = vld [vmem:[#allocation2 + $0x98] sm:$0xff] }
  0xc7   : > { %4193 = vmatprep.subr.bf16.mxu0 %v4775_v3  ;;  %2209 = vmatprep.mubr.f32.mxu0 %v740_v42  ;;  %v1328_v54 = vld [vmem:[#allocation2 + $0x288] sm:$0xff]  ;;  %v4113_v55 = vpack.c.bf16 %v1264_v52, %v1263_v51  ;;  %v1329_v59 = vld [vmem:[#allocation2 + $0x290] sm:$0xff]  ;;  %v1330_v60 = vld [vmem:[#allocation2 + $0x298] sm:$0xff]  ;;  %v4116_v61 = vpack.c.bf16 %v1266_v58, %v1265_v57 }
  0xc8   : > { %v4209_v56 = vpack.c.bf16 %v1328_v54, %v1327_v53  ;;  %v4212_v62 = vpack.c.bf16 %v1330_v60, %v1329_v59  ;;  %v1267_v63 = vld [vmem:[#allocation2 + $0xa0] sm:$0xff]  ;;  %v1268_v0 = vld [vmem:[#allocation2 + $0xa8] sm:$0xff]  ;;  %v1269_v6 = vld [vmem:[#allocation2 + $0xb0] sm:$0xff] }
  0xc9   : > { %4099 = vmatpush1.bf16.msra.mxu1 %v4098_v23  ;;  %v1331_v1 = vld [vmem:[#allocation2 + $0x2a0] sm:$0xff]  ;;  %v1332_v2 = vld [vmem:[#allocation2 + $0x2a8] sm:$0xff]  ;;  %v4119_v4 = vpack.c.bf16 %v1268_v0, %v1267_v63  ;;  %v1270_v7 = vld [vmem:[#allocation2 + $0xb8] sm:$0xff] }
  0xca   : > { %4195 = vmatpush1.bf16.msra.mxu0 %v4194_v24  ;;  %4100 = vmatprep.subr.bf16.mxu1 %v4775_v3  ;;  %v4215_v5 = vpack.c.bf16 %v1332_v2, %v1331_v1  ;;  %v1333_v8 = vld [vmem:[#allocation2 + $0x2b0] sm:$0xff]  ;;  %v1334_v9 = vld [vmem:[#allocation2 + $0x2b8] sm:$0xff]  ;;  %v4122_v10 = vpack.c.bf16 %v1270_v7, %v1269_v6  ;;  %v1271_v12 = vld [vmem:[#allocation2 + $0xc0] sm:$0xff] }
  0xcb   : > { %4196 = vmatprep.subr.bf16.mxu0 %v4775_v3  ;;  %v4218_v11 = vpack.c.bf16 %v1334_v9, %v1333_v8  ;;  %v1272_v13 = vld [vmem:[#allocation2 + $0xc8] sm:$0xff]  ;;  %v1335_v14 = vld [vmem:[#allocation2 + $0x2c0] sm:$0xff]  ;;  %v1273_v18 = vld [vmem:[#allocation2 + $0xd0] sm:$0xff] }
  0xcc   : > { %v1336_v15 = vld [vmem:[#allocation2 + $0x2c8] sm:$0xff]  ;;  %v4125_v16 = vpack.c.bf16 %v1272_v13, %v1271_v12  ;;  %v1274_v19 = vld [vmem:[#allocation2 + $0xd8] sm:$0xff]  ;;  %v1337_v20 = vld [vmem:[#allocation2 + $0x2d0] sm:$0xff] }
  0xcd   : > { %4102 = vmatpush1.bf16.msra.mxu1 %v4101_v29  ;;  %v4221_v17 = vpack.c.bf16 %v1336_v15, %v1335_v14  ;;  %v1338_v21 = vld [vmem:[#allocation2 + $0x2d8] sm:$0xff]  ;;  %v4128_v22 = vpack.c.bf16 %v1274_v19, %v1273_v18  ;;  %v1275_v24 = vld [vmem:[#allocation2 + $0xe0] sm:$0xff]  ;;  %v1276_v25 = vld [vmem:[#allocation2 + $0xe8] sm:$0xff] }
  0xce   : > { %4198 = vmatpush1.bf16.msra.mxu0 %v4197_v30  ;;  %4103 = vmatprep.subr.bf16.mxu1 %v4775_v3  ;;  %v4224_v23 = vpack.c.bf16 %v1338_v21, %v1337_v20  ;;  %v1339_v26 = vld [vmem:[#allocation2 + $0x2e0] sm:$0xff]  ;;  %v1340_v27 = vld [vmem:[#allocation2 + $0x2e8] sm:$0xff]  ;;  %v4131_v28 = vpack.c.bf16 %v1276_v25, %v1275_v24  ;;  %v1277_v30 = vld [vmem:[#allocation2 + $0xf0] sm:$0xff] }
  0xcf   : > { %4199 = vmatprep.subr.bf16.mxu0 %v4775_v3  ;;  %v4227_v29 = vpack.c.bf16 %v1340_v27, %v1339_v26  ;;  %v1278_v31 = vld [vmem:[#allocation2 + $0xf8] sm:$0xff]  ;;  %v1341_v32 = vld [vmem:[#allocation2 + $0x2f0] sm:$0xff]  ;;  %v1280_v37 = vld [vmem:[#allocation2 + $0x108] sm:$0xff] }
  0xd0   : > { %v1342_v33 = vld [vmem:[#allocation2 + $0x2f8] sm:$0xff]  ;;  %v4134_v34 = vpack.c.bf16 %v1278_v31, %v1277_v30  ;;  %v1343_v38 = vld [vmem:[#allocation2 + $0x300] sm:$0xff]  ;;  %v1344_v39 = vld [vmem:[#allocation2 + $0x308] sm:$0xff] }
  0xd1   : > { %4105 = vmatpush1.bf16.msra.mxu1 %v4104_v35  ;;  %v4230_v35 = vpack.c.bf16 %v1342_v33, %v1341_v32  ;;  %v735_v40 = vld [vmem:[%s4912_s28] sm:$0xff]  ;;  %v1281_v45 = vld [vmem:[#allocation2 + $0x110] sm:$0xff]  ;;  %v1282_v46 = vld [vmem:[#allocation2 + $0x118] sm:$0xff] }
  0xd2   : > { %4201 = vmatpush1.bf16.msra.mxu0 %v4200_v36  ;;  %4106 = vmatprep.subr.bf16.mxu1 %v4775_v3  ;;  %v1279_v36 = vld [vmem:[#allocation2 + $0x100] sm:$0xff]  ;;  %v748_v47 = vld [vmem:[%s4912_s28 + $0x68] sm:$0xff]  ;;  %v1345_v48 = vld [vmem:[#allocation2 + $0x310] sm:$0xff]  ;;  %v4140_v53 = vpack.c.bf16 %v1282_v46, %v1281_v45 }
  0xd3   : > { %4202 = vmatprep.subr.bf16.mxu0 %v4775_v3  ;;  %v4137_v41 = vpack.c.bf16 %v1280_v37, %v1279_v36  ;;  %v739_v42 = vld [vmem:[%s4912_s28 + $0x20] sm:$0xff]  ;;  %v752_v52 = vld [vmem:[%s4912_s28 + $0x88] sm:$0xff]  ;;  %v1285_v2 = vld [vmem:[#allocation2 + $0x130] sm:$0xff] }
  0xd4   : > { %v747_v51 = vld [vmem:[%s4912_s28 + $0x60] sm:$0xff]  ;;  %v756_v54 = vld [vmem:[%s4912_s28 + $0xa8] sm:$0xff]  ;;  %v1350_v6 = vld [vmem:[#allocation2 + $0x338] sm:$0xff] }
  0xd5   : > { %4108 = vmatpush1.bf16.msra.mxu1 %v4107_v43  ;;  %v4233_v43 = vpack.c.bf16 %v1344_v39, %v1343_v38  ;;  %v1284_v57 = vld [vmem:[#allocation2 + $0x128] sm:$0xff]  ;;  %v1347_v58 = vld [vmem:[#allocation2 + $0x320] sm:$0xff]  ;;  %v1290_v24 = vld [vmem:[#allocation2 + $0x158] sm:$0xff] }
  0xd6   : > { %4204 = vmatpush1.bf16.msra.mxu0 %v4203_v44  ;;  %4109 = vmatprep.subr.bf16.mxu1 %v4775_v3  ;;  %v744_v44 = vld [vmem:[%s4912_s28 + $0x48] sm:$0xff]  ;;  %v751_v60 = vld [vmem:[%s4912_s28 + $0x80] sm:$0xff]  ;;  %v1353_v25 = vld [vmem:[#allocation2 + $0x350] sm:$0xff] }
  0xd7   : > { %4205 = vmatprep.subr.bf16.mxu0 %v4775_v3  ;;  %v1348_v59 = vld [vmem:[#allocation2 + $0x328] sm:$0xff]  ;;  %v759_v7 = vld [vmem:[%s4912_s28 + $0xc0] sm:$0xff]  ;;  %v1354_v26 = vld [vmem:[#allocation2 + $0x358] sm:$0xff] }
  0xd8   : > { %v764_v0 = vld [vmem:[%s4912_s28 + $0xe8] sm:$0xff]  ;;  %v4239_v1 = vpack.c.bf16 %v1348_v59, %v1347_v58  ;;  %v763_v8 = vld [vmem:[%s4912_s28 + $0xe0] sm:$0xff]  ;;  %v4248_v32 = vpack.c.bf16 %v1354_v26, %v1353_v25  ;;  %v1357_v45 = vld [vmem:[#allocation2 + $0x370] sm:$0xff] }
  0xd9   : > { %4111 = vmatpush1.bf16.msra.mxu1 %v4110_v49  ;;  %v1346_v49 = vld [vmem:[#allocation2 + $0x318] sm:$0xff]  ;;  %v768_v9 = vld [vmem:[%s4912_s28 + $0x108] sm:$0xff]  ;;  %v1287_v13 = vld [vmem:[#allocation2 + $0x140] sm:$0xff] }
  0xda   : > { %4207 = vmatpush1.bf16.msra.mxu0 %v4206_v50  ;;  %4112 = vmatprep.subr.bf16.mxu1 %v4775_v3  ;;  %v743_v50 = vld [vmem:[%s4912_s28 + $0x40] sm:$0xff]  ;;  %v1288_v14 = vld [vmem:[#allocation2 + $0x148] sm:$0xff]  ;;  %v1358_v46 = vld [vmem:[#allocation2 + $0x378] sm:$0xff] }
  0xdb   : > { %4208 = vmatprep.subr.bf16.mxu0 %v4775_v3  ;;  %v1351_v15 = vld [vmem:[#allocation2 + $0x340] sm:$0xff]  ;;  %v776_v19 = vld [vmem:[%s4912_s28 + $0x148] sm:$0xff]  ;;  %v4149_v20 = vpack.c.bf16 %v1288_v14, %v1287_v13 }
  0xdc   : > { %v771_v18 = vld [vmem:[%s4912_s28 + $0x120] sm:$0xff]  ;;  %v780_v21 = vld [vmem:[%s4912_s28 + $0x168] sm:$0xff] }
  0xdd   : > { %4114 = vmatpush1.bf16.msra.mxu1 %v4113_v55  ;;  %v4236_v55 = vpack.c.bf16 %v1346_v49, %v1345_v48  ;;  %v775_v27 = vld [vmem:[%s4912_s28 + $0x140] sm:$0xff]  ;;  %v788_v31 = vld [vmem:[%s4912_s28 + $0x1a8] sm:$0xff] }
  0xde   : > { %4210 = vmatpush1.bf16.msra.mxu0 %v4209_v56  ;;  %4115 = vmatprep.subr.bf16.mxu1 %v4775_v3  ;;  %v1283_v56 = vld [vmem:[#allocation2 + $0x120] sm:$0xff]  ;;  %v1356_v36 = vld [vmem:[#allocation2 + $0x368] sm:$0xff] }
  0xdf   : > { %4211 = vmatprep.subr.bf16.mxu0 %v4775_v3  ;;  %v4143_v63 = vpack.c.bf16 %v1284_v57, %v1283_v56  ;;  %v1291_v33 = vld [vmem:[#allocation2 + $0x160] sm:$0xff]  ;;  %v792_v39 = vld [vmem:[%s4912_s28 + $0x1c8] sm:$0xff] }
  0xe0   : > { %v783_v37 = vld [vmem:[%s4912_s28 + $0x180] sm:$0xff]  ;;  %v800_v49 = vld [vmem:[%s4912_s28 + $0x208] sm:$0xff] }
  0xe1   : > { %4117 = vmatpush1.bf16.msra.mxu1 %v4116_v61  ;;  %v755_v61 = vld [vmem:[%s4912_s28 + $0xa0] sm:$0xff]  ;;  %v1360_v56 = vld [vmem:[#allocation2 + $0x388] sm:$0xff] }
  0xe2   : > { %4213 = vmatpush1.bf16.msra.mxu0 %v4212_v62  ;;  %4118 = vmatprep.subr.bf16.mxu1 %v4775_v3  ;;  %v760_v62 = vld [vmem:[%s4912_s28 + $0xc8] sm:$0xff]  ;;  %v787_v38 = vld [vmem:[%s4912_s28 + $0x1a0] sm:$0xff] }
  0xe3   : > { %4214 = vmatprep.subr.bf16.mxu0 %v4775_v3  ;;  %v795_v48 = vld [vmem:[%s4912_s28 + $0x1e0] sm:$0xff]  ;;  %v808_v59 = vld [vmem:[%s4912_s28 + $0x248] sm:$0xff] }
  0xe4   : > { %v799_v57 = vld [vmem:[%s4912_s28 + $0x200] sm:$0xff]  ;;  %v1364_v13 = vld [vmem:[#allocation2 + $0x3a8] sm:$0xff] }
  0xe5   : > { %4120 = vmatpush1.bf16.msra.mxu1 %v4119_v4  ;;  %v1286_v4 = vld [vmem:[#allocation2 + $0x138] sm:$0xff]  ;;  %v803_v58 = vld [vmem:[%s4912_s28 + $0x220] sm:$0xff]  ;;  %v840_v26 = vld [vmem:[%s4912_s28 + $0x348] sm:$0xff] }
  0xe6   : > { %4216 = vmatpush1.bf16.msra.mxu0 %v4215_v5  ;;  %4121 = vmatprep.subr.bf16.mxu1 %v4775_v3  ;;  %v1349_v5 = vld [vmem:[#allocation2 + $0x330] sm:$0xff]  ;;  %v815_v14 = vld [vmem:[%s4912_s28 + $0x280] sm:$0xff] }
  0xe7   : > { %4217 = vmatprep.subr.bf16.mxu0 %v4775_v3  ;;  %v4242_v12 = vpack.c.bf16 %v1350_v6, %v1349_v5  ;;  %v811_v5 = vld [vmem:[%s4912_s28 + $0x260] sm:$0xff]  ;;  %v816_v6 = vld [vmem:[%s4912_s28 + $0x288] sm:$0xff] }
  0xe8   : > { %v835_v25 = vld [vmem:[%s4912_s28 + $0x320] sm:$0xff] }
  0xe9   : > { %4123 = vmatpush1.bf16.msra.mxu1 %v4122_v10  ;;  %v4146_v10 = vpack.c.bf16 %v1286_v4, %v1285_v2  ;;  %v1362_v2 = vld [vmem:[#allocation2 + $0x398] sm:$0xff]  ;;  %v807_v4 = vld [vmem:[%s4912_s28 + $0x240] sm:$0xff] }
  0xea   : > { %4219 = vmatpush1.bf16.msra.mxu0 %v4218_v11  ;;  %4124 = vmatprep.subr.bf16.mxu1 %v4775_v3  ;;  %v772_v11 = vld [vmem:[%s4912_s28 + $0x128] sm:$0xff] }
  0xeb   : > { %4220 = vmatprep.subr.bf16.mxu0 %v4775_v3 }
  0xed   : > { %4126 = vmatpush1.bf16.msra.mxu1 %v4125_v16  ;;  %v1352_v16 = vld [vmem:[#allocation2 + $0x348] sm:$0xff] }
  0xee   : > { %4222 = vmatpush1.bf16.msra.mxu0 %v4221_v17  ;;  %4127 = vmatprep.subr.bf16.mxu1 %v4775_v3  ;;  %v767_v17 = vld [vmem:[%s4912_s28 + $0x100] sm:$0xff] }
  0xef   : > { %4223 = vmatprep.subr.bf16.mxu0 %v4775_v3 }
  0xf1   : > { %4129 = vmatpush1.bf16.msra.mxu1 %v4128_v22  ;;  %v4245_v22 = vpack.c.bf16 %v1352_v16, %v1351_v15  ;;  %v819_v15 = vld [vmem:[%s4912_s28 + $0x2a0] sm:$0xff]  ;;  %v824_v16 = vld [vmem:[%s4912_s28 + $0x2c8] sm:$0xff] }
  0xf2   : > { %4225 = vmatpush1.bf16.msra.mxu0 %v4224_v23  ;;  %4130 = vmatprep.subr.bf16.mxu1 %v4775_v3  ;;  %v1289_v23 = vld [vmem:[#allocation2 + $0x150] sm:$0xff] }
  0xf3   : > { %4226 = vmatprep.subr.bf16.mxu0 %v4775_v3  ;;  %v4152_v30 = vpack.c.bf16 %v1290_v24, %v1289_v23  ;;  %v836_v23 = vld [vmem:[%s4912_s28 + $0x328] sm:$0xff]  ;;  %v831_v24 = vld [vmem:[%s4912_s28 + $0x300] sm:$0xff] }
  0xf5   : > { %4132 = vmatpush1.bf16.msra.mxu1 %v4131_v28  ;;  %v779_v28 = vld [vmem:[%s4912_s28 + $0x160] sm:$0xff] }
  0xf6   : > { %4228 = vmatpush1.bf16.msra.mxu0 %v4227_v29  ;;  %4133 = vmatprep.subr.bf16.mxu1 %v4775_v3  ;;  %v784_v29 = vld [vmem:[%s4912_s28 + $0x188] sm:$0xff] }
  0xf7   : > { %4229 = vmatprep.subr.bf16.mxu0 %v4775_v3 }
  0xf9   : > { %4135 = vmatpush1.bf16.msra.mxu1 %v4134_v34  ;;  %v1292_v34 = vld [vmem:[#allocation2 + $0x168] sm:$0xff] }
  0xfa   : > { %4231 = vmatpush1.bf16.msra.mxu0 %v4230_v35  ;;  %4136 = vmatprep.subr.bf16.mxu1 %v4775_v3  ;;  %v1355_v35 = vld [vmem:[#allocation2 + $0x360] sm:$0xff] }
  0xfb   : > { %4232 = vmatprep.subr.bf16.mxu0 %v4775_v3 }
  0xfc   : > { %1440 = vmatmul.mubr.f32.vlgmr.msra.gmra.mrb[0].mxu1 %v735_v40  ;;  %v4155_v40 = vpack.c.bf16 %v1292_v34, %v1291_v33  ;;  %v848_v33 = vld [vmem:[%s4912_s28 + $0x388] sm:$0xff] }
  0xfd   : > { %2210 = vmatmul.mubr.f32.vlgmr.msra.gmra.mrb[0].mxu0 %v739_v42  ;;  %4138 = vmatpush1.bf16.msra.mxu1 %v4137_v41  ;;  %v796_v41 = vld [vmem:[%s4912_s28 + $0x1e8] sm:$0xff]  ;;  %v4251_v42 = vpack.c.bf16 %v1356_v36, %v1355_v35  ;;  %v1366_v35 = vld [vmem:[#allocation2 + $0x3b8] sm:$0xff] }
  0xfe   : > { %4234 = vmatpush1.bf16.msra.mxu0 %v4233_v43  ;;  %1444 = vmatprep.mubr.f32.mxu1 %v744_v44  ;;  %v1293_v43 = vld [vmem:[#allocation2 + $0x170] sm:$0xff]  ;;  %v1294_v44 = vld [vmem:[#allocation2 + $0x178] sm:$0xff]  ;;  %v852_v36 = vld [vmem:[%s4912_s28 + $0x3a8] sm:$0xff] }
  0xff   : > { %2214 = vmatprep.mubr.f32.mxu0 %v748_v47  ;;  %4139 = vmatprep.subr.bf16.mxu1 %v4775_v3  ;;  %v791_v47 = vld [vmem:[%s4912_s28 + $0x1c0] sm:$0xff] }
 0x100   : > { %1445 = vmatmul.mubr.f32.gmra.mrb[2].mxu1 %v743_v50  ;;  %4235 = vmatprep.subr.bf16.mxu0 %v4775_v3  ;;  %v4158_v50 = vpack.c.bf16 %v1294_v44, %v1293_v43  ;;  %v859_v43 = vld [vmem:[%s4912_s28 + $0x3e0] sm:$0xff]  ;;  %v864_v44 = vld [vmem:[%s4912_s28 + $0x408] sm:$0xff] }
 0x101   : > { %2215 = vmatmul.mubr.f32.gmra.mrb[2].mxu0 %v747_v51  ;;  %1449 = vmatprep.mubr.f32.mxu1 %v752_v52  ;;  %v804_v51 = vld [vmem:[%s4912_s28 + $0x228] sm:$0xff]  ;;  %v4254_v52 = vpack.c.bf16 %v1358_v46, %v1357_v45  ;;  %v863_v46 = vld [vmem:[%s4912_s28 + $0x400] sm:$0xff] }
 0x102   : > { %2219 = vmatprep.mubr.f32.mxu0 %v756_v54  ;;  %4141 = vmatpush1.bf16.msra.mxu1 %v4140_v53  ;;  %v1295_v53 = vld [vmem:[#allocation2 + $0x180] sm:$0xff]  ;;  %v1296_v54 = vld [vmem:[#allocation2 + $0x188] sm:$0xff] }
 0x103   : > { %4237 = vmatpush1.bf16.msra.mxu0 %v4236_v55  ;;  %4142 = vmatprep.subr.bf16.mxu1 %v4775_v3  ;;  %v1359_v55 = vld [vmem:[#allocation2 + $0x380] sm:$0xff]  ;;  %v868_v45 = vld [vmem:[%s4912_s28 + $0x428] sm:$0xff] }
 0x104   : > { %1450 = vmatmul.mubr.f32.gmra.mrb[4].mxu1 %v751_v60  ;;  %4238 = vmatprep.subr.bf16.mxu0 %v4775_v3  ;;  %v4161_v60 = vpack.c.bf16 %v1296_v54, %v1295_v53  ;;  %v1367_v53 = vld [vmem:[#allocation2 + $0x3c0] sm:$0xff] }
 0x105   : > { %2220 = vmatmul.mubr.f32.gmra.mrb[4].mxu0 %v755_v61  ;;  %1454 = vmatprep.mubr.f32.mxu1 %v760_v62  ;;  %v812_v61 = vld [vmem:[%s4912_s28 + $0x268] sm:$0xff]  ;;  %v4257_v62 = vpack.c.bf16 %v1360_v56, %v1359_v55  ;;  %v875_v54 = vld [vmem:[%s4912_s28 + $0x460] sm:$0xff] }
 0x106   : > { %2224 = vmatprep.mubr.f32.mxu0 %v764_v0  ;;  %4144 = vmatpush1.bf16.msra.mxu1 %v4143_v63  ;;  %v1297_v63 = vld [vmem:[#allocation2 + $0x190] sm:$0xff]  ;;  %v1298_v0 = vld [vmem:[#allocation2 + $0x198] sm:$0xff]  ;;  %v880_v55 = vld [vmem:[%s4912_s28 + $0x488] sm:$0xff] }
 0x107   : > { %4240 = vmatpush1.bf16.msra.mxu0 %v4239_v1  ;;  %4145 = vmatprep.subr.bf16.mxu1 %v4775_v3  ;;  %v1361_v1 = vld [vmem:[#allocation2 + $0x390] sm:$0xff] }
 0x108   : > { %1455 = vmatmul.mubr.f32.gmra.mrb[6].mxu1 %v759_v7  ;;  %4241 = vmatprep.subr.bf16.mxu0 %v4775_v3  ;;  %v4164_v7 = vpack.c.bf16 %v1298_v0, %v1297_v63  ;;  %v892_v63 = vld [vmem:[%s4912_s28 + $0x4e8] sm:$0xff]  ;;  %v887_v0 = vld [vmem:[%s4912_s28 + $0x4c0] sm:$0xff] }
 0x109   : > { %2225 = vmatmul.mubr.f32.gmra.mrb[6].mxu0 %v763_v8  ;;  %1459 = vmatprep.mubr.f32.mxu1 %v768_v9  ;;  %v820_v8 = vld [vmem:[%s4912_s28 + $0x2a8] sm:$0xff]  ;;  %v4260_v9 = vpack.c.bf16 %v1362_v2, %v1361_v1  ;;  %v891_v1 = vld [vmem:[%s4912_s28 + $0x4e0] sm:$0xff] }
 0x10a   : > { %2229 = vmatprep.mubr.f32.mxu0 %v772_v11  ;;  %4147 = vmatpush1.bf16.msra.mxu1 %v4146_v10  ;;  %v1299_v10 = vld [vmem:[#allocation2 + $0x1a0] sm:$0xff]  ;;  %v1300_v11 = vld [vmem:[#allocation2 + $0x1a8] sm:$0xff] }
 0x10b   : > { %4243 = vmatpush1.bf16.msra.mxu0 %v4242_v12  ;;  %4148 = vmatprep.subr.bf16.mxu1 %v4775_v3  ;;  %v1363_v12 = vld [vmem:[#allocation2 + $0x3a0] sm:$0xff]  ;;  %v896_v2 = vld [vmem:[%s4912_s28 + $0x508] sm:$0xff] }
 0x10c   : > { %1460 = vmatmul.mubr.f32.gmra.mrb[8].mxu1 %v767_v17  ;;  %4244 = vmatprep.subr.bf16.mxu0 %v4775_v3  ;;  %v4167_v17 = vpack.c.bf16 %v1300_v11, %v1299_v10  ;;  %v1305_v10 = vld [vmem:[#allocation2 + $0x1d0] sm:$0xff]  ;;  %v1306_v11 = vld [vmem:[#allocation2 + $0x1d8] sm:$0xff] }
 0x10d   : > { %2230 = vmatmul.mubr.f32.gmra.mrb[8].mxu0 %v771_v18  ;;  %1464 = vmatprep.mubr.f32.mxu1 %v776_v19  ;;  %v828_v18 = vld [vmem:[%s4912_s28 + $0x2e8] sm:$0xff]  ;;  %v4263_v19 = vpack.c.bf16 %v1364_v13, %v1363_v12  ;;  %v1369_v12 = vld [vmem:[#allocation2 + $0x3d0] sm:$0xff]  ;;  %v907_v13 = vld [vmem:[%s4912_s28 + $0x560] sm:$0xff] }
 0x10e   : > { %2234 = vmatprep.mubr.f32.mxu0 %v780_v21  ;;  %4150 = vmatpush1.bf16.msra.mxu1 %v4149_v20  ;;  %v823_v20 = vld [vmem:[%s4912_s28 + $0x2c0] sm:$0xff] }
 0x10f   : > { %4246 = vmatpush1.bf16.msra.mxu0 %v4245_v22  ;;  %4151 = vmatprep.subr.bf16.mxu1 %v4775_v3  ;;  %v827_v21 = vld [vmem:[%s4912_s28 + $0x2e0] sm:$0xff]  ;;  %v832_v22 = vld [vmem:[%s4912_s28 + $0x308] sm:$0xff] }
 0x110   : > { %1465 = vmatmul.mubr.f32.gmra.mrb[10].mxu1 %v775_v27  ;;  %4247 = vmatprep.subr.bf16.mxu0 %v4775_v3  ;;  %v844_v27 = vld [vmem:[%s4912_s28 + $0x368] sm:$0xff] }
 0x111   : > { %2235 = vmatmul.mubr.f32.gmra.mrb[10].mxu0 %v779_v28  ;;  %1469 = vmatprep.mubr.f32.mxu1 %v784_v29  ;;  %v839_v28 = vld [vmem:[%s4912_s28 + $0x340] sm:$0xff]  ;;  %v1301_v29 = vld [vmem:[#allocation2 + $0x1b0] sm:$0xff] }
 0x112   : > { %2239 = vmatprep.mubr.f32.mxu0 %v788_v31  ;;  %4153 = vmatpush1.bf16.msra.mxu1 %v4152_v30  ;;  %v1302_v30 = vld [vmem:[#allocation2 + $0x1b8] sm:$0xff]  ;;  %v1365_v31 = vld [vmem:[#allocation2 + $0x3b0] sm:$0xff] }
 0x113   : > { %4249 = vmatpush1.bf16.msra.mxu0 %v4248_v32  ;;  %4154 = vmatprep.subr.bf16.mxu1 %v4775_v3  ;;  %v843_v32 = vld [vmem:[%s4912_s28 + $0x360] sm:$0xff]  ;;  %v4170_v34 = vpack.c.bf16 %v1302_v30, %v1301_v29  ;;  %v936_v29 = vld [vmem:[%s4912_s28 + $0x648] sm:$0xff] }
 0x114   : > { %1470 = vmatmul.mubr.f32.gmra.mrb[12].mxu1 %v783_v37  ;;  %4250 = vmatprep.subr.bf16.mxu0 %v4775_v3  ;;  %v4266_v37 = vpack.c.bf16 %v1366_v35, %v1365_v31  ;;  %v940_v30 = vld [vmem:[%s4912_s28 + $0x668] sm:$0xff]  ;;  %v935_v31 = vld [vmem:[%s4912_s28 + $0x640] sm:$0xff] }
 0x115   : > { %2240 = vmatmul.mubr.f32.gmra.mrb[12].mxu0 %v787_v38  ;;  %1474 = vmatprep.mubr.f32.mxu1 %v792_v39  ;;  %v847_v38 = vld [vmem:[%s4912_s28 + $0x380] sm:$0xff] }
 0x116   : > { %2244 = vmatprep.mubr.f32.mxu0 %v796_v41  ;;  %4156 = vmatpush1.bf16.msra.mxu1 %v4155_v40  ;;  %v851_v39 = vld [vmem:[%s4912_s28 + $0x3a0] sm:$0xff]  ;;  %v856_v40 = vld [vmem:[%s4912_s28 + $0x3c8] sm:$0xff] }
 0x117   : > { %4252 = vmatpush1.bf16.msra.mxu0 %v4251_v42  ;;  %4157 = vmatprep.subr.bf16.mxu1 %v4775_v3  ;;  %v860_v41 = vld [vmem:[%s4912_s28 + $0x3e8] sm:$0xff]  ;;  %v855_v42 = vld [vmem:[%s4912_s28 + $0x3c0] sm:$0xff] }
 0x118   : > { %1475 = vmatmul.mubr.f32.gmra.mrb[14].mxu1 %v791_v47  ;;  %4253 = vmatprep.subr.bf16.mxu0 %v4775_v3  ;;  %v867_v47 = vld [vmem:[%s4912_s28 + $0x420] sm:$0xff] }
 0x119   : > { %2245 = vmatmul.mubr.f32.gmra.mrb[14].mxu0 %v795_v48  ;;  %1479 = vmatprep.mubr.f32.mxu1 %v800_v49  ;;  %v872_v48 = vld [vmem:[%s4912_s28 + $0x448] sm:$0xff]  ;;  %v939_v35 = vld [vmem:[%s4912_s28 + $0x660] sm:$0xff] }
 0x11a   : > { %2249 = vmatprep.mubr.f32.mxu0 %v804_v51  ;;  %4159 = vmatpush1.bf16.msra.mxu1 %v4158_v50  ;;  %v876_v49 = vld [vmem:[%s4912_s28 + $0x468] sm:$0xff]  ;;  %v871_v50 = vld [vmem:[%s4912_s28 + $0x440] sm:$0xff] }
 0x11b   : > { %4255 = vmatpush1.bf16.msra.mxu0 %v4254_v52  ;;  %4160 = vmatprep.subr.bf16.mxu1 %v4775_v3  ;;  %v1303_v51 = vld [vmem:[#allocation2 + $0x1c0] sm:$0xff]  ;;  %v1304_v52 = vld [vmem:[#allocation2 + $0x1c8] sm:$0xff] }
 0x11c   : > { %1480 = vmatmul.mubr.f32.gmra.mrb[16].mxu1 %v799_v57  ;;  %4256 = vmatprep.subr.bf16.mxu0 %v4775_v3  ;;  %v4173_v56 = vpack.c.bf16 %v1304_v52, %v1303_v51  ;;  %v1368_v57 = vld [vmem:[#allocation2 + $0x3c8] sm:$0xff] }
 0x11d   : > { %2250 = vmatmul.mubr.f32.gmra.mrb[16].mxu0 %v803_v58  ;;  %1484 = vmatprep.mubr.f32.mxu1 %v808_v59  ;;  %v884_v58 = vld [vmem:[%s4912_s28 + $0x4a8] sm:$0xff]  ;;  %v4269_v59 = vpack.c.bf16 %v1368_v57, %v1367_v53  ;;  %v1309_v53 = vld [vmem:[#allocation2 + $0x1f0] sm:$0xff] }
 0x11e   : > { %2254 = vmatprep.mubr.f32.mxu0 %v812_v61  ;;  %4162 = vmatpush1.bf16.msra.mxu1 %v4161_v60  ;;  %v879_v60 = vld [vmem:[%s4912_s28 + $0x480] sm:$0xff]  ;;  %v968_v51 = vld [vmem:[%s4912_s28 + $0x748] sm:$0xff] }
 0x11f   : > { %4258 = vmatpush1.bf16.msra.mxu0 %v4257_v62  ;;  %4163 = vmatprep.subr.bf16.mxu1 %v4775_v3  ;;  %v883_v61 = vld [vmem:[%s4912_s28 + $0x4a0] sm:$0xff]  ;;  %v888_v62 = vld [vmem:[%s4912_s28 + $0x4c8] sm:$0xff] }
 0x120   : > { %1485 = vmatmul.mubr.f32.gmra.mrb[18].mxu1 %v807_v4  ;;  %4259 = vmatprep.subr.bf16.mxu0 %v4775_v3  ;;  %v900_v4 = vld [vmem:[%s4912_s28 + $0x528] sm:$0xff] }
 0x121   : > { %2255 = vmatmul.mubr.f32.gmra.mrb[18].mxu0 %v811_v5  ;;  %1489 = vmatprep.mubr.f32.mxu1 %v816_v6  ;;  %v895_v5 = vld [vmem:[%s4912_s28 + $0x500] sm:$0xff]  ;;  %v972_v52 = vld [vmem:[%s4912_s28 + $0x768] sm:$0xff] }
 0x122   : > { %2259 = vmatprep.mubr.f32.mxu0 %v820_v8  ;;  %4165 = vmatpush1.bf16.msra.mxu1 %v4164_v7  ;;  %v899_v6 = vld [vmem:[%s4912_s28 + $0x520] sm:$0xff]  ;;  %v904_v7 = vld [vmem:[%s4912_s28 + $0x548] sm:$0xff] }
 0x123   : > { %4261 = vmatpush1.bf16.msra.mxu0 %v4260_v9  ;;  %4166 = vmatprep.subr.bf16.mxu1 %v4775_v3  ;;  %v908_v8 = vld [vmem:[%s4912_s28 + $0x568] sm:$0xff]  ;;  %v903_v9 = vld [vmem:[%s4912_s28 + $0x540] sm:$0xff] }
 0x124   : > { %1490 = vmatmul.mubr.f32.gmra.mrb[20].mxu1 %v815_v14  ;;  %4262 = vmatprep.subr.bf16.mxu0 %v4775_v3  ;;  %v912_v14 = vld [vmem:[%s4912_s28 + $0x588] sm:$0xff] }
 0x125   : > { %2260 = vmatmul.mubr.f32.gmra.mrb[20].mxu0 %v819_v15  ;;  %1494 = vmatprep.mubr.f32.mxu1 %v824_v16  ;;  %v4176_v15 = vpack.c.bf16 %v1306_v11, %v1305_v10  ;;  %v1370_v16 = vld [vmem:[#allocation2 + $0x3d8] sm:$0xff]  ;;  %v976_v57 = vld [vmem:[%s4912_s28 + $0x788] sm:$0xff]  ;;  %v999_v11 = vld [vmem:[%s4912_s28 + $0x840] sm:$0xff] }
 0x126   : > { %2264 = vmatprep.mubr.f32.mxu0 %v828_v18  ;;  %4168 = vmatpush1.bf16.msra.mxu1 %v4167_v17  ;;  %v916_v17 = vld [vmem:[%s4912_s28 + $0x5a8] sm:$0xff]  ;;  %v4272_v18 = vpack.c.bf16 %v1370_v16, %v1369_v12  ;;  %v1003_v12 = vld [vmem:[%s4912_s28 + $0x860] sm:$0xff] }
 0x127   : > { %4264 = vmatpush1.bf16.msra.mxu0 %v4263_v19  ;;  %4169 = vmatprep.subr.bf16.mxu1 %v4775_v3  ;;  %v911_v19 = vld [vmem:[%s4912_s28 + $0x580] sm:$0xff]  ;;  %v1004_v10 = vld [vmem:[%s4912_s28 + $0x868] sm:$0xff] }
 0x128   : > { %1495 = vmatmul.mubr.f32.gmra.mrb[22].mxu1 %v823_v20  ;;  %4265 = vmatprep.subr.bf16.mxu0 %v4775_v3  ;;  %v915_v20 = vld [vmem:[%s4912_s28 + $0x5a0] sm:$0xff] }
 0x129   : > { %2265 = vmatmul.mubr.f32.gmra.mrb[22].mxu0 %v827_v21  ;;  %1499 = vmatprep.mubr.f32.mxu1 %v832_v22  ;;  %v920_v21 = vld [vmem:[%s4912_s28 + $0x5c8] sm:$0xff]  ;;  %v1011_v16 = vld [vmem:[%s4912_s28 + $0x8a0] sm:$0xff] }
 0x12a   : > { %2269 = vmatprep.mubr.f32.mxu0 %v836_v23  ;;  %4171 = vmatpush1.bf16.msra.mxu1 %v4170_v34  ;;  %v924_v22 = vld [vmem:[%s4912_s28 + $0x5e8] sm:$0xff]  ;;  %v919_v23 = vld [vmem:[%s4912_s28 + $0x5c0] sm:$0xff] }
 0x12b   : > { %4267 = vmatpush1.bf16.msra.mxu0 %v4266_v37  ;;  %4172 = vmatprep.subr.bf16.mxu1 %v4775_v3  ;;  %v1371_v34 = vld [vmem:[#allocation2 + $0x3e0] sm:$0xff] }
 0x12c   : > { %1500 = vmatmul.mubr.f32.gmra.mrb[24].mxu1 %v831_v24  ;;  %4268 = vmatprep.subr.bf16.mxu0 %v4775_v3  ;;  %v923_v24 = vld [vmem:[%s4912_s28 + $0x5e0] sm:$0xff] }
 0x12d   : > { %2270 = vmatmul.mubr.f32.gmra.mrb[24].mxu0 %v835_v25  ;;  %1504 = vmatprep.mubr.f32.mxu1 %v840_v26  ;;  %v928_v25 = vld [vmem:[%s4912_s28 + $0x608] sm:$0xff] }
 0x12e   : > { %2274 = vmatprep.mubr.f32.mxu0 %v844_v27  ;;  %4174 = vmatpush1.bf16.msra.mxu1 %v4173_v56  ;;  %v932_v26 = vld [vmem:[%s4912_s28 + $0x628] sm:$0xff]  ;;  %v927_v27 = vld [vmem:[%s4912_s28 + $0x600] sm:$0xff] }
 0x12f   : > { %4270 = vmatpush1.bf16.msra.mxu0 %v4269_v59  ;;  %4175 = vmatprep.subr.bf16.mxu1 %v4775_v3  ;;  %v971_v56 = vld [vmem:[%s4912_s28 + $0x760] sm:$0xff]  ;;  %v1374_v59 = vld [vmem:[#allocation2 + $0x3f8] sm:$0xff] }
 0x130   : > { %1505 = vmatmul.mubr.f32.gmra.mrb[26].mxu1 %v839_v28  ;;  %4271 = vmatprep.subr.bf16.mxu0 %v4775_v3  ;;  %v931_v28 = vld [vmem:[%s4912_s28 + $0x620] sm:$0xff] }
 0x131   : > { %2275 = vmatmul.mubr.f32.gmra.mrb[26].mxu0 %v843_v32  ;;  %1509 = vmatprep.mubr.f32.mxu1 %v848_v33  ;;  %v1307_v32 = vld [vmem:[#allocation2 + $0x1e0] sm:$0xff]  ;;  %v1308_v33 = vld [vmem:[#allocation2 + $0x1e8] sm:$0xff] }
 0x132   : > { %2279 = vmatprep.mubr.f32.mxu0 %v852_v36  ;;  %4177 = vmatpush1.bf16.msra.mxu1 %v4176_v15  ;;  %v944_v36 = vld [vmem:[%s4912_s28 + $0x688] sm:$0xff]  ;;  %v4179_v37 = vpack.c.bf16 %v1308_v33, %v1307_v32  ;;  %v1007_v15 = vld [vmem:[%s4912_s28 + $0x880] sm:$0xff] }
 0x133   : > { %4273 = vmatpush1.bf16.msra.mxu0 %v4272_v18  ;;  %4178 = vmatprep.subr.bf16.mxu1 %v4775_v3  ;;  %v1020_v18 = vld [vmem:[%s4912_s28 + $0x8e8] sm:$0xff]  ;;  %v1043_v32 = vld [vmem:[%s4912_s28 + $0x9a0] sm:$0xff] }
 0x134   : > { %1510 = vmatmul.mubr.f32.gmra.mrb[28].mxu1 %v847_v38  ;;  %4274 = vmatprep.subr.bf16.mxu0 %v4775_v3  ;;  %v1372_v38 = vld [vmem:[#allocation2 + $0x3e8] sm:$0xff] }
 0x135   : > { %2280 = vmatmul.mubr.f32.gmra.mrb[28].mxu0 %v851_v39  ;;  %1514 = vmatprep.mubr.f32.mxu1 %v856_v40  ;;  %v948_v39 = vld [vmem:[%s4912_s28 + $0x6a8] sm:$0xff]  ;;  %v4275_v40 = vpack.c.bf16 %v1372_v38, %v1371_v34 }
 0x136   : > { %2284 = vmatprep.mubr.f32.mxu0 %v860_v41  ;;  %v943_v41 = vld [vmem:[%s4912_s28 + $0x680] sm:$0xff]  ;;  %4180 = vmatpush1.bf16.msra.mxu1 %v4179_v37  ;;  %v1048_v33 = vld [vmem:[%s4912_s28 + $0x9c8] sm:$0xff] }
 0x137   : > { %4276 = vmatpush1.bf16.msra.mxu0 %v4275_v40  ;;  %4181 = vmatprep.subr.bf16.mxu1 %v4775_v3  ;;  %v1052_v34 = vld [vmem:[%s4912_s28 + $0x9e8] sm:$0xff]  ;;  %v1059_v40 = vld [vmem:[%s4912_s28 + $0xa20] sm:$0xff] }
 0x138   : > { %1515 = vmatmul.mubr.f32.gmra.mrb[30].mxu1 %v855_v42  ;;  %v947_v42 = vld [vmem:[%s4912_s28 + $0x6a0] sm:$0xff]  ;;  %4277 = vmatprep.subr.bf16.mxu0 %v4775_v3  ;;  %v1056_v37 = vld [vmem:[%s4912_s28 + $0xa08] sm:$0xff] }
 0x139   : > { %2285 = vmatmul.mubr.f32.gmra.mrb[30].mxu0 %v859_v43  ;;  %1519 = vmatprep.mubr.f32.mxu1 %v864_v44  ;;  %v952_v43 = vld [vmem:[%s4912_s28 + $0x6c8] sm:$0xff]  ;;  %v967_v3 = vld [vmem:[%s4912_s28 + $0x740] sm:$0xff] }
 0x13a   : > { %2289 = vmatprep.mubr.f32.mxu0 %v868_v45  ;;  %v956_v44 = vld [vmem:[%s4912_s28 + $0x6e8] sm:$0xff]  ;;  %v951_v45 = vld [vmem:[%s4912_s28 + $0x6c0] sm:$0xff] }
 0x13b   : > { %v1060_v38 = vld [vmem:[%s4912_s28 + $0xa28] sm:$0xff] }
 0x13c   : > { %1520 = vmatmul.mubr.f32.gmra.mrb[32].mxu1 %v863_v46  ;;  %v955_v46 = vld [vmem:[%s4912_s28 + $0x6e0] sm:$0xff] }
 0x13d   : > { %2290 = vmatmul.mubr.f32.gmra.mrb[32].mxu0 %v867_v47  ;;  %1524 = vmatprep.mubr.f32.mxu1 %v872_v48  ;;  %v960_v47 = vld [vmem:[%s4912_s28 + $0x708] sm:$0xff] }
 0x13e   : > { %2294 = vmatprep.mubr.f32.mxu0 %v876_v49  ;;  %v964_v48 = vld [vmem:[%s4912_s28 + $0x728] sm:$0xff]  ;;  %v959_v49 = vld [vmem:[%s4912_s28 + $0x700] sm:$0xff] }
 0x140   : > { %1525 = vmatmul.mubr.f32.gmra.mrb[34].mxu1 %v871_v50  ;;  %v963_v50 = vld [vmem:[%s4912_s28 + $0x720] sm:$0xff] }
 0x141   : > { %2295 = vmatmul.mubr.f32.gmra.mrb[34].mxu0 %v875_v54  ;;  %1529 = vmatprep.mubr.f32.mxu1 %v880_v55  ;;  %v1310_v54 = vld [vmem:[#allocation2 + $0x1f8] sm:$0xff]  ;;  %v1373_v55 = vld [vmem:[#allocation2 + $0x3f0] sm:$0xff] }
 0x142   : > { %2299 = vmatprep.mubr.f32.mxu0 %v884_v58  ;;  %v4182_v58 = vpack.c.bf16 %v1310_v54, %v1309_v53  ;;  %v1092_v53 = vld [vmem:[%s4912_s28 + $0xb28] sm:$0xff]  ;;  %v1087_v54 = vld [vmem:[%s4912_s28 + $0xb00] sm:$0xff] }
 0x144   : > { %1530 = vmatmul.mubr.f32.gmra.mrb[36].mxu1 %v879_v60  ;;  %v980_v60 = vld [vmem:[%s4912_s28 + $0x7a8] sm:$0xff] }
 0x145   : > { %2300 = vmatmul.mubr.f32.gmra.mrb[36].mxu0 %v883_v61  ;;  %1534 = vmatprep.mubr.f32.mxu1 %v888_v62  ;;  %v4278_v61 = vpack.c.bf16 %v1374_v59, %v1373_v55  ;;  %v975_v62 = vld [vmem:[%s4912_s28 + $0x780] sm:$0xff] }
 0x146   : > { %2304 = vmatprep.mubr.f32.mxu0 %v892_v63  ;;  %v979_v63 = vld [vmem:[%s4912_s28 + $0x7a0] sm:$0xff]  ;;  %4183 = vmatpush1.bf16.msra.mxu1 %v4182_v58 }
 0x147   : > { %4279 = vmatpush1.bf16.msra.mxu0 %v4278_v61  ;;  %v1091_v55 = vld [vmem:[%s4912_s28 + $0xb20] sm:$0xff]  ;;  %v1108_v61 = vld [vmem:[%s4912_s28 + $0xba8] sm:$0xff] }
 0x148   : > { %1535 = vmatmul.mubr.f32.gmra.mrb[38].mxu1 %v887_v0  ;;  %v984_v0 = vld [vmem:[%s4912_s28 + $0x7c8] sm:$0xff]  ;;  %v1095_v58 = vld [vmem:[%s4912_s28 + $0xb40] sm:$0xff] }
 0x149   : > { %2305 = vmatmul.mubr.f32.gmra.mrb[38].mxu0 %v891_v1  ;;  %1539 = vmatprep.mubr.f32.mxu1 %v896_v2  ;;  %v988_v1 = vld [vmem:[%s4912_s28 + $0x7e8] sm:$0xff]  ;;  %v983_v2 = vld [vmem:[%s4912_s28 + $0x7c0] sm:$0xff] }
 0x14a   : > { %2309 = vmatprep.mubr.f32.mxu0 %v900_v4  ;;  %v987_v4 = vld [vmem:[%s4912_s28 + $0x7e0] sm:$0xff] }
 0x14b   : > { %v1099_v59 = vld [vmem:[%s4912_s28 + $0xb60] sm:$0xff] }
 0x14c   : > { %1540 = vmatmul.mubr.f32.gmra.mrb[40].mxu1 %v895_v5  ;;  %v992_v5 = vld [vmem:[%s4912_s28 + $0x808] sm:$0xff] }
 0x14d   : > { %2310 = vmatmul.mubr.f32.gmra.mrb[40].mxu0 %v899_v6  ;;  %1544 = vmatprep.mubr.f32.mxu1 %v904_v7  ;;  %v996_v6 = vld [vmem:[%s4912_s28 + $0x828] sm:$0xff]  ;;  %v991_v7 = vld [vmem:[%s4912_s28 + $0x800] sm:$0xff] }
 0x14e   : > { %2314 = vmatprep.mubr.f32.mxu0 %v908_v8  ;;  %v995_v8 = vld [vmem:[%s4912_s28 + $0x820] sm:$0xff] }
 0x150   : > { %1545 = vmatmul.mubr.f32.gmra.mrb[42].mxu1 %v903_v9  ;;  %v1000_v9 = vld [vmem:[%s4912_s28 + $0x848] sm:$0xff] }
 0x151   : > { %2315 = vmatmul.mubr.f32.gmra.mrb[42].mxu0 %v907_v13  ;;  %1549 = vmatprep.mubr.f32.mxu1 %v912_v14  ;;  %v1008_v13 = vld [vmem:[%s4912_s28 + $0x888] sm:$0xff] }
 0x152   : > { %2319 = vmatprep.mubr.f32.mxu0 %v916_v17  ;;  %v1012_v14 = vld [vmem:[%s4912_s28 + $0x8a8] sm:$0xff] }
 0x153   : > { %v1016_v17 = vld [vmem:[%s4912_s28 + $0x8c8] sm:$0xff] }
 0x154   : > { %1550 = vmatmul.mubr.f32.gmra.mrb[44].mxu1 %v911_v19  ;;  %v1015_v19 = vld [vmem:[%s4912_s28 + $0x8c0] sm:$0xff] }
 0x155   : > { %2320 = vmatmul.mubr.f32.gmra.mrb[44].mxu0 %v915_v20  ;;  %1554 = vmatprep.mubr.f32.mxu1 %v920_v21  ;;  %v1019_v20 = vld [vmem:[%s4912_s28 + $0x8e0] sm:$0xff]  ;;  %v1024_v21 = vld [vmem:[%s4912_s28 + $0x908] sm:$0xff] }
 0x156   : > { %2324 = vmatprep.mubr.f32.mxu0 %v924_v22  ;;  %v1028_v22 = vld [vmem:[%s4912_s28 + $0x928] sm:$0xff] }
 0x158   : > { %1555 = vmatmul.mubr.f32.gmra.mrb[46].mxu1 %v919_v23  ;;  %v1023_v23 = vld [vmem:[%s4912_s28 + $0x900] sm:$0xff] }
 0x159   : > { %2325 = vmatmul.mubr.f32.gmra.mrb[46].mxu0 %v923_v24  ;;  %1559 = vmatprep.mubr.f32.mxu1 %v928_v25  ;;  %v1027_v24 = vld [vmem:[%s4912_s28 + $0x920] sm:$0xff]  ;;  %v1032_v25 = vld [vmem:[%s4912_s28 + $0x948] sm:$0xff] }
 0x15a   : > { %2329 = vmatprep.mubr.f32.mxu0 %v932_v26  ;;  %v1036_v26 = vld [vmem:[%s4912_s28 + $0x968] sm:$0xff] }
 0x15c   : > { %1560 = vmatmul.mubr.f32.gmra.mrb[48].mxu1 %v927_v27  ;;  %v1031_v27 = vld [vmem:[%s4912_s28 + $0x940] sm:$0xff] }
 0x15d   : > { %2330 = vmatmul.mubr.f32.gmra.mrb[48].mxu0 %v931_v28  ;;  %1564 = vmatprep.mubr.f32.mxu1 %v936_v29  ;;  %v1035_v28 = vld [vmem:[%s4912_s28 + $0x960] sm:$0xff]  ;;  %v1040_v29 = vld [vmem:[%s4912_s28 + $0x988] sm:$0xff] }
 0x15e   : > { %2334 = vmatprep.mubr.f32.mxu0 %v940_v30  ;;  %v1044_v30 = vld [vmem:[%s4912_s28 + $0x9a8] sm:$0xff] }
 0x160   : > { %1565 = vmatmul.mubr.f32.gmra.mrb[50].mxu1 %v935_v31  ;;  %v1039_v31 = vld [vmem:[%s4912_s28 + $0x980] sm:$0xff] }
 0x161   : > { %2335 = vmatmul.mubr.f32.gmra.mrb[50].mxu0 %v939_v35  ;;  %1569 = vmatprep.mubr.f32.mxu1 %v944_v36  ;;  %v1047_v35 = vld [vmem:[%s4912_s28 + $0x9c0] sm:$0xff] }
 0x162   : > { %2339 = vmatprep.mubr.f32.mxu0 %v948_v39  ;;  %v1051_v36 = vld [vmem:[%s4912_s28 + $0x9e0] sm:$0xff] }
 0x163   : > { %v1055_v39 = vld [vmem:[%s4912_s28 + $0xa00] sm:$0xff] }
 0x164   : > { %1570 = vmatmul.mubr.f32.gmra.mrb[52].mxu1 %v943_v41  ;;  %v1064_v41 = vld [vmem:[%s4912_s28 + $0xa48] sm:$0xff] }
 0x165   : > { %2340 = vmatmul.mubr.f32.gmra.mrb[52].mxu0 %v947_v42  ;;  %1574 = vmatprep.mubr.f32.mxu1 %v952_v43  ;;  %v1068_v42 = vld [vmem:[%s4912_s28 + $0xa68] sm:$0xff]  ;;  %v1063_v43 = vld [vmem:[%s4912_s28 + $0xa40] sm:$0xff] }
 0x166   : > { %2344 = vmatprep.mubr.f32.mxu0 %v956_v44  ;;  %v1067_v44 = vld [vmem:[%s4912_s28 + $0xa60] sm:$0xff] }
 0x168   : > { %1575 = vmatmul.mubr.f32.gmra.mrb[54].mxu1 %v951_v45  ;;  %v1072_v45 = vld [vmem:[%s4912_s28 + $0xa88] sm:$0xff] }
 0x169   : > { %2345 = vmatmul.mubr.f32.gmra.mrb[54].mxu0 %v955_v46  ;;  %1579 = vmatprep.mubr.f32.mxu1 %v960_v47  ;;  %v1076_v46 = vld [vmem:[%s4912_s28 + $0xaa8] sm:$0xff]  ;;  %v1071_v47 = vld [vmem:[%s4912_s28 + $0xa80] sm:$0xff] }
 0x16a   : > { %2349 = vmatprep.mubr.f32.mxu0 %v964_v48  ;;  %v1075_v48 = vld [vmem:[%s4912_s28 + $0xaa0] sm:$0xff] }
 0x16c   : > { %1580 = vmatmul.mubr.f32.gmra.mrb[56].mxu1 %v959_v49  ;;  %v1080_v49 = vld [vmem:[%s4912_s28 + $0xac8] sm:$0xff] }
 0x16d   : > { %2350 = vmatmul.mubr.f32.gmra.mrb[56].mxu0 %v963_v50  ;;  %1584 = vmatprep.mubr.f32.mxu1 %v968_v51  ;;  %v1084_v50 = vld [vmem:[%s4912_s28 + $0xae8] sm:$0xff]  ;;  %v1079_v51 = vld [vmem:[%s4912_s28 + $0xac0] sm:$0xff] }
 0x16e   : > { %2354 = vmatprep.mubr.f32.mxu0 %v972_v52  ;;  %v1083_v52 = vld [vmem:[%s4912_s28 + $0xae0] sm:$0xff] }
 0x170   : > { %1585 = vmatmul.mubr.f32.gmra.mrb[58].mxu1 %v967_v3  ;;  %v1088_v3 = vld [vmem:[%s4912_s28 + $0xb08] sm:$0xff] }
 0x171   : > { %2355 = vmatmul.mubr.f32.gmra.mrb[58].mxu0 %v971_v56  ;;  %1589 = vmatprep.mubr.f32.mxu1 %v976_v57  ;;  %v1096_v56 = vld [vmem:[%s4912_s28 + $0xb48] sm:$0xff] }
 0x172   : > { %2359 = vmatprep.mubr.f32.mxu0 %v980_v60  ;;  %v1100_v57 = vld [vmem:[%s4912_s28 + $0xb68] sm:$0xff] }
 0x173   : > { %v1104_v60 = vld [vmem:[%s4912_s28 + $0xb88] sm:$0xff] }
 0x174   : > { %1590 = vmatmul.mubr.f32.gmra.mrb[60].mxu1 %v975_v62  ;;  %v1103_v62 = vld [vmem:[%s4912_s28 + $0xb80] sm:$0xff] }
 0x175   : > { %2360 = vmatmul.mubr.f32.gmra.mrb[60].mxu0 %v979_v63  ;;  %1594 = vmatprep.mubr.f32.mxu1 %v984_v0  ;;  %v1107_v63 = vld [vmem:[%s4912_s28 + $0xba0] sm:$0xff]  ;;  %v1112_v0 = vld [vmem:[%s4912_s28 + $0xbc8] sm:$0xff] }
 0x176   : > { %2364 = vmatprep.mubr.f32.mxu0 %v988_v1  ;;  %v1116_v1 = vld [vmem:[%s4912_s28 + $0xbe8] sm:$0xff] }
 0x178   : > { %1595 = vmatmul.mubr.f32.gmra.mrb[62].mxu1 %v983_v2  ;;  %v1111_v2 = vld [vmem:[%s4912_s28 + $0xbc0] sm:$0xff] }
 0x179   : > { %2365 = vmatmul.mubr.f32.gmra.mrb[62].mxu0 %v987_v4  ;;  %1599 = vmatprep.mubr.f32.mxu1 %v992_v5  ;;  %v1115_v4 = vld [vmem:[%s4912_s28 + $0xbe0] sm:$0xff]  ;;  %v1120_v5 = vld [vmem:[%s4912_s28 + $0xc08] sm:$0xff] }
 0x17a   : > { %2369 = vmatprep.mubr.f32.mxu0 %v996_v6  ;;  %v1124_v6 = vld [vmem:[%s4912_s28 + $0xc28] sm:$0xff] }
 0x17c   : > { %1600 = vmatmul.mubr.f32.gmra.mrb[64].mxu1 %v991_v7  ;;  %v1119_v7 = vld [vmem:[%s4912_s28 + $0xc00] sm:$0xff] }
 0x17d   : > { %2370 = vmatmul.mubr.f32.gmra.mrb[64].mxu0 %v995_v8  ;;  %1604 = vmatprep.mubr.f32.mxu1 %v1000_v9  ;;  %v1123_v8 = vld [vmem:[%s4912_s28 + $0xc20] sm:$0xff]  ;;  %v1128_v9 = vld [vmem:[%s4912_s28 + $0xc48] sm:$0xff] }
 0x17e   : > { %2374 = vmatprep.mubr.f32.mxu0 %v1004_v10  ;;  %v1132_v10 = vld [vmem:[%s4912_s28 + $0xc68] sm:$0xff] }
 0x180   : > { %1605 = vmatmul.mubr.f32.gmra.mrb[66].mxu1 %v999_v11  ;;  %v1127_v11 = vld [vmem:[%s4912_s28 + $0xc40] sm:$0xff] }
 0x181   : > { %2375 = vmatmul.mubr.f32.gmra.mrb[66].mxu0 %v1003_v12  ;;  %1609 = vmatprep.mubr.f32.mxu1 %v1008_v13  ;;  %v1131_v12 = vld [vmem:[%s4912_s28 + $0xc60] sm:$0xff]  ;;  %v1136_v13 = vld [vmem:[%s4912_s28 + $0xc88] sm:$0xff] }
 0x182   : > { %2379 = vmatprep.mubr.f32.mxu0 %v1012_v14  ;;  %v1140_v14 = vld [vmem:[%s4912_s28 + $0xca8] sm:$0xff] }
 0x184   : > { %1610 = vmatmul.mubr.f32.gmra.mrb[68].mxu1 %v1007_v15  ;;  %v1135_v15 = vld [vmem:[%s4912_s28 + $0xc80] sm:$0xff] }
 0x185   : > { %2380 = vmatmul.mubr.f32.gmra.mrb[68].mxu0 %v1011_v16  ;;  %1614 = vmatprep.mubr.f32.mxu1 %v1016_v17  ;;  %v1139_v16 = vld [vmem:[%s4912_s28 + $0xca0] sm:$0xff]  ;;  %v1144_v17 = vld [vmem:[%s4912_s28 + $0xcc8] sm:$0xff] }
 0x186   : > { %2384 = vmatprep.mubr.f32.mxu0 %v1020_v18  ;;  %v1148_v18 = vld [vmem:[%s4912_s28 + $0xce8] sm:$0xff] }
 0x188   : > { %1615 = vmatmul.mubr.f32.gmra.mrb[70].mxu1 %v1015_v19  ;;  %v1143_v19 = vld [vmem:[%s4912_s28 + $0xcc0] sm:$0xff] }
 0x189   : > { %2385 = vmatmul.mubr.f32.gmra.mrb[70].mxu0 %v1019_v20  ;;  %1619 = vmatprep.mubr.f32.mxu1 %v1024_v21  ;;  %v1147_v20 = vld [vmem:[%s4912_s28 + $0xce0] sm:$0xff]  ;;  %v1152_v21 = vld [vmem:[%s4912_s28 + $0xd08] sm:$0xff] }
 0x18a   : > { %2389 = vmatprep.mubr.f32.mxu0 %v1028_v22  ;;  %v1156_v22 = vld [vmem:[%s4912_s28 + $0xd28] sm:$0xff] }
 0x18c   : > { %1620 = vmatmul.mubr.f32.gmra.mrb[72].mxu1 %v1023_v23  ;;  %v1151_v23 = vld [vmem:[%s4912_s28 + $0xd00] sm:$0xff] }
 0x18d   : > { %2390 = vmatmul.mubr.f32.gmra.mrb[72].mxu0 %v1027_v24  ;;  %1624 = vmatprep.mubr.f32.mxu1 %v1032_v25  ;;  %v1155_v24 = vld [vmem:[%s4912_s28 + $0xd20] sm:$0xff]  ;;  %v1160_v25 = vld [vmem:[%s4912_s28 + $0xd48] sm:$0xff] }
 0x18e   : > { %2394 = vmatprep.mubr.f32.mxu0 %v1036_v26  ;;  %v1164_v26 = vld [vmem:[%s4912_s28 + $0xd68] sm:$0xff] }
 0x190   : > { %1625 = vmatmul.mubr.f32.gmra.mrb[74].mxu1 %v1031_v27  ;;  %v1159_v27 = vld [vmem:[%s4912_s28 + $0xd40] sm:$0xff] }
 0x191   : > { %2395 = vmatmul.mubr.f32.gmra.mrb[74].mxu0 %v1035_v28  ;;  %1629 = vmatprep.mubr.f32.mxu1 %v1040_v29  ;;  %v1163_v28 = vld [vmem:[%s4912_s28 + $0xd60] sm:$0xff]  ;;  %v1168_v29 = vld [vmem:[%s4912_s28 + $0xd88] sm:$0xff] }
 0x192   : > { %2399 = vmatprep.mubr.f32.mxu0 %v1044_v30  ;;  %v1172_v30 = vld [vmem:[%s4912_s28 + $0xda8] sm:$0xff] }
 0x194   : > { %1630 = vmatmul.mubr.f32.gmra.mrb[76].mxu1 %v1039_v31  ;;  %v1167_v31 = vld [vmem:[%s4912_s28 + $0xd80] sm:$0xff] }
 0x195   : > { %2400 = vmatmul.mubr.f32.gmra.mrb[76].mxu0 %v1043_v32  ;;  %1634 = vmatprep.mubr.f32.mxu1 %v1048_v33  ;;  %v1171_v32 = vld [vmem:[%s4912_s28 + $0xda0] sm:$0xff]  ;;  %v1176_v33 = vld [vmem:[%s4912_s28 + $0xdc8] sm:$0xff] }
 0x196   : > { %2404 = vmatprep.mubr.f32.mxu0 %v1052_v34  ;;  %v1180_v34 = vld [vmem:[%s4912_s28 + $0xde8] sm:$0xff] }
 0x198   : > { %1635 = vmatmul.mubr.f32.gmra.mrb[78].mxu1 %v1047_v35  ;;  %v1175_v35 = vld [vmem:[%s4912_s28 + $0xdc0] sm:$0xff] }
 0x199   : > { %2405 = vmatmul.mubr.f32.gmra.mrb[78].mxu0 %v1051_v36  ;;  %1639 = vmatprep.mubr.f32.mxu1 %v1056_v37  ;;  %v1179_v36 = vld [vmem:[%s4912_s28 + $0xde0] sm:$0xff]  ;;  %v1184_v37 = vld [vmem:[%s4912_s28 + $0xe08] sm:$0xff] }
 0x19a   : > { %2409 = vmatprep.mubr.f32.mxu0 %v1060_v38  ;;  %v1188_v38 = vld [vmem:[%s4912_s28 + $0xe28] sm:$0xff] }
 0x19c   : > { %1640 = vmatmul.mubr.f32.gmra.mrb[80].mxu1 %v1055_v39  ;;  %v1183_v39 = vld [vmem:[%s4912_s28 + $0xe00] sm:$0xff] }
 0x19d   : > { %2410 = vmatmul.mubr.f32.gmra.mrb[80].mxu0 %v1059_v40  ;;  %1644 = vmatprep.mubr.f32.mxu1 %v1064_v41  ;;  %v1187_v40 = vld [vmem:[%s4912_s28 + $0xe20] sm:$0xff]  ;;  %v1192_v41 = vld [vmem:[%s4912_s28 + $0xe48] sm:$0xff] }
 0x19e   : > { %2414 = vmatprep.mubr.f32.mxu0 %v1068_v42  ;;  %v1196_v42 = vld [vmem:[%s4912_s28 + $0xe68] sm:$0xff] }
 0x1a0   : > { %1645 = vmatmul.mubr.f32.gmra.mrb[82].mxu1 %v1063_v43  ;;  %v1191_v43 = vld [vmem:[%s4912_s28 + $0xe40] sm:$0xff] }
 0x1a1   : > { %2415 = vmatmul.mubr.f32.gmra.mrb[82].mxu0 %v1067_v44  ;;  %1649 = vmatprep.mubr.f32.mxu1 %v1072_v45  ;;  %v1195_v44 = vld [vmem:[%s4912_s28 + $0xe60] sm:$0xff]  ;;  %v1200_v45 = vld [vmem:[%s4912_s28 + $0xe88] sm:$0xff] }
 0x1a2   : > { %2419 = vmatprep.mubr.f32.mxu0 %v1076_v46  ;;  %v1204_v46 = vld [vmem:[%s4912_s28 + $0xea8] sm:$0xff] }
 0x1a4   : > { %1650 = vmatmul.mubr.f32.gmra.mrb[84].mxu1 %v1071_v47  ;;  %v1199_v47 = vld [vmem:[%s4912_s28 + $0xe80] sm:$0xff] }
 0x1a5   : > { %2420 = vmatmul.mubr.f32.gmra.mrb[84].mxu0 %v1075_v48  ;;  %1654 = vmatprep.mubr.f32.mxu1 %v1080_v49  ;;  %v1203_v48 = vld [vmem:[%s4912_s28 + $0xea0] sm:$0xff]  ;;  %v1208_v49 = vld [vmem:[%s4912_s28 + $0xec8] sm:$0xff] }
 0x1a6   : > { %2424 = vmatprep.mubr.f32.mxu0 %v1084_v50  ;;  %v1212_v50 = vld [vmem:[%s4912_s28 + $0xee8] sm:$0xff] }
 0x1a8   : > { %1655 = vmatmul.mubr.f32.gmra.mrb[86].mxu1 %v1079_v51  ;;  %v1207_v51 = vld [vmem:[%s4912_s28 + $0xec0] sm:$0xff] }
 0x1a9   : > { %2425 = vmatmul.mubr.f32.gmra.mrb[86].mxu0 %v1083_v52  ;;  %1659 = vmatprep.mubr.f32.mxu1 %v1088_v3  ;;  %v1211_v52 = vld [vmem:[%s4912_s28 + $0xee0] sm:$0xff]  ;;  %v1216_v3 = vld [vmem:[%s4912_s28 + $0xf08] sm:$0xff] }
 0x1aa   : > { %2429 = vmatprep.mubr.f32.mxu0 %v1092_v53  ;;  %v1220_v53 = vld [vmem:[%s4912_s28 + $0xf28] sm:$0xff] }
 0x1ac   : > { %1660 = vmatmul.mubr.f32.gmra.mrb[88].mxu1 %v1087_v54  ;;  %v1215_v54 = vld [vmem:[%s4912_s28 + $0xf00] sm:$0xff] }
 0x1ad   : > { %2430 = vmatmul.mubr.f32.gmra.mrb[88].mxu0 %v1091_v55  ;;  %1664 = vmatprep.mubr.f32.mxu1 %v1096_v56  ;;  %v1219_v55 = vld [vmem:[%s4912_s28 + $0xf20] sm:$0xff]  ;;  %v1224_v56 = vld [vmem:[%s4912_s28 + $0xf48] sm:$0xff] }
 0x1ae   : > { %2434 = vmatprep.mubr.f32.mxu0 %v1100_v57  ;;  %v1228_v57 = vld [vmem:[%s4912_s28 + $0xf68] sm:$0xff] }
 0x1b0   : > { %1665 = vmatmul.mubr.f32.gmra.mrb[90].mxu1 %v1095_v58  ;;  %v1223_v58 = vld [vmem:[%s4912_s28 + $0xf40] sm:$0xff] }
 0x1b1   : > { %2435 = vmatmul.mubr.f32.gmra.mrb[90].mxu0 %v1099_v59  ;;  %1669 = vmatprep.mubr.f32.mxu1 %v1104_v60  ;;  %v1227_v59 = vld [vmem:[%s4912_s28 + $0xf60] sm:$0xff]  ;;  %v1232_v60 = vld [vmem:[%s4912_s28 + $0xf88] sm:$0xff] }
 0x1b2   : > { %2439 = vmatprep.mubr.f32.mxu0 %v1108_v61  ;;  %v1236_v61 = vld [vmem:[%s4912_s28 + $0xfa8] sm:$0xff] }
 0x1b4   : > { %1670 = vmatmul.mubr.f32.gmra.mrb[92].mxu1 %v1103_v62  ;;  %v1231_v62 = vld [vmem:[%s4912_s28 + $0xf80] sm:$0xff] }
 0x1b5   : > { %2440 = vmatmul.mubr.f32.gmra.mrb[92].mxu0 %v1107_v63  ;;  %1674 = vmatprep.mubr.f32.mxu1 %v1112_v0  ;;  %v1235_v63 = vld [vmem:[%s4912_s28 + $0xfa0] sm:$0xff]  ;;  %v1240_v0 = vld [vmem:[%s4912_s28 + $0xfc8] sm:$0xff] }
 0x1b6   : > { %2444 = vmatprep.mubr.f32.mxu0 %v1116_v1  ;;  %v1244_v1 = vld [vmem:[%s4912_s28 + $0xfe8] sm:$0xff] }
 0x1b8   : > { %1675 = vmatmul.mubr.f32.gmra.mrb[94].mxu1 %v1111_v2  ;;  %v1239_v2 = vld [vmem:[%s4912_s28 + $0xfc0] sm:$0xff] }
 0x1b9   : > { %2445 = vmatmul.mubr.f32.gmra.mrb[94].mxu0 %v1115_v4  ;;  %1679 = vmatprep.mubr.f32.mxu1 %v1120_v5  ;;  %v1243_v4 = vld [vmem:[%s4912_s28 + $0xfe0] sm:$0xff]  ;;  %v738_v5 = vld [vmem:[%s4912_s28 + $0x18] sm:$0xff] }
 0x1ba   : > { %2449 = vmatprep.mubr.f32.mxu0 %v1124_v6  ;;  %v742_v6 = vld [vmem:[%s4912_s28 + $0x38] sm:$0xff] }
 0x1bc   : > { %1680 = vmatmul.mubr.f32.gmra.mrb[96].mxu1 %v1119_v7  ;;  %v737_v7 = vld [vmem:[%s4912_s28 + $0x10] sm:$0xff] }
 0x1bd   : > { %2450 = vmatmul.mubr.f32.gmra.mrb[96].mxu0 %v1123_v8  ;;  %1684 = vmatprep.mubr.f32.mxu1 %v1128_v9  ;;  %v741_v8 = vld [vmem:[%s4912_s28 + $0x30] sm:$0xff]  ;;  %v746_v9 = vld [vmem:[%s4912_s28 + $0x58] sm:$0xff] }
 0x1be   : > { %2454 = vmatprep.mubr.f32.mxu0 %v1132_v10  ;;  %v750_v10 = vld [vmem:[%s4912_s28 + $0x78] sm:$0xff] }
 0x1c0   : > { %1685 = vmatmul.mubr.f32.gmra.mrb[98].mxu1 %v1127_v11  ;;  %v745_v11 = vld [vmem:[%s4912_s28 + $0x50] sm:$0xff] }
 0x1c1   : > { %2455 = vmatmul.mubr.f32.gmra.mrb[98].mxu0 %v1131_v12  ;;  %1689 = vmatprep.mubr.f32.mxu1 %v1136_v13  ;;  %v749_v12 = vld [vmem:[%s4912_s28 + $0x70] sm:$0xff]  ;;  %v754_v13 = vld [vmem:[%s4912_s28 + $0x98] sm:$0xff] }
 0x1c2   : > { %2459 = vmatprep.mubr.f32.mxu0 %v1140_v14  ;;  %v758_v14 = vld [vmem:[%s4912_s28 + $0xb8] sm:$0xff] }
 0x1c4   : > { %1690 = vmatmul.mubr.f32.gmra.mrb[100].mxu1 %v1135_v15  ;;  %v753_v15 = vld [vmem:[%s4912_s28 + $0x90] sm:$0xff] }
 0x1c5   : > { %2460 = vmatmul.mubr.f32.gmra.mrb[100].mxu0 %v1139_v16  ;;  %1694 = vmatprep.mubr.f32.mxu1 %v1144_v17  ;;  %v757_v16 = vld [vmem:[%s4912_s28 + $0xb0] sm:$0xff]  ;;  %v762_v17 = vld [vmem:[%s4912_s28 + $0xd8] sm:$0xff] }
 0x1c6   : > { %2464 = vmatprep.mubr.f32.mxu0 %v1148_v18  ;;  %v766_v18 = vld [vmem:[%s4912_s28 + $0xf8] sm:$0xff] }
 0x1c8   : > { %1695 = vmatmul.mubr.f32.gmra.mrb[102].mxu1 %v1143_v19  ;;  %v761_v19 = vld [vmem:[%s4912_s28 + $0xd0] sm:$0xff] }
 0x1c9   : > { %2465 = vmatmul.mubr.f32.gmra.mrb[102].mxu0 %v1147_v20  ;;  %1699 = vmatprep.mubr.f32.mxu1 %v1152_v21  ;;  %v765_v20 = vld [vmem:[%s4912_s28 + $0xf0] sm:$0xff]  ;;  %v770_v21 = vld [vmem:[%s4912_s28 + $0x118] sm:$0xff] }
 0x1ca   : > { %2469 = vmatprep.mubr.f32.mxu0 %v1156_v22  ;;  %v774_v22 = vld [vmem:[%s4912_s28 + $0x138] sm:$0xff] }
 0x1cc   : > { %1700 = vmatmul.mubr.f32.gmra.mrb[104].mxu1 %v1151_v23  ;;  %v769_v23 = vld [vmem:[%s4912_s28 + $0x110] sm:$0xff] }
 0x1cd   : > { %2470 = vmatmul.mubr.f32.gmra.mrb[104].mxu0 %v1155_v24  ;;  %1704 = vmatprep.mubr.f32.mxu1 %v1160_v25  ;;  %v773_v24 = vld [vmem:[%s4912_s28 + $0x130] sm:$0xff]  ;;  %v778_v25 = vld [vmem:[%s4912_s28 + $0x158] sm:$0xff] }
 0x1ce   : > { %2474 = vmatprep.mubr.f32.mxu0 %v1164_v26  ;;  %v782_v26 = vld [vmem:[%s4912_s28 + $0x178] sm:$0xff] }
 0x1d0   : > { %1705 = vmatmul.mubr.f32.gmra.mrb[106].mxu1 %v1159_v27  ;;  %v777_v27 = vld [vmem:[%s4912_s28 + $0x150] sm:$0xff] }
 0x1d1   : > { %2475 = vmatmul.mubr.f32.gmra.mrb[106].mxu0 %v1163_v28  ;;  %1709 = vmatprep.mubr.f32.mxu1 %v1168_v29  ;;  %v781_v28 = vld [vmem:[%s4912_s28 + $0x170] sm:$0xff]  ;;  %v786_v29 = vld [vmem:[%s4912_s28 + $0x198] sm:$0xff] }
 0x1d2   : > { %2479 = vmatprep.mubr.f32.mxu0 %v1172_v30  ;;  %v790_v30 = vld [vmem:[%s4912_s28 + $0x1b8] sm:$0xff] }
 0x1d4   : > { %1710 = vmatmul.mubr.f32.gmra.mrb[108].mxu1 %v1167_v31  ;;  %v785_v31 = vld [vmem:[%s4912_s28 + $0x190] sm:$0xff] }
 0x1d5   : > { %2480 = vmatmul.mubr.f32.gmra.mrb[108].mxu0 %v1171_v32  ;;  %1714 = vmatprep.mubr.f32.mxu1 %v1176_v33  ;;  %v789_v32 = vld [vmem:[%s4912_s28 + $0x1b0] sm:$0xff]  ;;  %v794_v33 = vld [vmem:[%s4912_s28 + $0x1d8] sm:$0xff] }
 0x1d6   : > { %2484 = vmatprep.mubr.f32.mxu0 %v1180_v34  ;;  %v798_v34 = vld [vmem:[%s4912_s28 + $0x1f8] sm:$0xff] }
 0x1d8   : > { %1715 = vmatmul.mubr.f32.gmra.mrb[110].mxu1 %v1175_v35  ;;  %v793_v35 = vld [vmem:[%s4912_s28 + $0x1d0] sm:$0xff] }
 0x1d9   : > { %2485 = vmatmul.mubr.f32.gmra.mrb[110].mxu0 %v1179_v36  ;;  %1719 = vmatprep.mubr.f32.mxu1 %v1184_v37  ;;  %v797_v36 = vld [vmem:[%s4912_s28 + $0x1f0] sm:$0xff]  ;;  %v802_v37 = vld [vmem:[%s4912_s28 + $0x218] sm:$0xff] }
 0x1da   : > { %2489 = vmatprep.mubr.f32.mxu0 %v1188_v38  ;;  %v806_v38 = vld [vmem:[%s4912_s28 + $0x238] sm:$0xff] }
 0x1dc   : > { %1720 = vmatmul.mubr.f32.gmra.mrb[112].mxu1 %v1183_v39  ;;  %v801_v39 = vld [vmem:[%s4912_s28 + $0x210] sm:$0xff] }
 0x1dd   : > { %2490 = vmatmul.mubr.f32.gmra.mrb[112].mxu0 %v1187_v40  ;;  %1724 = vmatprep.mubr.f32.mxu1 %v1192_v41  ;;  %v805_v40 = vld [vmem:[%s4912_s28 + $0x230] sm:$0xff]  ;;  %v810_v41 = vld [vmem:[%s4912_s28 + $0x258] sm:$0xff] }
 0x1de   : > { %2494 = vmatprep.mubr.f32.mxu0 %v1196_v42  ;;  %v814_v42 = vld [vmem:[%s4912_s28 + $0x278] sm:$0xff] }
 0x1e0   : > { %1725 = vmatmul.mubr.f32.gmra.mrb[114].mxu1 %v1191_v43  ;;  %v809_v43 = vld [vmem:[%s4912_s28 + $0x250] sm:$0xff] }
 0x1e1   : > { %2495 = vmatmul.mubr.f32.gmra.mrb[114].mxu0 %v1195_v44  ;;  %1729 = vmatprep.mubr.f32.mxu1 %v1200_v45  ;;  %v813_v44 = vld [vmem:[%s4912_s28 + $0x270] sm:$0xff]  ;;  %v818_v45 = vld [vmem:[%s4912_s28 + $0x298] sm:$0xff] }
 0x1e2   : > { %2499 = vmatprep.mubr.f32.mxu0 %v1204_v46  ;;  %v822_v46 = vld [vmem:[%s4912_s28 + $0x2b8] sm:$0xff] }
 0x1e4   : > { %1730 = vmatmul.mubr.f32.gmra.mrb[116].mxu1 %v1199_v47  ;;  %v817_v47 = vld [vmem:[%s4912_s28 + $0x290] sm:$0xff] }
 0x1e5   : > { %2500 = vmatmul.mubr.f32.gmra.mrb[116].mxu0 %v1203_v48  ;;  %1734 = vmatprep.mubr.f32.mxu1 %v1208_v49  ;;  %v821_v48 = vld [vmem:[%s4912_s28 + $0x2b0] sm:$0xff]  ;;  %v826_v49 = vld [vmem:[%s4912_s28 + $0x2d8] sm:$0xff] }
 0x1e6   : > { %2504 = vmatprep.mubr.f32.mxu0 %v1212_v50  ;;  %v830_v50 = vld [vmem:[%s4912_s28 + $0x2f8] sm:$0xff] }
 0x1e8   : > { %1735 = vmatmul.mubr.f32.gmra.mrb[118].mxu1 %v1207_v51  ;;  %v825_v51 = vld [vmem:[%s4912_s28 + $0x2d0] sm:$0xff] }
 0x1e9   : > { %2505 = vmatmul.mubr.f32.gmra.mrb[118].mxu0 %v1211_v52  ;;  %1739 = vmatprep.mubr.f32.mxu1 %v1216_v3  ;;  %v829_v52 = vld [vmem:[%s4912_s28 + $0x2f0] sm:$0xff]  ;;  %v834_v3 = vld [vmem:[%s4912_s28 + $0x318] sm:$0xff] }
 0x1ea   : > { %2509 = vmatprep.mubr.f32.mxu0 %v1220_v53  ;;  %v838_v53 = vld [vmem:[%s4912_s28 + $0x338] sm:$0xff] }
 0x1ec   : > { %1740 = vmatmul.mubr.f32.gmra.mrb[120].mxu1 %v1215_v54  ;;  %v833_v54 = vld [vmem:[%s4912_s28 + $0x310] sm:$0xff] }
 0x1ed   : > { %2510 = vmatmul.mubr.f32.gmra.mrb[120].mxu0 %v1219_v55  ;;  %1744 = vmatprep.mubr.f32.mxu1 %v1224_v56  ;;  %v837_v55 = vld [vmem:[%s4912_s28 + $0x330] sm:$0xff]  ;;  %v842_v56 = vld [vmem:[%s4912_s28 + $0x358] sm:$0xff] }
 0x1ee   : > { %2514 = vmatprep.mubr.f32.mxu0 %v1228_v57  ;;  %v846_v57 = vld [vmem:[%s4912_s28 + $0x378] sm:$0xff] }
 0x1f0   : > { %1745 = vmatmul.mubr.f32.gmra.mrb[122].mxu1 %v1223_v58  ;;  %v841_v58 = vld [vmem:[%s4912_s28 + $0x350] sm:$0xff] }
 0x1f1   : > { %2515 = vmatmul.mubr.f32.gmra.mrb[122].mxu0 %v1227_v59  ;;  %1749 = vmatprep.mubr.f32.mxu1 %v1232_v60  ;;  %v845_v59 = vld [vmem:[%s4912_s28 + $0x370] sm:$0xff]  ;;  %v850_v60 = vld [vmem:[%s4912_s28 + $0x398] sm:$0xff] }
 0x1f2   : > { %2519 = vmatprep.mubr.f32.mxu0 %v1236_v61  ;;  %v854_v61 = vld [vmem:[%s4912_s28 + $0x3b8] sm:$0xff] }
 0x1f4   : > { %1750 = vmatmul.mubr.f32.gmra.mrb[124].mxu1 %v1231_v62  ;;  %v849_v62 = vld [vmem:[%s4912_s28 + $0x390] sm:$0xff] }
 0x1f5   : > { %2520 = vmatmul.mubr.f32.gmra.mrb[124].mxu0 %v1235_v63  ;;  %1754 = vmatprep.mubr.f32.mxu1 %v1240_v0  ;;  %v853_v63 = vld [vmem:[%s4912_s28 + $0x3b0] sm:$0xff]  ;;  %v858_v0 = vld [vmem:[%s4912_s28 + $0x3d8] sm:$0xff] }
 0x1f6   : > { %2524 = vmatprep.mubr.f32.mxu0 %v1244_v1  ;;  %v862_v1 = vld [vmem:[%s4912_s28 + $0x3f8] sm:$0xff] }
 0x1f8   : > { %1755 = vmatmul.mubr.f32.gmra.mrb[126].mxu1 %v1239_v2  ;;  %v857_v2 = vld [vmem:[%s4912_s28 + $0x3d0] sm:$0xff] }
 0x1f9   : > { %2525 = vmatmul.mubr.f32.gmra.mrb[126].mxu0 %v1243_v4  ;;  %1824 = vmatprep.mubr.f32.mxu1 %v738_v5  ;;  %v861_v4 = vld [vmem:[%s4912_s28 + $0x3f0] sm:$0xff]  ;;  %v866_v5 = vld [vmem:[%s4912_s28 + $0x418] sm:$0xff] }
 0x1fa   : > { %2594 = vmatprep.mubr.f32.mxu0 %v742_v6  ;;  %v870_v6 = vld [vmem:[%s4912_s28 + $0x438] sm:$0xff] }
 0x1fc   : > { %1825 = vmatmul.mubr.f32.vlgmr.msra.gmra.mrb[0].mxu1 %v737_v7  ;;  %v865_v7 = vld [vmem:[%s4912_s28 + $0x410] sm:$0xff] }
 0x1fd   : > { %2595 = vmatmul.mubr.f32.vlgmr.msra.gmra.mrb[0].mxu0 %v741_v8  ;;  %1829 = vmatprep.mubr.f32.mxu1 %v746_v9  ;;  %v869_v8 = vld [vmem:[%s4912_s28 + $0x430] sm:$0xff]  ;;  %v874_v9 = vld [vmem:[%s4912_s28 + $0x458] sm:$0xff] }
 0x1fe   : > { %2599 = vmatprep.mubr.f32.mxu0 %v750_v10  ;;  %v878_v10 = vld [vmem:[%s4912_s28 + $0x478] sm:$0xff] }
 0x200   : > { %1830 = vmatmul.mubr.f32.gmra.mrb[2].mxu1 %v745_v11  ;;  %v873_v11 = vld [vmem:[%s4912_s28 + $0x450] sm:$0xff] }
 0x201   : > { %2600 = vmatmul.mubr.f32.gmra.mrb[2].mxu0 %v749_v12  ;;  %1834 = vmatprep.mubr.f32.mxu1 %v754_v13  ;;  %v877_v12 = vld [vmem:[%s4912_s28 + $0x470] sm:$0xff]  ;;  %v882_v13 = vld [vmem:[%s4912_s28 + $0x498] sm:$0xff] }
 0x202   : > { %2604 = vmatprep.mubr.f32.mxu0 %v758_v14  ;;  %v886_v14 = vld [vmem:[%s4912_s28 + $0x4b8] sm:$0xff] }
 0x204   : > { %1835 = vmatmul.mubr.f32.gmra.mrb[4].mxu1 %v753_v15  ;;  %v881_v15 = vld [vmem:[%s4912_s28 + $0x490] sm:$0xff] }
 0x205   : > { %2605 = vmatmul.mubr.f32.gmra.mrb[4].mxu0 %v757_v16  ;;  %1839 = vmatprep.mubr.f32.mxu1 %v762_v17  ;;  %v885_v16 = vld [vmem:[%s4912_s28 + $0x4b0] sm:$0xff]  ;;  %v890_v17 = vld [vmem:[%s4912_s28 + $0x4d8] sm:$0xff] }
 0x206   : > { %2609 = vmatprep.mubr.f32.mxu0 %v766_v18  ;;  %v894_v18 = vld [vmem:[%s4912_s28 + $0x4f8] sm:$0xff] }
 0x208   : > { %1840 = vmatmul.mubr.f32.gmra.mrb[6].mxu1 %v761_v19  ;;  %v889_v19 = vld [vmem:[%s4912_s28 + $0x4d0] sm:$0xff] }
 0x209   : > { %2610 = vmatmul.mubr.f32.gmra.mrb[6].mxu0 %v765_v20  ;;  %1844 = vmatprep.mubr.f32.mxu1 %v770_v21  ;;  %v893_v20 = vld [vmem:[%s4912_s28 + $0x4f0] sm:$0xff]  ;;  %v898_v21 = vld [vmem:[%s4912_s28 + $0x518] sm:$0xff] }
 0x20a   : > { %2614 = vmatprep.mubr.f32.mxu0 %v774_v22  ;;  %v902_v22 = vld [vmem:[%s4912_s28 + $0x538] sm:$0xff] }
 0x20c   : > { %1845 = vmatmul.mubr.f32.gmra.mrb[8].mxu1 %v769_v23  ;;  %v897_v23 = vld [vmem:[%s4912_s28 + $0x510] sm:$0xff] }
 0x20d   : > { %2615 = vmatmul.mubr.f32.gmra.mrb[8].mxu0 %v773_v24  ;;  %1849 = vmatprep.mubr.f32.mxu1 %v778_v25  ;;  %v901_v24 = vld [vmem:[%s4912_s28 + $0x530] sm:$0xff]  ;;  %v906_v25 = vld [vmem:[%s4912_s28 + $0x558] sm:$0xff] }
 0x20e   : > { %2619 = vmatprep.mubr.f32.mxu0 %v782_v26  ;;  %v910_v26 = vld [vmem:[%s4912_s28 + $0x578] sm:$0xff] }
 0x210   : > { %1850 = vmatmul.mubr.f32.gmra.mrb[10].mxu1 %v777_v27  ;;  %v905_v27 = vld [vmem:[%s4912_s28 + $0x550] sm:$0xff] }
 0x211   : > { %2620 = vmatmul.mubr.f32.gmra.mrb[10].mxu0 %v781_v28  ;;  %1854 = vmatprep.mubr.f32.mxu1 %v786_v29  ;;  %v909_v28 = vld [vmem:[%s4912_s28 + $0x570] sm:$0xff]  ;;  %v914_v29 = vld [vmem:[%s4912_s28 + $0x598] sm:$0xff] }
 0x212   : > { %2624 = vmatprep.mubr.f32.mxu0 %v790_v30  ;;  %v918_v30 = vld [vmem:[%s4912_s28 + $0x5b8] sm:$0xff] }
 0x214   : > { %1855 = vmatmul.mubr.f32.gmra.mrb[12].mxu1 %v785_v31  ;;  %v913_v31 = vld [vmem:[%s4912_s28 + $0x590] sm:$0xff] }
 0x215   : > { %2625 = vmatmul.mubr.f32.gmra.mrb[12].mxu0 %v789_v32  ;;  %1859 = vmatprep.mubr.f32.mxu1 %v794_v33  ;;  %v917_v32 = vld [vmem:[%s4912_s28 + $0x5b0] sm:$0xff]  ;;  %v922_v33 = vld [vmem:[%s4912_s28 + $0x5d8] sm:$0xff] }
 0x216   : > { %2629 = vmatprep.mubr.f32.mxu0 %v798_v34  ;;  %v926_v34 = vld [vmem:[%s4912_s28 + $0x5f8] sm:$0xff] }
 0x218   : > { %1860 = vmatmul.mubr.f32.gmra.mrb[14].mxu1 %v793_v35  ;;  %v921_v35 = vld [vmem:[%s4912_s28 + $0x5d0] sm:$0xff] }
 0x219   : > { %2630 = vmatmul.mubr.f32.gmra.mrb[14].mxu0 %v797_v36  ;;  %1864 = vmatprep.mubr.f32.mxu1 %v802_v37  ;;  %v925_v36 = vld [vmem:[%s4912_s28 + $0x5f0] sm:$0xff]  ;;  %v930_v37 = vld [vmem:[%s4912_s28 + $0x618] sm:$0xff] }
 0x21a   : > { %2634 = vmatprep.mubr.f32.mxu0 %v806_v38  ;;  %v934_v38 = vld [vmem:[%s4912_s28 + $0x638] sm:$0xff] }
 0x21c   : > { %1865 = vmatmul.mubr.f32.gmra.mrb[16].mxu1 %v801_v39  ;;  %v929_v39 = vld [vmem:[%s4912_s28 + $0x610] sm:$0xff] }
 0x21d   : > { %2635 = vmatmul.mubr.f32.gmra.mrb[16].mxu0 %v805_v40  ;;  %1869 = vmatprep.mubr.f32.mxu1 %v810_v41  ;;  %v933_v40 = vld [vmem:[%s4912_s28 + $0x630] sm:$0xff]  ;;  %v938_v41 = vld [vmem:[%s4912_s28 + $0x658] sm:$0xff] }
 0x21e   : > { %2639 = vmatprep.mubr.f32.mxu0 %v814_v42  ;;  %v942_v42 = vld [vmem:[%s4912_s28 + $0x678] sm:$0xff] }
 0x220   : > { %1870 = vmatmul.mubr.f32.gmra.mrb[18].mxu1 %v809_v43  ;;  %v937_v43 = vld [vmem:[%s4912_s28 + $0x650] sm:$0xff] }
 0x221   : > { %2640 = vmatmul.mubr.f32.gmra.mrb[18].mxu0 %v813_v44  ;;  %1874 = vmatprep.mubr.f32.mxu1 %v818_v45  ;;  %v941_v44 = vld [vmem:[%s4912_s28 + $0x670] sm:$0xff]  ;;  %v946_v45 = vld [vmem:[%s4912_s28 + $0x698] sm:$0xff] }
 0x222   : > { %2644 = vmatprep.mubr.f32.mxu0 %v822_v46  ;;  %v950_v46 = vld [vmem:[%s4912_s28 + $0x6b8] sm:$0xff] }
 0x224   : > { %1875 = vmatmul.mubr.f32.gmra.mrb[20].mxu1 %v817_v47  ;;  %v945_v47 = vld [vmem:[%s4912_s28 + $0x690] sm:$0xff] }
 0x225   : > { %2645 = vmatmul.mubr.f32.gmra.mrb[20].mxu0 %v821_v48  ;;  %1879 = vmatprep.mubr.f32.mxu1 %v826_v49  ;;  %v949_v48 = vld [vmem:[%s4912_s28 + $0x6b0] sm:$0xff]  ;;  %v954_v49 = vld [vmem:[%s4912_s28 + $0x6d8] sm:$0xff] }
 0x226   : > { %2649 = vmatprep.mubr.f32.mxu0 %v830_v50  ;;  %v958_v50 = vld [vmem:[%s4912_s28 + $0x6f8] sm:$0xff] }
 0x228   : > { %1880 = vmatmul.mubr.f32.gmra.mrb[22].mxu1 %v825_v51  ;;  %v953_v51 = vld [vmem:[%s4912_s28 + $0x6d0] sm:$0xff] }
 0x229   : > { %2650 = vmatmul.mubr.f32.gmra.mrb[22].mxu0 %v829_v52  ;;  %1884 = vmatprep.mubr.f32.mxu1 %v834_v3  ;;  %v957_v52 = vld [vmem:[%s4912_s28 + $0x6f0] sm:$0xff]  ;;  %v962_v3 = vld [vmem:[%s4912_s28 + $0x718] sm:$0xff] }
 0x22a   : > { %2654 = vmatprep.mubr.f32.mxu0 %v838_v53  ;;  %v966_v53 = vld [vmem:[%s4912_s28 + $0x738] sm:$0xff] }
 0x22c   : > { %1885 = vmatmul.mubr.f32.gmra.mrb[24].mxu1 %v833_v54  ;;  %v961_v54 = vld [vmem:[%s4912_s28 + $0x710] sm:$0xff] }
 0x22d   : > { %2655 = vmatmul.mubr.f32.gmra.mrb[24].mxu0 %v837_v55  ;;  %1889 = vmatprep.mubr.f32.mxu1 %v842_v56  ;;  %v965_v55 = vld [vmem:[%s4912_s28 + $0x730] sm:$0xff]  ;;  %v970_v56 = vld [vmem:[%s4912_s28 + $0x758] sm:$0xff] }
 0x22e   : > { %2659 = vmatprep.mubr.f32.mxu0 %v846_v57  ;;  %v974_v57 = vld [vmem:[%s4912_s28 + $0x778] sm:$0xff] }
 0x230   : > { %1890 = vmatmul.mubr.f32.gmra.mrb[26].mxu1 %v841_v58  ;;  %v969_v58 = vld [vmem:[%s4912_s28 + $0x750] sm:$0xff] }
 0x231   : > { %2660 = vmatmul.mubr.f32.gmra.mrb[26].mxu0 %v845_v59  ;;  %1894 = vmatprep.mubr.f32.mxu1 %v850_v60  ;;  %v973_v59 = vld [vmem:[%s4912_s28 + $0x770] sm:$0xff]  ;;  %v978_v60 = vld [vmem:[%s4912_s28 + $0x798] sm:$0xff] }
 0x232   : > { %2664 = vmatprep.mubr.f32.mxu0 %v854_v61  ;;  %v982_v61 = vld [vmem:[%s4912_s28 + $0x7b8] sm:$0xff] }
 0x234   : > { %1895 = vmatmul.mubr.f32.gmra.mrb[28].mxu1 %v849_v62  ;;  %v977_v62 = vld [vmem:[%s4912_s28 + $0x790] sm:$0xff] }
 0x235   : > { %2665 = vmatmul.mubr.f32.gmra.mrb[28].mxu0 %v853_v63  ;;  %1899 = vmatprep.mubr.f32.mxu1 %v858_v0  ;;  %v981_v63 = vld [vmem:[%s4912_s28 + $0x7b0] sm:$0xff]  ;;  %v986_v0 = vld [vmem:[%s4912_s28 + $0x7d8] sm:$0xff] }
 0x236   : > { %2669 = vmatprep.mubr.f32.mxu0 %v862_v1  ;;  %v990_v1 = vld [vmem:[%s4912_s28 + $0x7f8] sm:$0xff] }
 0x238   : > { %1900 = vmatmul.mubr.f32.gmra.mrb[30].mxu1 %v857_v2  ;;  %v985_v2 = vld [vmem:[%s4912_s28 + $0x7d0] sm:$0xff] }
 0x239   : > { %2670 = vmatmul.mubr.f32.gmra.mrb[30].mxu0 %v861_v4  ;;  %1904 = vmatprep.mubr.f32.mxu1 %v866_v5  ;;  %v989_v4 = vld [vmem:[%s4912_s28 + $0x7f0] sm:$0xff]  ;;  %v994_v5 = vld [vmem:[%s4912_s28 + $0x818] sm:$0xff] }
 0x23a   : > { %2674 = vmatprep.mubr.f32.mxu0 %v870_v6  ;;  %v998_v6 = vld [vmem:[%s4912_s28 + $0x838] sm:$0xff] }
 0x23c   : > { %1905 = vmatmul.mubr.f32.gmra.mrb[32].mxu1 %v865_v7  ;;  %v993_v7 = vld [vmem:[%s4912_s28 + $0x810] sm:$0xff] }
 0x23d   : > { %2675 = vmatmul.mubr.f32.gmra.mrb[32].mxu0 %v869_v8  ;;  %1909 = vmatprep.mubr.f32.mxu1 %v874_v9  ;;  %v997_v8 = vld [vmem:[%s4912_s28 + $0x830] sm:$0xff]  ;;  %v1002_v9 = vld [vmem:[%s4912_s28 + $0x858] sm:$0xff] }
 0x23e   : > { %2679 = vmatprep.mubr.f32.mxu0 %v878_v10  ;;  %v1006_v10 = vld [vmem:[%s4912_s28 + $0x878] sm:$0xff] }
 0x240   : > { %1910 = vmatmul.mubr.f32.gmra.mrb[34].mxu1 %v873_v11  ;;  %v1001_v11 = vld [vmem:[%s4912_s28 + $0x850] sm:$0xff] }
 0x241   : > { %2680 = vmatmul.mubr.f32.gmra.mrb[34].mxu0 %v877_v12  ;;  %1914 = vmatprep.mubr.f32.mxu1 %v882_v13  ;;  %v1005_v12 = vld [vmem:[%s4912_s28 + $0x870] sm:$0xff]  ;;  %v1010_v13 = vld [vmem:[%s4912_s28 + $0x898] sm:$0xff] }
 0x242   : > { %2684 = vmatprep.mubr.f32.mxu0 %v886_v14  ;;  %v1014_v14 = vld [vmem:[%s4912_s28 + $0x8b8] sm:$0xff] }
 0x244   : > { %1915 = vmatmul.mubr.f32.gmra.mrb[36].mxu1 %v881_v15  ;;  %v1009_v15 = vld [vmem:[%s4912_s28 + $0x890] sm:$0xff] }
 0x245   : > { %2685 = vmatmul.mubr.f32.gmra.mrb[36].mxu0 %v885_v16  ;;  %1919 = vmatprep.mubr.f32.mxu1 %v890_v17  ;;  %v1013_v16 = vld [vmem:[%s4912_s28 + $0x8b0] sm:$0xff]  ;;  %v1018_v17 = vld [vmem:[%s4912_s28 + $0x8d8] sm:$0xff] }
 0x246   : > { %2689 = vmatprep.mubr.f32.mxu0 %v894_v18  ;;  %v1022_v18 = vld [vmem:[%s4912_s28 + $0x8f8] sm:$0xff] }
 0x248   : > { %1920 = vmatmul.mubr.f32.gmra.mrb[38].mxu1 %v889_v19  ;;  %v1017_v19 = vld [vmem:[%s4912_s28 + $0x8d0] sm:$0xff] }
 0x249   : > { %2690 = vmatmul.mubr.f32.gmra.mrb[38].mxu0 %v893_v20  ;;  %1924 = vmatprep.mubr.f32.mxu1 %v898_v21  ;;  %v1021_v20 = vld [vmem:[%s4912_s28 + $0x8f0] sm:$0xff]  ;;  %v1026_v21 = vld [vmem:[%s4912_s28 + $0x918] sm:$0xff] }
 0x24a   : > { %2694 = vmatprep.mubr.f32.mxu0 %v902_v22  ;;  %v1030_v22 = vld [vmem:[%s4912_s28 + $0x938] sm:$0xff] }
 0x24c   : > { %1925 = vmatmul.mubr.f32.gmra.mrb[40].mxu1 %v897_v23  ;;  %v1025_v23 = vld [vmem:[%s4912_s28 + $0x910] sm:$0xff] }
 0x24d   : > { %2695 = vmatmul.mubr.f32.gmra.mrb[40].mxu0 %v901_v24  ;;  %1929 = vmatprep.mubr.f32.mxu1 %v906_v25  ;;  %v1029_v24 = vld [vmem:[%s4912_s28 + $0x930] sm:$0xff]  ;;  %v1034_v25 = vld [vmem:[%s4912_s28 + $0x958] sm:$0xff] }
 0x24e   : > { %2699 = vmatprep.mubr.f32.mxu0 %v910_v26  ;;  %v1038_v26 = vld [vmem:[%s4912_s28 + $0x978] sm:$0xff] }
 0x250   : > { %1930 = vmatmul.mubr.f32.gmra.mrb[42].mxu1 %v905_v27  ;;  %v1033_v27 = vld [vmem:[%s4912_s28 + $0x950] sm:$0xff] }
 0x251   : > { %2700 = vmatmul.mubr.f32.gmra.mrb[42].mxu0 %v909_v28  ;;  %1934 = vmatprep.mubr.f32.mxu1 %v914_v29  ;;  %v1037_v28 = vld [vmem:[%s4912_s28 + $0x970] sm:$0xff]  ;;  %v1042_v29 = vld [vmem:[%s4912_s28 + $0x998] sm:$0xff] }
 0x252   : > { %2704 = vmatprep.mubr.f32.mxu0 %v918_v30  ;;  %v1046_v30 = vld [vmem:[%s4912_s28 + $0x9b8] sm:$0xff] }
 0x254   : > { %1935 = vmatmul.mubr.f32.gmra.mrb[44].mxu1 %v913_v31  ;;  %v1041_v31 = vld [vmem:[%s4912_s28 + $0x990] sm:$0xff] }
 0x255   : > { %2705 = vmatmul.mubr.f32.gmra.mrb[44].mxu0 %v917_v32  ;;  %1939 = vmatprep.mubr.f32.mxu1 %v922_v33  ;;  %v1045_v32 = vld [vmem:[%s4912_s28 + $0x9b0] sm:$0xff]  ;;  %v1050_v33 = vld [vmem:[%s4912_s28 + $0x9d8] sm:$0xff] }
 0x256   : > { %2709 = vmatprep.mubr.f32.mxu0 %v926_v34  ;;  %v1054_v34 = vld [vmem:[%s4912_s28 + $0x9f8] sm:$0xff] }
 0x258   : > { %1940 = vmatmul.mubr.f32.gmra.mrb[46].mxu1 %v921_v35  ;;  %v1049_v35 = vld [vmem:[%s4912_s28 + $0x9d0] sm:$0xff] }
 0x259   : > { %2710 = vmatmul.mubr.f32.gmra.mrb[46].mxu0 %v925_v36  ;;  %1944 = vmatprep.mubr.f32.mxu1 %v930_v37  ;;  %v1053_v36 = vld [vmem:[%s4912_s28 + $0x9f0] sm:$0xff]  ;;  %v1058_v37 = vld [vmem:[%s4912_s28 + $0xa18] sm:$0xff] }
 0x25a   : > { %2714 = vmatprep.mubr.f32.mxu0 %v934_v38  ;;  %v1062_v38 = vld [vmem:[%s4912_s28 + $0xa38] sm:$0xff] }
 0x25c   : > { %1945 = vmatmul.mubr.f32.gmra.mrb[48].mxu1 %v929_v39  ;;  %v1057_v39 = vld [vmem:[%s4912_s28 + $0xa10] sm:$0xff] }
 0x25d   : > { %2715 = vmatmul.mubr.f32.gmra.mrb[48].mxu0 %v933_v40  ;;  %1949 = vmatprep.mubr.f32.mxu1 %v938_v41  ;;  %v1061_v40 = vld [vmem:[%s4912_s28 + $0xa30] sm:$0xff]  ;;  %v1066_v41 = vld [vmem:[%s4912_s28 + $0xa58] sm:$0xff] }
 0x25e   : > { %2719 = vmatprep.mubr.f32.mxu0 %v942_v42  ;;  %v1070_v42 = vld [vmem:[%s4912_s28 + $0xa78] sm:$0xff] }
 0x260   : > { %1950 = vmatmul.mubr.f32.gmra.mrb[50].mxu1 %v937_v43  ;;  %v1065_v43 = vld [vmem:[%s4912_s28 + $0xa50] sm:$0xff] }
 0x261   : > { %2720 = vmatmul.mubr.f32.gmra.mrb[50].mxu0 %v941_v44  ;;  %1954 = vmatprep.mubr.f32.mxu1 %v946_v45  ;;  %v1069_v44 = vld [vmem:[%s4912_s28 + $0xa70] sm:$0xff]  ;;  %v1074_v45 = vld [vmem:[%s4912_s28 + $0xa98] sm:$0xff] }
 0x262   : > { %2724 = vmatprep.mubr.f32.mxu0 %v950_v46  ;;  %v1078_v46 = vld [vmem:[%s4912_s28 + $0xab8] sm:$0xff] }
 0x264   : > { %1955 = vmatmul.mubr.f32.gmra.mrb[52].mxu1 %v945_v47  ;;  %v1073_v47 = vld [vmem:[%s4912_s28 + $0xa90] sm:$0xff] }
 0x265   : > { %2725 = vmatmul.mubr.f32.gmra.mrb[52].mxu0 %v949_v48  ;;  %1959 = vmatprep.mubr.f32.mxu1 %v954_v49  ;;  %v1077_v48 = vld [vmem:[%s4912_s28 + $0xab0] sm:$0xff]  ;;  %v1082_v49 = vld [vmem:[%s4912_s28 + $0xad8] sm:$0xff] }
 0x266   : > { %2729 = vmatprep.mubr.f32.mxu0 %v958_v50  ;;  %v1086_v50 = vld [vmem:[%s4912_s28 + $0xaf8] sm:$0xff] }
 0x268   : > { %1960 = vmatmul.mubr.f32.gmra.mrb[54].mxu1 %v953_v51  ;;  %v1081_v51 = vld [vmem:[%s4912_s28 + $0xad0] sm:$0xff] }
 0x269   : > { %2730 = vmatmul.mubr.f32.gmra.mrb[54].mxu0 %v957_v52  ;;  %1964 = vmatprep.mubr.f32.mxu1 %v962_v3  ;;  %v1085_v52 = vld [vmem:[%s4912_s28 + $0xaf0] sm:$0xff]  ;;  %v1090_v3 = vld [vmem:[%s4912_s28 + $0xb18] sm:$0xff] }
 0x26a   : > { %2734 = vmatprep.mubr.f32.mxu0 %v966_v53  ;;  %v1094_v53 = vld [vmem:[%s4912_s28 + $0xb38] sm:$0xff] }
 0x26c   : > { %1965 = vmatmul.mubr.f32.gmra.mrb[56].mxu1 %v961_v54  ;;  %v1089_v54 = vld [vmem:[%s4912_s28 + $0xb10] sm:$0xff] }
 0x26d   : > { %2735 = vmatmul.mubr.f32.gmra.mrb[56].mxu0 %v965_v55  ;;  %1969 = vmatprep.mubr.f32.mxu1 %v970_v56  ;;  %v1093_v55 = vld [vmem:[%s4912_s28 + $0xb30] sm:$0xff]  ;;  %v1098_v56 = vld [vmem:[%s4912_s28 + $0xb58] sm:$0xff] }
 0x26e   : > { %2739 = vmatprep.mubr.f32.mxu0 %v974_v57  ;;  %v1102_v57 = vld [vmem:[%s4912_s28 + $0xb78] sm:$0xff] }
 0x270   : > { %1970 = vmatmul.mubr.f32.gmra.mrb[58].mxu1 %v969_v58  ;;  %v1097_v58 = vld [vmem:[%s4912_s28 + $0xb50] sm:$0xff] }
 0x271   : > { %2740 = vmatmul.mubr.f32.gmra.mrb[58].mxu0 %v973_v59  ;;  %1974 = vmatprep.mubr.f32.mxu1 %v978_v60  ;;  %v1101_v59 = vld [vmem:[%s4912_s28 + $0xb70] sm:$0xff]  ;;  %v1106_v60 = vld [vmem:[%s4912_s28 + $0xb98] sm:$0xff] }
 0x272   : > { %2744 = vmatprep.mubr.f32.mxu0 %v982_v61  ;;  %v1110_v61 = vld [vmem:[%s4912_s28 + $0xbb8] sm:$0xff] }
 0x274   : > { %1975 = vmatmul.mubr.f32.gmra.mrb[60].mxu1 %v977_v62  ;;  %v1105_v62 = vld [vmem:[%s4912_s28 + $0xb90] sm:$0xff] }
 0x275   : > { %2745 = vmatmul.mubr.f32.gmra.mrb[60].mxu0 %v981_v63  ;;  %1979 = vmatprep.mubr.f32.mxu1 %v986_v0  ;;  %v1109_v63 = vld [vmem:[%s4912_s28 + $0xbb0] sm:$0xff]  ;;  %v1114_v0 = vld [vmem:[%s4912_s28 + $0xbd8] sm:$0xff] }
 0x276   : > { %2749 = vmatprep.mubr.f32.mxu0 %v990_v1  ;;  %v1118_v1 = vld [vmem:[%s4912_s28 + $0xbf8] sm:$0xff] }
 0x278   : > { %1980 = vmatmul.mubr.f32.gmra.mrb[62].mxu1 %v985_v2  ;;  %v1113_v2 = vld [vmem:[%s4912_s28 + $0xbd0] sm:$0xff] }
 0x279   : > { %2750 = vmatmul.mubr.f32.gmra.mrb[62].mxu0 %v989_v4  ;;  %1984 = vmatprep.mubr.f32.mxu1 %v994_v5  ;;  %v1117_v4 = vld [vmem:[%s4912_s28 + $0xbf0] sm:$0xff]  ;;  %v1122_v5 = vld [vmem:[%s4912_s28 + $0xc18] sm:$0xff] }
 0x27a   : > { %2754 = vmatprep.mubr.f32.mxu0 %v998_v6  ;;  %v1126_v6 = vld [vmem:[%s4912_s28 + $0xc38] sm:$0xff] }
 0x27c   : > { %1985 = vmatmul.mubr.f32.gmra.mrb[64].mxu1 %v993_v7  ;;  %v1121_v7 = vld [vmem:[%s4912_s28 + $0xc10] sm:$0xff] }
 0x27d   : > { %2755 = vmatmul.mubr.f32.gmra.mrb[64].mxu0 %v997_v8  ;;  %1989 = vmatprep.mubr.f32.mxu1 %v1002_v9  ;;  %v1125_v8 = vld [vmem:[%s4912_s28 + $0xc30] sm:$0xff]  ;;  %v1130_v9 = vld [vmem:[%s4912_s28 + $0xc58] sm:$0xff] }
 0x27e   : > { %2759 = vmatprep.mubr.f32.mxu0 %v1006_v10  ;;  %v1134_v10 = vld [vmem:[%s4912_s28 + $0xc78] sm:$0xff] }
 0x280   : > { %1990 = vmatmul.mubr.f32.gmra.mrb[66].mxu1 %v1001_v11  ;;  %v1129_v11 = vld [vmem:[%s4912_s28 + $0xc50] sm:$0xff] }
 0x281   : > { %2760 = vmatmul.mubr.f32.gmra.mrb[66].mxu0 %v1005_v12  ;;  %1994 = vmatprep.mubr.f32.mxu1 %v1010_v13  ;;  %v1133_v12 = vld [vmem:[%s4912_s28 + $0xc70] sm:$0xff]  ;;  %v1138_v13 = vld [vmem:[%s4912_s28 + $0xc98] sm:$0xff] }
 0x282   : > { %2764 = vmatprep.mubr.f32.mxu0 %v1014_v14  ;;  %v1142_v14 = vld [vmem:[%s4912_s28 + $0xcb8] sm:$0xff] }
 0x284   : > { %1995 = vmatmul.mubr.f32.gmra.mrb[68].mxu1 %v1009_v15  ;;  %v1137_v15 = vld [vmem:[%s4912_s28 + $0xc90] sm:$0xff] }
 0x285   : > { %2765 = vmatmul.mubr.f32.gmra.mrb[68].mxu0 %v1013_v16  ;;  %1999 = vmatprep.mubr.f32.mxu1 %v1018_v17  ;;  %v1141_v16 = vld [vmem:[%s4912_s28 + $0xcb0] sm:$0xff]  ;;  %v1146_v17 = vld [vmem:[%s4912_s28 + $0xcd8] sm:$0xff] }
 0x286   : > { %2769 = vmatprep.mubr.f32.mxu0 %v1022_v18  ;;  %v1150_v18 = vld [vmem:[%s4912_s28 + $0xcf8] sm:$0xff] }
 0x288   : > { %2000 = vmatmul.mubr.f32.gmra.mrb[70].mxu1 %v1017_v19  ;;  %v1145_v19 = vld [vmem:[%s4912_s28 + $0xcd0] sm:$0xff] }
 0x289   : > { %2770 = vmatmul.mubr.f32.gmra.mrb[70].mxu0 %v1021_v20  ;;  %2004 = vmatprep.mubr.f32.mxu1 %v1026_v21  ;;  %v1149_v20 = vld [vmem:[%s4912_s28 + $0xcf0] sm:$0xff]  ;;  %v1154_v21 = vld [vmem:[%s4912_s28 + $0xd18] sm:$0xff] }
 0x28a   : > { %2774 = vmatprep.mubr.f32.mxu0 %v1030_v22  ;;  %v1158_v22 = vld [vmem:[%s4912_s28 + $0xd38] sm:$0xff] }
 0x28c   : > { %2005 = vmatmul.mubr.f32.gmra.mrb[72].mxu1 %v1025_v23  ;;  %v1153_v23 = vld [vmem:[%s4912_s28 + $0xd10] sm:$0xff] }
 0x28d   : > { %2775 = vmatmul.mubr.f32.gmra.mrb[72].mxu0 %v1029_v24  ;;  %2009 = vmatprep.mubr.f32.mxu1 %v1034_v25  ;;  %v1157_v24 = vld [vmem:[%s4912_s28 + $0xd30] sm:$0xff]  ;;  %v1162_v25 = vld [vmem:[%s4912_s28 + $0xd58] sm:$0xff] }
 0x28e   : > { %2779 = vmatprep.mubr.f32.mxu0 %v1038_v26  ;;  %v1166_v26 = vld [vmem:[%s4912_s28 + $0xd78] sm:$0xff] }
 0x290   : > { %2010 = vmatmul.mubr.f32.gmra.mrb[74].mxu1 %v1033_v27  ;;  %v1161_v27 = vld [vmem:[%s4912_s28 + $0xd50] sm:$0xff] }
 0x291   : > { %2780 = vmatmul.mubr.f32.gmra.mrb[74].mxu0 %v1037_v28  ;;  %2014 = vmatprep.mubr.f32.mxu1 %v1042_v29  ;;  %v1165_v28 = vld [vmem:[%s4912_s28 + $0xd70] sm:$0xff]  ;;  %v1170_v29 = vld [vmem:[%s4912_s28 + $0xd98] sm:$0xff] }
 0x292   : > { %2784 = vmatprep.mubr.f32.mxu0 %v1046_v30 }
 0x294   : > { %2015 = vmatmul.mubr.f32.gmra.mrb[76].mxu1 %v1041_v31  ;;  %v1174_v31 = vld [vmem:[%s4912_s28 + $0xdb8] sm:$0xff] }
 0x295   : > { %2785 = vmatmul.mubr.f32.gmra.mrb[76].mxu0 %v1045_v32  ;;  %2019 = vmatprep.mubr.f32.mxu1 %v1050_v33 }
 0x296   : > { %2789 = vmatprep.mubr.f32.mxu0 %v1054_v34 }
 0x298   : > { %2020 = vmatmul.mubr.f32.gmra.mrb[78].mxu1 %v1049_v35 }
 0x299   : > { %2790 = vmatmul.mubr.f32.gmra.mrb[78].mxu0 %v1053_v36  ;;  %2024 = vmatprep.mubr.f32.mxu1 %v1058_v37  ;;  %v1169_v36 = vld [vmem:[%s4912_s28 + $0xd90] sm:$0xff] }
 0x29a   : > { %2794 = vmatprep.mubr.f32.mxu0 %v1062_v38  ;;  %v1173_v37 = vld [vmem:[%s4912_s28 + $0xdb0] sm:$0xff]  ;;  %v1178_v38 = vld [vmem:[%s4912_s28 + $0xdd8] sm:$0xff] }
 0x29c   : > { %2025 = vmatmul.mubr.f32.gmra.mrb[80].mxu1 %v1057_v39 }
 0x29d   : > { %2795 = vmatmul.mubr.f32.gmra.mrb[80].mxu0 %v1061_v40  ;;  %2029 = vmatprep.mubr.f32.mxu1 %v1066_v41  ;;  %v1182_v40 = vld [vmem:[%s4912_s28 + $0xdf8] sm:$0xff] }
 0x29e   : > { %2799 = vmatprep.mubr.f32.mxu0 %v1070_v42 }
 0x2a0   : > { %2030 = vmatmul.mubr.f32.gmra.mrb[82].mxu1 %v1065_v43 }
 0x2a1   : > { %2800 = vmatmul.mubr.f32.gmra.mrb[82].mxu0 %v1069_v44  ;;  %2034 = vmatprep.mubr.f32.mxu1 %v1074_v45  ;;  %v1177_v45 = vld [vmem:[%s4912_s28 + $0xdd0] sm:$0xff] }
 0x2a2   : > { %2804 = vmatprep.mubr.f32.mxu0 %v1078_v46  ;;  %v1181_v46 = vld [vmem:[%s4912_s28 + $0xdf0] sm:$0xff] }
 0x2a4   : > { %2035 = vmatmul.mubr.f32.gmra.mrb[84].mxu1 %v1073_v47  ;;  %v1186_v47 = vld [vmem:[%s4912_s28 + $0xe18] sm:$0xff] }
 0x2a5   : > { %2805 = vmatmul.mubr.f32.gmra.mrb[84].mxu0 %v1077_v48  ;;  %2039 = vmatprep.mubr.f32.mxu1 %v1082_v49  ;;  %v1190_v49 = vld [vmem:[%s4912_s28 + $0xe38] sm:$0xff] }
 0x2a6   : > { %2809 = vmatprep.mubr.f32.mxu0 %v1086_v50 }
 0x2a8   : > { %2040 = vmatmul.mubr.f32.gmra.mrb[86].mxu1 %v1081_v51 }
 0x2a9   : > { %2810 = vmatmul.mubr.f32.gmra.mrb[86].mxu0 %v1085_v52  ;;  %2044 = vmatprep.mubr.f32.mxu1 %v1090_v3 }
 0x2aa   : > { %2814 = vmatprep.mubr.f32.mxu0 %v1094_v53  ;;  %v1185_v53 = vld [vmem:[%s4912_s28 + $0xe10] sm:$0xff] }
 0x2ac   : > { %2045 = vmatmul.mubr.f32.gmra.mrb[88].mxu1 %v1089_v54  ;;  %v1189_v54 = vld [vmem:[%s4912_s28 + $0xe30] sm:$0xff] }
 0x2ad   : > { %2815 = vmatmul.mubr.f32.gmra.mrb[88].mxu0 %v1093_v55  ;;  %2049 = vmatprep.mubr.f32.mxu1 %v1098_v56  ;;  %v1194_v55 = vld [vmem:[%s4912_s28 + $0xe58] sm:$0xff] }
 0x2ae   : > { %2819 = vmatprep.mubr.f32.mxu0 %v1102_v57  ;;  %v1198_v57 = vld [vmem:[%s4912_s28 + $0xe78] sm:$0xff] }
 0x2b0   : > { %2050 = vmatmul.mubr.f32.gmra.mrb[90].mxu1 %v1097_v58 }
 0x2b1   : > { %2820 = vmatmul.mubr.f32.gmra.mrb[90].mxu0 %v1101_v59  ;;  %2054 = vmatprep.mubr.f32.mxu1 %v1106_v60 }
 0x2b2   : > { %2824 = vmatprep.mubr.f32.mxu0 %v1110_v61 }
 0x2b4   : > { %2055 = vmatmul.mubr.f32.gmra.mrb[92].mxu1 %v1105_v62  ;;  %v1193_v62 = vld [vmem:[%s4912_s28 + $0xe50] sm:$0xff] }
 0x2b5   : > { %2825 = vmatmul.mubr.f32.gmra.mrb[92].mxu0 %v1109_v63  ;;  %2059 = vmatprep.mubr.f32.mxu1 %v1114_v0  ;;  %v1197_v63 = vld [vmem:[%s4912_s28 + $0xe70] sm:$0xff]  ;;  %v1202_v0 = vld [vmem:[%s4912_s28 + $0xe98] sm:$0xff] }
 0x2b6   : > { %2829 = vmatprep.mubr.f32.mxu0 %v1118_v1 }
 0x2b8   : > { %2060 = vmatmul.mubr.f32.gmra.mrb[94].mxu1 %v1113_v2  ;;  %v1206_v2 = vld [vmem:[%s4912_s28 + $0xeb8] sm:$0xff] }
 0x2b9   : > { %2830 = vmatmul.mubr.f32.gmra.mrb[94].mxu0 %v1117_v4  ;;  %2064 = vmatprep.mubr.f32.mxu1 %v1122_v5 }
 0x2ba   : > { %2834 = vmatprep.mubr.f32.mxu0 %v1126_v6 }
 0x2bc   : > { %2065 = vmatmul.mubr.f32.gmra.mrb[96].mxu1 %v1121_v7 }
 0x2bd   : > { %2835 = vmatmul.mubr.f32.gmra.mrb[96].mxu0 %v1125_v8  ;;  %2069 = vmatprep.mubr.f32.mxu1 %v1130_v9  ;;  %v1201_v8 = vld [vmem:[%s4912_s28 + $0xe90] sm:$0xff] }
 0x2be   : > { %2839 = vmatprep.mubr.f32.mxu0 %v1134_v10  ;;  %v1205_v9 = vld [vmem:[%s4912_s28 + $0xeb0] sm:$0xff]  ;;  %v1210_v10 = vld [vmem:[%s4912_s28 + $0xed8] sm:$0xff] }
 0x2c0   : > { %2070 = vmatmul.mubr.f32.gmra.mrb[98].mxu1 %v1129_v11 }
 0x2c1   : > { %2840 = vmatmul.mubr.f32.gmra.mrb[98].mxu0 %v1133_v12  ;;  %2074 = vmatprep.mubr.f32.mxu1 %v1138_v13  ;;  %v1214_v12 = vld [vmem:[%s4912_s28 + $0xef8] sm:$0xff] }
 0x2c2   : > { %2844 = vmatprep.mubr.f32.mxu0 %v1142_v14 }
 0x2c4   : > { %2075 = vmatmul.mubr.f32.gmra.mrb[100].mxu1 %v1137_v15 }
 0x2c5   : > { %2845 = vmatmul.mubr.f32.gmra.mrb[100].mxu0 %v1141_v16  ;;  %2079 = vmatprep.mubr.f32.mxu1 %v1146_v17  ;;  %v1209_v17 = vld [vmem:[%s4912_s28 + $0xed0] sm:$0xff] }
 0x2c6   : > { %2849 = vmatprep.mubr.f32.mxu0 %v1150_v18  ;;  %v1213_v18 = vld [vmem:[%s4912_s28 + $0xef0] sm:$0xff] }
 0x2c8   : > { %2080 = vmatmul.mubr.f32.gmra.mrb[102].mxu1 %v1145_v19  ;;  %v1218_v19 = vld [vmem:[%s4912_s28 + $0xf18] sm:$0xff] }
 0x2c9   : > { %2850 = vmatmul.mubr.f32.gmra.mrb[102].mxu0 %v1149_v20  ;;  %2084 = vmatprep.mubr.f32.mxu1 %v1154_v21  ;;  %v1222_v21 = vld [vmem:[%s4912_s28 + $0xf38] sm:$0xff] }
 0x2ca   : > { %2854 = vmatprep.mubr.f32.mxu0 %v1158_v22 }
 0x2cc   : > { %2085 = vmatmul.mubr.f32.gmra.mrb[104].mxu1 %v1153_v23 }
 0x2cd   : > { %2855 = vmatmul.mubr.f32.gmra.mrb[104].mxu0 %v1157_v24  ;;  %2089 = vmatprep.mubr.f32.mxu1 %v1162_v25 }
 0x2ce   : > { %2859 = vmatprep.mubr.f32.mxu0 %v1166_v26  ;;  %v1217_v26 = vld [vmem:[%s4912_s28 + $0xf10] sm:$0xff] }
 0x2cf   : > { %v1826_v30 = vpop.f32.mrb[0].mxu1 }
 0x2d0   : > { %v2596_v32 = vpop.f32.mrb[0].mxu0  ;;  %v1828_v33 = vpop.f32.mrb[1].mxu1  ;;  %2090 = vmatmul.mubr.f32.gmra.mrb[106].mxu1 %v1161_v27  ;;  %v1221_v27 = vld [vmem:[%s4912_s28 + $0xf30] sm:$0xff] }
 0x2d1   : > { %v4280_v34 = vadd.f32 %v2596_v32, %v1826_v30  ;;  %v2598_v35 = vpop.f32.mrb[1].mxu0  ;;  %2860 = vmatmul.mubr.f32.gmra.mrb[106].mxu0 %v1165_v28  ;;  %2094 = vmatprep.mubr.f32.mxu1 %v1170_v29  ;;  %v1226_v28 = vld [vmem:[%s4912_s28 + $0xf58] sm:$0xff] }
 0x2d2   : > { %2864 = vmatprep.mubr.f32.mxu0 %v1174_v31  ;;  %v1230_v30 = vld [vmem:[%s4912_s28 + $0xf78] sm:$0xff]  ;;  %v1225_v35 = vld [vmem:[%s4912_s28 + $0xf50] sm:$0xff] }
 0x2d3   : > { %2917 = vst.msk [vmem:[%s6102_s13] sm:$0xff] %vm2916_vm1, %v4280_v34  ;;  %v1831_v39 = vpop.f32.mrb[2].mxu1 }
 0x2d4   : > { %v2601_v41 = vpop.f32.mrb[2].mxu0  ;;  %v1833_v42 = vpop.f32.mrb[3].mxu1  ;;  %2095 = vmatmul.mubr.f32.gmra.mrb[108].mxu1 %v1169_v36  ;;  %v1229_v36 = vld [vmem:[%s4912_s28 + $0xf70] sm:$0xff] }
 0x2d5   : > { %v4281_v43 = vadd.f32 %v2601_v41, %v1831_v39  ;;  %v2603_v44 = vpop.f32.mrb[3].mxu0  ;;  %2865 = vmatmul.mubr.f32.gmra.mrb[108].mxu0 %v1173_v37  ;;  %2099 = vmatprep.mubr.f32.mxu1 %v1178_v38  ;;  %v1234_v37 = vld [vmem:[%s4912_s28 + $0xf98] sm:$0xff] }
 0x2d6   : > { %2869 = vmatprep.mubr.f32.mxu0 %v1182_v40  ;;  %v1238_v39 = vld [vmem:[%s4912_s28 + $0xfb8] sm:$0xff]  ;;  %v1233_v44 = vld [vmem:[%s4912_s28 + $0xf90] sm:$0xff] }
 0x2d7   : > { %2918 = vst.msk [vmem:[%s6102_s13 + $0x8] sm:$0xff] %vm2916_vm1, %v4281_v43  ;;  %v1836_v48 = vpop.f32.mrb[4].mxu1 }
 0x2d8   : > { %v2606_v50 = vpop.f32.mrb[4].mxu0  ;;  %v1838_v51 = vpop.f32.mrb[5].mxu1  ;;  %2100 = vmatmul.mubr.f32.gmra.mrb[110].mxu1 %v1177_v45  ;;  %v1237_v45 = vld [vmem:[%s4912_s28 + $0xfb0] sm:$0xff] }
 0x2d9   : > { %v4282_v52 = vadd.f32 %v2606_v50, %v1836_v48  ;;  %v2608_v3 = vpop.f32.mrb[5].mxu0  ;;  %2870 = vmatmul.mubr.f32.gmra.mrb[110].mxu0 %v1181_v46  ;;  %2104 = vmatprep.mubr.f32.mxu1 %v1186_v47  ;;  %v1242_v46 = vld [vmem:[%s4912_s28 + $0xfd8] sm:$0xff] }
 0x2da   : > { %2874 = vmatprep.mubr.f32.mxu0 %v1190_v49  ;;  %v1246_v48 = vld [vmem:[%s4912_s28 + $0xff8] sm:$0xff]  ;;  %v1241_v3 = vld [vmem:[%s4912_s28 + $0xfd0] sm:$0xff] }
 0x2db   : > { %2919 = vst.msk [vmem:[%s6102_s13 + $0x10] sm:$0xff] %vm2916_vm1, %v4282_v52  ;;  %v1841_v56 = vpop.f32.mrb[6].mxu1 }
 0x2dc   : > { %v2611_v58 = vpop.f32.mrb[6].mxu0  ;;  %v1843_v59 = vpop.f32.mrb[7].mxu1  ;;  %2105 = vmatmul.mubr.f32.gmra.mrb[112].mxu1 %v1185_v53  ;;  %v1245_v53 = vld [vmem:[%s4912_s28 + $0xff0] sm:$0xff] }
 0x2dd   : > { %v4283_v60 = vadd.f32 %v2611_v58, %v1841_v56  ;;  %v2613_v61 = vpop.f32.mrb[7].mxu0  ;;  %2875 = vmatmul.mubr.f32.gmra.mrb[112].mxu0 %v1189_v54  ;;  %2109 = vmatprep.mubr.f32.mxu1 %v1194_v55 }
 0x2de   : > { %2879 = vmatprep.mubr.f32.mxu0 %v1198_v57 }
 0x2df   : > { %2920 = vst.msk [vmem:[%s6102_s13 + $0x18] sm:$0xff] %vm2916_vm1, %v4283_v60  ;;  %v1846_v1 = vpop.f32.mrb[8].mxu1 }
 0x2e0   : > { %v2616_v4 = vpop.f32.mrb[8].mxu0  ;;  %v1848_v5 = vpop.f32.mrb[9].mxu1  ;;  %2110 = vmatmul.mubr.f32.gmra.mrb[114].mxu1 %v1193_v62 }
 0x2e1   : > { %v4284_v6 = vadd.f32 %v2616_v4, %v1846_v1  ;;  %v2618_v7 = vpop.f32.mrb[9].mxu0  ;;  %2880 = vmatmul.mubr.f32.gmra.mrb[114].mxu0 %v1197_v63  ;;  %2114 = vmatprep.mubr.f32.mxu1 %v1202_v0 }
 0x2e2   : > { %2884 = vmatprep.mubr.f32.mxu0 %v1206_v2 }
 0x2e3   : > { %2921 = vst.msk [vmem:[%s6102_s13 + $0x20] sm:$0xff] %vm2916_vm1, %v4284_v6  ;;  %v1851_v11 = vpop.f32.mrb[10].mxu1 }
 0x2e4   : > { %v2621_v13 = vpop.f32.mrb[10].mxu0  ;;  %v1853_v14 = vpop.f32.mrb[11].mxu1  ;;  %2115 = vmatmul.mubr.f32.gmra.mrb[116].mxu1 %v1201_v8 }
 0x2e5   : > { %v4285_v15 = vadd.f32 %v2621_v13, %v1851_v11  ;;  %v2623_v16 = vpop.f32.mrb[11].mxu0  ;;  %2885 = vmatmul.mubr.f32.gmra.mrb[116].mxu0 %v1205_v9  ;;  %2119 = vmatprep.mubr.f32.mxu1 %v1210_v10 }
 0x2e6   : > { %2889 = vmatprep.mubr.f32.mxu0 %v1214_v12 }
 0x2e7   : > { %2922 = vst.msk [vmem:[%s6102_s13 + $0x28] sm:$0xff] %vm2916_vm1, %v4285_v15  ;;  %v1856_v20 = vpop.f32.mrb[12].mxu1 }
 0x2e8   : > { %v2626_v22 = vpop.f32.mrb[12].mxu0  ;;  %v1858_v23 = vpop.f32.mrb[13].mxu1  ;;  %2120 = vmatmul.mubr.f32.gmra.mrb[118].mxu1 %v1209_v17 }
 0x2e9   : > { %v4286_v24 = vadd.f32 %v2626_v22, %v1856_v20  ;;  %v2628_v25 = vpop.f32.mrb[13].mxu0  ;;  %2890 = vmatmul.mubr.f32.gmra.mrb[118].mxu0 %v1213_v18  ;;  %2124 = vmatprep.mubr.f32.mxu1 %v1218_v19 }
 0x2ea   : > { %2894 = vmatprep.mubr.f32.mxu0 %v1222_v21 }
 0x2eb   : > { %2923 = vst.msk [vmem:[%s6102_s13 + $0x30] sm:$0xff] %vm2916_vm1, %v4286_v24  ;;  %v1861_v29 = vpop.f32.mrb[14].mxu1 }
 0x2ec   : > { %v2631_v31 = vpop.f32.mrb[14].mxu0  ;;  %v1863_v32 = vpop.f32.mrb[15].mxu1  ;;  %2125 = vmatmul.mubr.f32.gmra.mrb[120].mxu1 %v1217_v26 }
 0x2ed   : > { %v4287_v33 = vadd.f32 %v2631_v31, %v1861_v29  ;;  %v2633_v34 = vpop.f32.mrb[15].mxu0  ;;  %2895 = vmatmul.mubr.f32.gmra.mrb[120].mxu0 %v1221_v27  ;;  %2129 = vmatprep.mubr.f32.mxu1 %v1226_v28 }
 0x2ee   : > { %2899 = vmatprep.mubr.f32.mxu0 %v1230_v30 }
 0x2ef   : > { %2924 = vst.msk [vmem:[%s6102_s13 + $0x38] sm:$0xff] %vm2916_vm1, %v4287_v33  ;;  %v1866_v38 = vpop.f32.mrb[16].mxu1 }
 0x2f0   : > { %v2636_v40 = vpop.f32.mrb[16].mxu0  ;;  %v1868_v41 = vpop.f32.mrb[17].mxu1  ;;  %2130 = vmatmul.mubr.f32.gmra.mrb[122].mxu1 %v1225_v35 }
 0x2f1   : > { %v4288_v42 = vadd.f32 %v2636_v40, %v1866_v38  ;;  %v2638_v43 = vpop.f32.mrb[17].mxu0  ;;  %2900 = vmatmul.mubr.f32.gmra.mrb[122].mxu0 %v1229_v36  ;;  %2134 = vmatprep.mubr.f32.mxu1 %v1234_v37 }
 0x2f2   : > { %2904 = vmatprep.mubr.f32.mxu0 %v1238_v39 }
 0x2f3   : > { %2925 = vst.msk [vmem:[%s6102_s13 + $0x40] sm:$0xff] %vm2916_vm1, %v4288_v42  ;;  %v1871_v47 = vpop.f32.mrb[18].mxu1 }
 0x2f4   : > { %v2641_v49 = vpop.f32.mrb[18].mxu0  ;;  %v1873_v50 = vpop.f32.mrb[19].mxu1  ;;  %2135 = vmatmul.mubr.f32.gmra.mrb[124].mxu1 %v1233_v44 }
 0x2f5   : > { %v4289_v51 = vadd.f32 %v2641_v49, %v1871_v47  ;;  %v2643_v52 = vpop.f32.mrb[19].mxu0  ;;  %2905 = vmatmul.mubr.f32.gmra.mrb[124].mxu0 %v1237_v45  ;;  %2139 = vmatprep.mubr.f32.mxu1 %v1242_v46 }
 0x2f6   : > { %2909 = vmatprep.mubr.f32.mxu0 %v1246_v48 }
 0x2f7   : > { %2926 = vst.msk [vmem:[%s6102_s13 + $0x48] sm:$0xff] %vm2916_vm1, %v4289_v51  ;;  %v1876_v54 = vpop.f32.mrb[20].mxu1 }
 0x2f8   : > { %v2646_v55 = vpop.f32.mrb[20].mxu0  ;;  %v1878_v56 = vpop.f32.mrb[21].mxu1  ;;  %2140 = vmatmul.mubr.f32.gmra.mrb[126].mxu1 %v1241_v3 }
 0x2f9   : > { %v4290_v57 = vadd.f32 %v2646_v55, %v1876_v54  ;;  %v2648_v58 = vpop.f32.mrb[21].mxu0  ;;  %2910 = vmatmul.mubr.f32.gmra.mrb[126].mxu0 %v1245_v53 }
 0x2fb   : > { %2927 = vst.msk [vmem:[%s6102_s13 + $0x50] sm:$0xff] %vm2916_vm1, %v4290_v57  ;;  %v1881_v59 = vpop.f32.mrb[22].mxu1 }
 0x2fc   : > { %v2651_v60 = vpop.f32.mrb[22].mxu0  ;;  %v1883_v61 = vpop.f32.mrb[23].mxu1 }
 0x2fd   : > { %v4291_v62 = vadd.f32 %v2651_v60, %v1881_v59  ;;  %v2653_v63 = vpop.f32.mrb[23].mxu0 }
 0x2ff   : > { %2928 = vst.msk [vmem:[%s6102_s13 + $0x58] sm:$0xff] %vm2916_vm1, %v4291_v62  ;;  %v1886_v0 = vpop.f32.mrb[24].mxu1 }
 0x300   : > { %v2656_v1 = vpop.f32.mrb[24].mxu0  ;;  %v1888_v2 = vpop.f32.mrb[25].mxu1 }
 0x301   : > { %v4292_v4 = vadd.f32 %v2656_v1, %v1886_v0  ;;  %v2658_v5 = vpop.f32.mrb[25].mxu0 }
 0x303   : > { %2929 = vst.msk [vmem:[%s6102_s13 + $0x60] sm:$0xff] %vm2916_vm1, %v4292_v4  ;;  %v1891_v6 = vpop.f32.mrb[26].mxu1 }
 0x304   : > { %v2661_v7 = vpop.f32.mrb[26].mxu0  ;;  %v1893_v8 = vpop.f32.mrb[27].mxu1 }
 0x305   : > { %v4293_v9 = vadd.f32 %v2661_v7, %v1891_v6  ;;  %v2663_v10 = vpop.f32.mrb[27].mxu0 }
 0x307   : > { %2930 = vst.msk [vmem:[%s6102_s13 + $0x68] sm:$0xff] %vm2916_vm1, %v4293_v9  ;;  %v1896_v11 = vpop.f32.mrb[28].mxu1 }
 0x308   : > { %v2666_v12 = vpop.f32.mrb[28].mxu0  ;;  %v1898_v13 = vpop.f32.mrb[29].mxu1 }
 0x309   : > { %v4294_v14 = vadd.f32 %v2666_v12, %v1896_v11  ;;  %v2668_v15 = vpop.f32.mrb[29].mxu0 }
 0x30b   : > { %2931 = vst.msk [vmem:[%s6102_s13 + $0x70] sm:$0xff] %vm2916_vm1, %v4294_v14  ;;  %v1901_v16 = vpop.f32.mrb[30].mxu1 }
 0x30c   : > { %v2671_v17 = vpop.f32.mrb[30].mxu0  ;;  %v1903_v18 = vpop.f32.mrb[31].mxu1 }
 0x30d   : > { %v4295_v19 = vadd.f32 %v2671_v17, %v1901_v16  ;;  %v2673_v20 = vpop.f32.mrb[31].mxu0 }
 0x30f   : > { %2932 = vst.msk [vmem:[%s6102_s13 + $0x78] sm:$0xff] %vm2916_vm1, %v4295_v19  ;;  %v1906_v21 = vpop.f32.mrb[32].mxu1 }
 0x310   : > { %v2676_v22 = vpop.f32.mrb[32].mxu0  ;;  %v1908_v23 = vpop.f32.mrb[33].mxu1 }
 0x311   : > { %v4296_v24 = vadd.f32 %v2676_v22, %v1906_v21  ;;  %v2678_v25 = vpop.f32.mrb[33].mxu0 }
 0x313   : > { %2933 = vst.msk [vmem:[%s6102_s13 + $0x80] sm:$0xff] %vm2916_vm1, %v4296_v24  ;;  %v1911_v26 = vpop.f32.mrb[34].mxu1 }
 0x314   : > { %v2681_v27 = vpop.f32.mrb[34].mxu0  ;;  %v1913_v28 = vpop.f32.mrb[35].mxu1 }
 0x315   : > { %v4297_v29 = vadd.f32 %v2681_v27, %v1911_v26  ;;  %v2683_v30 = vpop.f32.mrb[35].mxu0 }
 0x317   : > { %2934 = vst.msk [vmem:[%s6102_s13 + $0x88] sm:$0xff] %vm2916_vm1, %v4297_v29  ;;  %v1916_v31 = vpop.f32.mrb[36].mxu1 }
 0x318   : > { %v2686_v32 = vpop.f32.mrb[36].mxu0  ;;  %v1918_v33 = vpop.f32.mrb[37].mxu1 }
 0x319   : > { %v4298_v34 = vadd.f32 %v2686_v32, %v1916_v31  ;;  %v2688_v35 = vpop.f32.mrb[37].mxu0 }
 0x31b   : > { %2935 = vst.msk [vmem:[%s6102_s13 + $0x90] sm:$0xff] %vm2916_vm1, %v4298_v34  ;;  %v1921_v36 = vpop.f32.mrb[38].mxu1 }
 0x31c   : > { %v2691_v37 = vpop.f32.mrb[38].mxu0  ;;  %v1923_v38 = vpop.f32.mrb[39].mxu1 }
 0x31d   : > { %v4299_v39 = vadd.f32 %v2691_v37, %v1921_v36  ;;  %v2693_v40 = vpop.f32.mrb[39].mxu0 }
 0x31f   : > { %2936 = vst.msk [vmem:[%s6102_s13 + $0x98] sm:$0xff] %vm2916_vm1, %v4299_v39  ;;  %v1926_v41 = vpop.f32.mrb[40].mxu1 }
 0x320   : > { %v2696_v42 = vpop.f32.mrb[40].mxu0  ;;  %v1928_v43 = vpop.f32.mrb[41].mxu1 }
 0x321   : > { %v4300_v44 = vadd.f32 %v2696_v42, %v1926_v41  ;;  %v2698_v45 = vpop.f32.mrb[41].mxu0 }
 0x323   : > { %2937 = vst.msk [vmem:[%s6102_s13 + $0xa0] sm:$0xff] %vm2916_vm1, %v4300_v44  ;;  %v1931_v46 = vpop.f32.mrb[42].mxu1 }
 0x324   : > { %v2701_v47 = vpop.f32.mrb[42].mxu0  ;;  %v1933_v48 = vpop.f32.mrb[43].mxu1 }
 0x325   : > { %v4301_v49 = vadd.f32 %v2701_v47, %v1931_v46  ;;  %v2703_v50 = vpop.f32.mrb[43].mxu0 }
 0x327   : > { %2938 = vst.msk [vmem:[%s6102_s13 + $0xa8] sm:$0xff] %vm2916_vm1, %v4301_v49  ;;  %v1936_v51 = vpop.f32.mrb[44].mxu1 }
 0x328   : > { %v2706_v52 = vpop.f32.mrb[44].mxu0  ;;  %v1938_v3 = vpop.f32.mrb[45].mxu1 }
 0x329   : > { %v4302_v53 = vadd.f32 %v2706_v52, %v1936_v51  ;;  %v2708_v54 = vpop.f32.mrb[45].mxu0 }
 0x32b   : > { %2939 = vst.msk [vmem:[%s6102_s13 + $0xb0] sm:$0xff] %vm2916_vm1, %v4302_v53  ;;  %v1941_v55 = vpop.f32.mrb[46].mxu1 }
 0x32c   : > { %v2711_v56 = vpop.f32.mrb[46].mxu0  ;;  %v1943_v57 = vpop.f32.mrb[47].mxu1 }
 0x32d   : > { %v4303_v58 = vadd.f32 %v2711_v56, %v1941_v55  ;;  %v2713_v59 = vpop.f32.mrb[47].mxu0 }
 0x32f   : > { %2940 = vst.msk [vmem:[%s6102_s13 + $0xb8] sm:$0xff] %vm2916_vm1, %v4303_v58  ;;  %v1946_v60 = vpop.f32.mrb[48].mxu1 }
 0x330   : > { %v2716_v61 = vpop.f32.mrb[48].mxu0  ;;  %v1948_v62 = vpop.f32.mrb[49].mxu1 }
 0x331   : > { %v4304_v63 = vadd.f32 %v2716_v61, %v1946_v60  ;;  %v2718_v0 = vpop.f32.mrb[49].mxu0 }
 0x333   : > { %2941 = vst.msk [vmem:[%s6102_s13 + $0xc0] sm:$0xff] %vm2916_vm1, %v4304_v63  ;;  %v1951_v1 = vpop.f32.mrb[50].mxu1 }
 0x334   : > { %v2721_v2 = vpop.f32.mrb[50].mxu0  ;;  %v1953_v4 = vpop.f32.mrb[51].mxu1 }
 0x335   : > { %v4305_v5 = vadd.f32 %v2721_v2, %v1951_v1  ;;  %v2723_v6 = vpop.f32.mrb[51].mxu0 }
 0x337   : > { %2942 = vst.msk [vmem:[%s6102_s13 + $0xc8] sm:$0xff] %vm2916_vm1, %v4305_v5  ;;  %v1956_v7 = vpop.f32.mrb[52].mxu1 }
 0x338   : > { %v2726_v8 = vpop.f32.mrb[52].mxu0  ;;  %v1958_v9 = vpop.f32.mrb[53].mxu1 }
 0x339   : > { %v4306_v10 = vadd.f32 %v2726_v8, %v1956_v7  ;;  %v2728_v11 = vpop.f32.mrb[53].mxu0 }
 0x33b   : > { %2943 = vst.msk [vmem:[%s6102_s13 + $0xd0] sm:$0xff] %vm2916_vm1, %v4306_v10  ;;  %v1961_v12 = vpop.f32.mrb[54].mxu1 }
 0x33c   : > { %v2731_v13 = vpop.f32.mrb[54].mxu0  ;;  %v1963_v14 = vpop.f32.mrb[55].mxu1 }
 0x33d   : > { %v4307_v15 = vadd.f32 %v2731_v13, %v1961_v12  ;;  %v2733_v16 = vpop.f32.mrb[55].mxu0 }
 0x33f   : > { %2944 = vst.msk [vmem:[%s6102_s13 + $0xd8] sm:$0xff] %vm2916_vm1, %v4307_v15  ;;  %v1966_v17 = vpop.f32.mrb[56].mxu1 }
 0x340   : > { %v2736_v18 = vpop.f32.mrb[56].mxu0  ;;  %v1968_v19 = vpop.f32.mrb[57].mxu1 }
 0x341   : > { %v4308_v20 = vadd.f32 %v2736_v18, %v1966_v17  ;;  %v2738_v21 = vpop.f32.mrb[57].mxu0 }
 0x343   : > { %2945 = vst.msk [vmem:[%s6102_s13 + $0xe0] sm:$0xff] %vm2916_vm1, %v4308_v20  ;;  %v1971_v22 = vpop.f32.mrb[58].mxu1 }
 0x344   : > { %v2741_v23 = vpop.f32.mrb[58].mxu0  ;;  %v1973_v24 = vpop.f32.mrb[59].mxu1 }
 0x345   : > { %v4309_v25 = vadd.f32 %v2741_v23, %v1971_v22  ;;  %v2743_v26 = vpop.f32.mrb[59].mxu0 }
 0x347   : > { %2946 = vst.msk [vmem:[%s6102_s13 + $0xe8] sm:$0xff] %vm2916_vm1, %v4309_v25  ;;  %v1976_v27 = vpop.f32.mrb[60].mxu1 }
 0x348   : > { %v2746_v28 = vpop.f32.mrb[60].mxu0  ;;  %v1978_v29 = vpop.f32.mrb[61].mxu1 }
 0x349   : > { %v4310_v30 = vadd.f32 %v2746_v28, %v1976_v27  ;;  %v2748_v31 = vpop.f32.mrb[61].mxu0 }
 0x34b   : > { %2947 = vst.msk [vmem:[%s6102_s13 + $0xf0] sm:$0xff] %vm2916_vm1, %v4310_v30  ;;  %v1981_v32 = vpop.f32.mrb[62].mxu1 }
 0x34c   : > { %v2751_v33 = vpop.f32.mrb[62].mxu0  ;;  %v1983_v34 = vpop.f32.mrb[63].mxu1 }
 0x34d   : > { %v4311_v35 = vadd.f32 %v2751_v33, %v1981_v32  ;;  %v2753_v36 = vpop.f32.mrb[63].mxu0 }
 0x34f   : > { %2948 = vst.msk [vmem:[%s6102_s13 + $0xf8] sm:$0xff] %vm2916_vm1, %v4311_v35  ;;  %v1986_v37 = vpop.f32.mrb[64].mxu1 }
 0x350   : > { %v2756_v38 = vpop.f32.mrb[64].mxu0  ;;  %v1988_v39 = vpop.f32.mrb[65].mxu1 }
 0x351   : > { %v4312_v40 = vadd.f32 %v2756_v38, %v1986_v37  ;;  %v2758_v41 = vpop.f32.mrb[65].mxu0 }
 0x353   : > { %2949 = vst.msk [vmem:[%s6102_s13 + $0x100] sm:$0xff] %vm2916_vm1, %v4312_v40  ;;  %v1991_v42 = vpop.f32.mrb[66].mxu1 }
 0x354   : > { %v2761_v43 = vpop.f32.mrb[66].mxu0  ;;  %v1993_v44 = vpop.f32.mrb[67].mxu1 }
 0x355   : > { %v4313_v45 = vadd.f32 %v2761_v43, %v1991_v42  ;;  %v2763_v46 = vpop.f32.mrb[67].mxu0 }
 0x357   : > { %2950 = vst.msk [vmem:[%s6102_s13 + $0x108] sm:$0xff] %vm2916_vm1, %v4313_v45  ;;  %v1996_v47 = vpop.f32.mrb[68].mxu1 }
 0x358   : > { %v2766_v48 = vpop.f32.mrb[68].mxu0  ;;  %v1998_v49 = vpop.f32.mrb[69].mxu1 }
 0x359   : > { %v4314_v50 = vadd.f32 %v2766_v48, %v1996_v47  ;;  %v2768_v51 = vpop.f32.mrb[69].mxu0 }
 0x35b   : > { %2951 = vst.msk [vmem:[%s6102_s13 + $0x110] sm:$0xff] %vm2916_vm1, %v4314_v50  ;;  %v2001_v52 = vpop.f32.mrb[70].mxu1 }
 0x35c   : > { %v2771_v3 = vpop.f32.mrb[70].mxu0  ;;  %v2003_v53 = vpop.f32.mrb[71].mxu1 }
 0x35d   : > { %v4315_v54 = vadd.f32 %v2771_v3, %v2001_v52  ;;  %v2773_v55 = vpop.f32.mrb[71].mxu0 }
 0x35f   : > { %2952 = vst.msk [vmem:[%s6102_s13 + $0x118] sm:$0xff] %vm2916_vm1, %v4315_v54  ;;  %v2006_v56 = vpop.f32.mrb[72].mxu1 }
 0x360   : > { %v2776_v57 = vpop.f32.mrb[72].mxu0  ;;  %v2008_v58 = vpop.f32.mrb[73].mxu1 }
 0x361   : > { %v4316_v59 = vadd.f32 %v2776_v57, %v2006_v56  ;;  %v2778_v60 = vpop.f32.mrb[73].mxu0 }
 0x363   : > { %2953 = vst.msk [vmem:[%s6102_s13 + $0x120] sm:$0xff] %vm2916_vm1, %v4316_v59  ;;  %v2011_v61 = vpop.f32.mrb[74].mxu1 }
 0x364   : > { %v2781_v62 = vpop.f32.mrb[74].mxu0  ;;  %v2013_v63 = vpop.f32.mrb[75].mxu1 }
 0x365   : > { %v4317_v0 = vadd.f32 %v2781_v62, %v2011_v61  ;;  %v2783_v1 = vpop.f32.mrb[75].mxu0 }
 0x367   : > { %2954 = vst.msk [vmem:[%s6102_s13 + $0x128] sm:$0xff] %vm2916_vm1, %v4317_v0  ;;  %v2016_v2 = vpop.f32.mrb[76].mxu1 }
 0x368   : > { %v2786_v4 = vpop.f32.mrb[76].mxu0  ;;  %v2018_v5 = vpop.f32.mrb[77].mxu1 }
 0x369   : > { %v4318_v6 = vadd.f32 %v2786_v4, %v2016_v2  ;;  %v2788_v7 = vpop.f32.mrb[77].mxu0 }
 0x36b   : > { %2955 = vst.msk [vmem:[%s6102_s13 + $0x130] sm:$0xff] %vm2916_vm1, %v4318_v6  ;;  %v2021_v8 = vpop.f32.mrb[78].mxu1 }
 0x36c   : > { %v2791_v9 = vpop.f32.mrb[78].mxu0  ;;  %v2023_v10 = vpop.f32.mrb[79].mxu1 }
 0x36d   : > { %v4319_v11 = vadd.f32 %v2791_v9, %v2021_v8  ;;  %v2793_v12 = vpop.f32.mrb[79].mxu0 }
 0x36f   : > { %2956 = vst.msk [vmem:[%s6102_s13 + $0x138] sm:$0xff] %vm2916_vm1, %v4319_v11  ;;  %v2026_v13 = vpop.f32.mrb[80].mxu1 }
 0x370   : > { %v2796_v14 = vpop.f32.mrb[80].mxu0  ;;  %v2028_v15 = vpop.f32.mrb[81].mxu1 }
 0x371   : > { %v4320_v16 = vadd.f32 %v2796_v14, %v2026_v13  ;;  %v2798_v17 = vpop.f32.mrb[81].mxu0 }
 0x373   : > { %2957 = vst.msk [vmem:[%s6102_s13 + $0x140] sm:$0xff] %vm2916_vm1, %v4320_v16  ;;  %v2031_v18 = vpop.f32.mrb[82].mxu1 }
 0x374   : > { %v2801_v19 = vpop.f32.mrb[82].mxu0  ;;  %v2033_v20 = vpop.f32.mrb[83].mxu1 }
 0x375   : > { %v4321_v21 = vadd.f32 %v2801_v19, %v2031_v18  ;;  %v2803_v22 = vpop.f32.mrb[83].mxu0 }
 0x377   : > { %2958 = vst.msk [vmem:[%s6102_s13 + $0x148] sm:$0xff] %vm2916_vm1, %v4321_v21  ;;  %v2036_v23 = vpop.f32.mrb[84].mxu1 }
 0x378   : > { %v2806_v24 = vpop.f32.mrb[84].mxu0  ;;  %v2038_v25 = vpop.f32.mrb[85].mxu1 }
 0x379   : > { %v4322_v26 = vadd.f32 %v2806_v24, %v2036_v23  ;;  %v2808_v27 = vpop.f32.mrb[85].mxu0 }
 0x37b   : > { %2959 = vst.msk [vmem:[%s6102_s13 + $0x150] sm:$0xff] %vm2916_vm1, %v4322_v26  ;;  %v2041_v28 = vpop.f32.mrb[86].mxu1 }
 0x37c   : > { %v2811_v29 = vpop.f32.mrb[86].mxu0  ;;  %v2043_v30 = vpop.f32.mrb[87].mxu1 }
 0x37d   : > { %v4323_v31 = vadd.f32 %v2811_v29, %v2041_v28  ;;  %v2813_v32 = vpop.f32.mrb[87].mxu0 }
 0x37f   : > { %2960 = vst.msk [vmem:[%s6102_s13 + $0x158] sm:$0xff] %vm2916_vm1, %v4323_v31  ;;  %v2046_v33 = vpop.f32.mrb[88].mxu1 }
 0x380   : > { %v2816_v34 = vpop.f32.mrb[88].mxu0  ;;  %v2048_v35 = vpop.f32.mrb[89].mxu1 }
 0x381   : > { %v4324_v36 = vadd.f32 %v2816_v34, %v2046_v33  ;;  %v2818_v37 = vpop.f32.mrb[89].mxu0 }
 0x383   : > { %2961 = vst.msk [vmem:[%s6102_s13 + $0x160] sm:$0xff] %vm2916_vm1, %v4324_v36  ;;  %v2051_v38 = vpop.f32.mrb[90].mxu1 }
 0x384   : > { %v2821_v39 = vpop.f32.mrb[90].mxu0  ;;  %v2053_v40 = vpop.f32.mrb[91].mxu1 }
 0x385   : > { %v4325_v41 = vadd.f32 %v2821_v39, %v2051_v38  ;;  %v2823_v42 = vpop.f32.mrb[91].mxu0 }
 0x387   : > { %2962 = vst.msk [vmem:[%s6102_s13 + $0x168] sm:$0xff] %vm2916_vm1, %v4325_v41  ;;  %v2056_v43 = vpop.f32.mrb[92].mxu1 }
 0x388   : > { %v2826_v44 = vpop.f32.mrb[92].mxu0  ;;  %v2058_v45 = vpop.f32.mrb[93].mxu1 }
 0x389   : > { %v4326_v46 = vadd.f32 %v2826_v44, %v2056_v43  ;;  %v2828_v47 = vpop.f32.mrb[93].mxu0 }
 0x38b   : > { %2963 = vst.msk [vmem:[%s6102_s13 + $0x170] sm:$0xff] %vm2916_vm1, %v4326_v46  ;;  %v2061_v48 = vpop.f32.mrb[94].mxu1 }
 0x38c   : > { %v2831_v49 = vpop.f32.mrb[94].mxu0  ;;  %v2063_v50 = vpop.f32.mrb[95].mxu1 }
 0x38d   : > { %v4327_v51 = vadd.f32 %v2831_v49, %v2061_v48  ;;  %v2833_v52 = vpop.f32.mrb[95].mxu0 }
 0x38f   : > { %2964 = vst.msk [vmem:[%s6102_s13 + $0x178] sm:$0xff] %vm2916_vm1, %v4327_v51  ;;  %v2066_v3 = vpop.f32.mrb[96].mxu1 }
 0x390   : > { %v2836_v53 = vpop.f32.mrb[96].mxu0  ;;  %v2068_v54 = vpop.f32.mrb[97].mxu1 }
 0x391   : > { %v4328_v55 = vadd.f32 %v2836_v53, %v2066_v3  ;;  %v2838_v56 = vpop.f32.mrb[97].mxu0 }
 0x393   : > { %2965 = vst.msk [vmem:[%s6102_s13 + $0x180] sm:$0xff] %vm2916_vm1, %v4328_v55  ;;  %v2071_v57 = vpop.f32.mrb[98].mxu1 }
 0x394   : > { %v2841_v58 = vpop.f32.mrb[98].mxu0  ;;  %v2073_v59 = vpop.f32.mrb[99].mxu1 }
 0x395   : > { %v4329_v60 = vadd.f32 %v2841_v58, %v2071_v57  ;;  %v2843_v61 = vpop.f32.mrb[99].mxu0 }
 0x397   : > { %2966 = vst.msk [vmem:[%s6102_s13 + $0x188] sm:$0xff] %vm2916_vm1, %v4329_v60  ;;  %v2076_v62 = vpop.f32.mrb[100].mxu1 }
 0x398   : > { %v2846_v63 = vpop.f32.mrb[100].mxu0  ;;  %v2078_v0 = vpop.f32.mrb[101].mxu1 }
 0x399   : > { %v4330_v1 = vadd.f32 %v2846_v63, %v2076_v62  ;;  %v2848_v2 = vpop.f32.mrb[101].mxu0 }
 0x39b   : > { %2967 = vst.msk [vmem:[%s6102_s13 + $0x190] sm:$0xff] %vm2916_vm1, %v4330_v1  ;;  %v2081_v4 = vpop.f32.mrb[102].mxu1 }
 0x39c   : > { %v2851_v5 = vpop.f32.mrb[102].mxu0  ;;  %v2083_v6 = vpop.f32.mrb[103].mxu1 }
 0x39d   : > { %v4331_v7 = vadd.f32 %v2851_v5, %v2081_v4  ;;  %v2853_v8 = vpop.f32.mrb[103].mxu0 }
 0x39f   : > { %2968 = vst.msk [vmem:[%s6102_s13 + $0x198] sm:$0xff] %vm2916_vm1, %v4331_v7  ;;  %v2086_v9 = vpop.f32.mrb[104].mxu1 }
 0x3a0   : > { %v2856_v10 = vpop.f32.mrb[104].mxu0  ;;  %v2088_v11 = vpop.f32.mrb[105].mxu1 }
 0x3a1   : > { %v4332_v12 = vadd.f32 %v2856_v10, %v2086_v9  ;;  %v2858_v13 = vpop.f32.mrb[105].mxu0 }
 0x3a3   : > { %2969 = vst.msk [vmem:[%s6102_s13 + $0x1a0] sm:$0xff] %vm2916_vm1, %v4332_v12  ;;  %v2091_v14 = vpop.f32.mrb[106].mxu1 }
 0x3a4   : > { %v2861_v15 = vpop.f32.mrb[106].mxu0  ;;  %v2093_v16 = vpop.f32.mrb[107].mxu1 }
 0x3a5   : > { %v4333_v17 = vadd.f32 %v2861_v15, %v2091_v14  ;;  %v2863_v18 = vpop.f32.mrb[107].mxu0 }
 0x3a7   : > { %2970 = vst.msk [vmem:[%s6102_s13 + $0x1a8] sm:$0xff] %vm2916_vm1, %v4333_v17  ;;  %v2096_v19 = vpop.f32.mrb[108].mxu1 }
 0x3a8   : > { %v2866_v20 = vpop.f32.mrb[108].mxu0  ;;  %v2098_v21 = vpop.f32.mrb[109].mxu1 }
 0x3a9   : > { %v4334_v22 = vadd.f32 %v2866_v20, %v2096_v19  ;;  %v2868_v23 = vpop.f32.mrb[109].mxu0 }
 0x3ab   : > { %2971 = vst.msk [vmem:[%s6102_s13 + $0x1b0] sm:$0xff] %vm2916_vm1, %v4334_v22  ;;  %v2101_v24 = vpop.f32.mrb[110].mxu1 }
 0x3ac   : > { %v2871_v25 = vpop.f32.mrb[110].mxu0  ;;  %v2103_v26 = vpop.f32.mrb[111].mxu1 }
 0x3ad   : > { %v4335_v27 = vadd.f32 %v2871_v25, %v2101_v24  ;;  %v2873_v28 = vpop.f32.mrb[111].mxu0 }
 0x3af   : > { %2972 = vst.msk [vmem:[%s6102_s13 + $0x1b8] sm:$0xff] %vm2916_vm1, %v4335_v27  ;;  %v2106_v29 = vpop.f32.mrb[112].mxu1 }
 0x3b0   : > { %v2876_v30 = vpop.f32.mrb[112].mxu0  ;;  %v2108_v31 = vpop.f32.mrb[113].mxu1 }
 0x3b1   : > { %v4336_v32 = vadd.f32 %v2876_v30, %v2106_v29  ;;  %v2878_v33 = vpop.f32.mrb[113].mxu0 }
 0x3b3   : > { %2973 = vst.msk [vmem:[%s6102_s13 + $0x1c0] sm:$0xff] %vm2916_vm1, %v4336_v32  ;;  %v2111_v34 = vpop.f32.mrb[114].mxu1 }
 0x3b4   : > { %v2881_v35 = vpop.f32.mrb[114].mxu0  ;;  %v2113_v36 = vpop.f32.mrb[115].mxu1 }
 0x3b5   : > { %v4337_v37 = vadd.f32 %v2881_v35, %v2111_v34  ;;  %v2883_v38 = vpop.f32.mrb[115].mxu0 }
 0x3b7   : > { %2974 = vst.msk [vmem:[%s6102_s13 + $0x1c8] sm:$0xff] %vm2916_vm1, %v4337_v37  ;;  %v2116_v39 = vpop.f32.mrb[116].mxu1 }
 0x3b8   : > { %v2886_v40 = vpop.f32.mrb[116].mxu0  ;;  %v2118_v41 = vpop.f32.mrb[117].mxu1 }
 0x3b9   : > { %v4338_v42 = vadd.f32 %v2886_v40, %v2116_v39  ;;  %v2888_v43 = vpop.f32.mrb[117].mxu0 }
 0x3bb   : > { %2975 = vst.msk [vmem:[%s6102_s13 + $0x1d0] sm:$0xff] %vm2916_vm1, %v4338_v42  ;;  %v2121_v44 = vpop.f32.mrb[118].mxu1 }
 0x3bc   : > { %v2891_v45 = vpop.f32.mrb[118].mxu0  ;;  %v2123_v46 = vpop.f32.mrb[119].mxu1 }
 0x3bd   : > { %v4339_v47 = vadd.f32 %v2891_v45, %v2121_v44  ;;  %v2893_v48 = vpop.f32.mrb[119].mxu0 }
 0x3bf   : > { %2976 = vst.msk [vmem:[%s6102_s13 + $0x1d8] sm:$0xff] %vm2916_vm1, %v4339_v47  ;;  %v2126_v49 = vpop.f32.mrb[120].mxu1 }
 0x3c0   : > { %v2896_v50 = vpop.f32.mrb[120].mxu0  ;;  %v2128_v51 = vpop.f32.mrb[121].mxu1 }
 0x3c1   : > { %v4340_v52 = vadd.f32 %v2896_v50, %v2126_v49  ;;  %v2898_v3 = vpop.f32.mrb[121].mxu0 }
 0x3c3   : > { %2977 = vst.msk [vmem:[%s6102_s13 + $0x1e0] sm:$0xff] %vm2916_vm1, %v4340_v52  ;;  %v2131_v53 = vpop.f32.mrb[122].mxu1 }
 0x3c4   : > { %v2901_v54 = vpop.f32.mrb[122].mxu0  ;;  %v2133_v55 = vpop.f32.mrb[123].mxu1 }
 0x3c5   : > { %v4341_v56 = vadd.f32 %v2901_v54, %v2131_v53  ;;  %v2903_v57 = vpop.f32.mrb[123].mxu0 }
 0x3c7   : > { %2978 = vst.msk [vmem:[%s6102_s13 + $0x1e8] sm:$0xff] %vm2916_vm1, %v4341_v56  ;;  %v2136_v58 = vpop.f32.mrb[124].mxu1 }
 0x3c8   : > { %v2906_v59 = vpop.f32.mrb[124].mxu0  ;;  %v2138_v60 = vpop.f32.mrb[125].mxu1 }
 0x3c9   : > { %v4342_v61 = vadd.f32 %v2906_v59, %v2136_v58  ;;  %v2908_v62 = vpop.f32.mrb[125].mxu0  ;;  %2984 = sbr.rel (%p4083_p7) target bundleno = 1168 (0x490), region = 44 }
 0x3cb   : > { %2979 = vst.msk [vmem:[%s6102_s13 + $0x1f0] sm:$0xff] %vm2916_vm1, %v4342_v61  ;;  %v2141_v63 = vpop.f32.mrb[126].mxu1 }
 0x3cc   : > { %v2911_v0 = vpop.f32.mrb[126].mxu0  ;;  %v2143_v1 = vpop.f32.mrb[127].mxu1 }
 0x3cd   : > { %v4343_v2 = vadd.f32 %v2911_v0, %v2141_v63  ;;  %v2913_v4 = vpop.f32.mrb[127].mxu0 }
 0x3cf   : > { %2980 = vst.msk [vmem:[%s6102_s13 + $0x1f8] sm:$0xff] %vm2916_vm1, %v4343_v2 }
 0x3d6   : > { %v6269_v5 = vld [vmem:[#allocation3] sm:$0xff]  ;;  %v6271_v6 = vld [vmem:[#allocation3 + $0x8] sm:$0xff]  ;;  %v6273_v7 = vld [vmem:[#allocation3 + $0x10] sm:$0xff] }
 0x3d7   : > { %3113 = vst.msk [vmem:[#allocation2] sm:$0xff] %vm2916_vm1, %v6269_v5  ;;  %3114 = vst.msk [vmem:[#allocation2 + $0x8] sm:$0xff] %vm2916_vm1, %v6271_v6  ;;  %v6281_v8 = vld [vmem:[#allocation3 + $0x18] sm:$0xff]  ;;  %v6283_v9 = vld [vmem:[#allocation3 + $0x20] sm:$0xff] }
 0x3d8   : > { %3115 = vst.msk [vmem:[#allocation2 + $0x10] sm:$0xff] %vm2916_vm1, %v6273_v7  ;;  %v6285_v10 = vld [vmem:[#allocation3 + $0x28] sm:$0xff]  ;;  %3116 = vst.msk [vmem:[#allocation2 + $0x18] sm:$0xff] %vm2916_vm1, %v6281_v8  ;;  %v6293_v11 = vld [vmem:[#allocation3 + $0x30] sm:$0xff] }
 0x3d9   : > { %3117 = vst.msk [vmem:[#allocation2 + $0x20] sm:$0xff] %vm2916_vm1, %v6283_v9  ;;  %3118 = vst.msk [vmem:[#allocation2 + $0x28] sm:$0xff] %vm2916_vm1, %v6285_v10  ;;  %v6295_v12 = vld [vmem:[#allocation3 + $0x38] sm:$0xff]  ;;  %v6297_v13 = vld [vmem:[#allocation3 + $0x40] sm:$0xff] }
 0x3da   : > { %3119 = vst.msk [vmem:[#allocation2 + $0x30] sm:$0xff] %vm2916_vm1, %v6293_v11  ;;  %3120 = vst.msk [vmem:[#allocation2 + $0x38] sm:$0xff] %vm2916_vm1, %v6295_v12  ;;  %v6305_v14 = vld [vmem:[#allocation3 + $0x48] sm:$0xff]  ;;  %v6307_v15 = vld [vmem:[#allocation3 + $0x50] sm:$0xff] }
 0x3db   : > { %3121 = vst.msk [vmem:[#allocation2 + $0x40] sm:$0xff] %vm2916_vm1, %v6297_v13  ;;  %v6309_v16 = vld [vmem:[#allocation3 + $0x58] sm:$0xff]  ;;  %3122 = vst.msk [vmem:[#allocation2 + $0x48] sm:$0xff] %vm2916_vm1, %v6305_v14  ;;  %v6317_v17 = vld [vmem:[#allocation3 + $0x60] sm:$0xff] }
 0x3dc   : > { %3123 = vst.msk [vmem:[#allocation2 + $0x50] sm:$0xff] %vm2916_vm1, %v6307_v15  ;;  %3124 = vst.msk [vmem:[#allocation2 + $0x58] sm:$0xff] %vm2916_vm1, %v6309_v16  ;;  %v6319_v18 = vld [vmem:[#allocation3 + $0x68] sm:$0xff]  ;;  %v6321_v19 = vld [vmem:[#allocation3 + $0x70] sm:$0xff] }
 0x3dd   : > { %3125 = vst.msk [vmem:[#allocation2 + $0x60] sm:$0xff] %vm2916_vm1, %v6317_v17  ;;  %3126 = vst.msk [vmem:[#allocation2 + $0x68] sm:$0xff] %vm2916_vm1, %v6319_v18  ;;  %v6329_v20 = vld [vmem:[#allocation3 + $0x78] sm:$0xff]  ;;  %v6331_v21 = vld [vmem:[#allocation3 + $0x80] sm:$0xff] }
 0x3de   : > { %3127 = vst.msk [vmem:[#allocation2 + $0x70] sm:$0xff] %vm2916_vm1, %v6321_v19  ;;  %v6333_v22 = vld [vmem:[#allocation3 + $0x88] sm:$0xff]  ;;  %3128 = vst.msk [vmem:[#allocation2 + $0x78] sm:$0xff] %vm2916_vm1, %v6329_v20  ;;  %v6341_v23 = vld [vmem:[#allocation3 + $0x90] sm:$0xff] }
 0x3df   : > { %3129 = vst.msk [vmem:[#allocation2 + $0x80] sm:$0xff] %vm2916_vm1, %v6331_v21  ;;  %3130 = vst.msk [vmem:[#allocation2 + $0x88] sm:$0xff] %vm2916_vm1, %v6333_v22  ;;  %v6343_v24 = vld [vmem:[#allocation3 + $0x98] sm:$0xff]  ;;  %v6345_v25 = vld [vmem:[#allocation3 + $0xa0] sm:$0xff] }
 0x3e0   : > { %3131 = vst.msk [vmem:[#allocation2 + $0x90] sm:$0xff] %vm2916_vm1, %v6341_v23  ;;  %3132 = vst.msk [vmem:[#allocation2 + $0x98] sm:$0xff] %vm2916_vm1, %v6343_v24  ;;  %v6353_v26 = vld [vmem:[#allocation3 + $0xa8] sm:$0xff]  ;;  %v6355_v27 = vld [vmem:[#allocation3 + $0xb0] sm:$0xff] }
 0x3e1   : > { %3133 = vst.msk [vmem:[#allocation2 + $0xa0] sm:$0xff] %vm2916_vm1, %v6345_v25  ;;  %v6357_v28 = vld [vmem:[#allocation3 + $0xb8] sm:$0xff]  ;;  %3134 = vst.msk [vmem:[#allocation2 + $0xa8] sm:$0xff] %vm2916_vm1, %v6353_v26  ;;  %v6365_v29 = vld [vmem:[#allocation3 + $0xc0] sm:$0xff] }
 0x3e2   : > { %3135 = vst.msk [vmem:[#allocation2 + $0xb0] sm:$0xff] %vm2916_vm1, %v6355_v27  ;;  %3136 = vst.msk [vmem:[#allocation2 + $0xb8] sm:$0xff] %vm2916_vm1, %v6357_v28  ;;  %v6367_v30 = vld [vmem:[#allocation3 + $0xc8] sm:$0xff]  ;;  %v6369_v31 = vld [vmem:[#allocation3 + $0xd0] sm:$0xff] }
 0x3e3   : > { %3137 = vst.msk [vmem:[#allocation2 + $0xc0] sm:$0xff] %vm2916_vm1, %v6365_v29  ;;  %3138 = vst.msk [vmem:[#allocation2 + $0xc8] sm:$0xff] %vm2916_vm1, %v6367_v30  ;;  %v6377_v32 = vld [vmem:[#allocation3 + $0xd8] sm:$0xff]  ;;  %v6379_v33 = vld [vmem:[#allocation3 + $0xe0] sm:$0xff] }
 0x3e4   : > { %3139 = vst.msk [vmem:[#allocation2 + $0xd0] sm:$0xff] %vm2916_vm1, %v6369_v31  ;;  %v6381_v34 = vld [vmem:[#allocation3 + $0xe8] sm:$0xff]  ;;  %3140 = vst.msk [vmem:[#allocation2 + $0xd8] sm:$0xff] %vm2916_vm1, %v6377_v32  ;;  %v6389_v35 = vld [vmem:[#allocation3 + $0xf0] sm:$0xff] }
 0x3e5   : > { %3141 = vst.msk [vmem:[#allocation2 + $0xe0] sm:$0xff] %vm2916_vm1, %v6379_v33  ;;  %3142 = vst.msk [vmem:[#allocation2 + $0xe8] sm:$0xff] %vm2916_vm1, %v6381_v34  ;;  %v6391_v36 = vld [vmem:[#allocation3 + $0xf8] sm:$0xff]  ;;  %v6393_v37 = vld [vmem:[#allocation3 + $0x100] sm:$0xff] }
 0x3e6   : > { %3143 = vst.msk [vmem:[#allocation2 + $0xf0] sm:$0xff] %vm2916_vm1, %v6389_v35  ;;  %3144 = vst.msk [vmem:[#allocation2 + $0xf8] sm:$0xff] %vm2916_vm1, %v6391_v36  ;;  %v6401_v38 = vld [vmem:[#allocation3 + $0x108] sm:$0xff]  ;;  %v6403_v39 = vld [vmem:[#allocation3 + $0x110] sm:$0xff] }
 0x3e7   : > { %3145 = vst.msk [vmem:[#allocation2 + $0x100] sm:$0xff] %vm2916_vm1, %v6393_v37  ;;  %v6405_v40 = vld [vmem:[#allocation3 + $0x118] sm:$0xff]  ;;  %3146 = vst.msk [vmem:[#allocation2 + $0x108] sm:$0xff] %vm2916_vm1, %v6401_v38  ;;  %v6413_v41 = vld [vmem:[#allocation3 + $0x120] sm:$0xff] }
 0x3e8   : > { %3147 = vst.msk [vmem:[#allocation2 + $0x110] sm:$0xff] %vm2916_vm1, %v6403_v39  ;;  %3148 = vst.msk [vmem:[#allocation2 + $0x118] sm:$0xff] %vm2916_vm1, %v6405_v40  ;;  %v6415_v42 = vld [vmem:[#allocation3 + $0x128] sm:$0xff]  ;;  %v6417_v43 = vld [vmem:[#allocation3 + $0x130] sm:$0xff] }
 0x3e9   : > { %3149 = vst.msk [vmem:[#allocation2 + $0x120] sm:$0xff] %vm2916_vm1, %v6413_v41  ;;  %3150 = vst.msk [vmem:[#allocation2 + $0x128] sm:$0xff] %vm2916_vm1, %v6415_v42  ;;  %v6425_v44 = vld [vmem:[#allocation3 + $0x138] sm:$0xff]  ;;  %v6427_v45 = vld [vmem:[#allocation3 + $0x140] sm:$0xff] }
 0x3ea   : > { %3151 = vst.msk [vmem:[#allocation2 + $0x130] sm:$0xff] %vm2916_vm1, %v6417_v43  ;;  %v6429_v46 = vld [vmem:[#allocation3 + $0x148] sm:$0xff]  ;;  %3152 = vst.msk [vmem:[#allocation2 + $0x138] sm:$0xff] %vm2916_vm1, %v6425_v44  ;;  %v6437_v47 = vld [vmem:[#allocation3 + $0x150] sm:$0xff] }
 0x3eb   : > { %3153 = vst.msk [vmem:[#allocation2 + $0x140] sm:$0xff] %vm2916_vm1, %v6427_v45  ;;  %3154 = vst.msk [vmem:[#allocation2 + $0x148] sm:$0xff] %vm2916_vm1, %v6429_v46  ;;  %v6439_v48 = vld [vmem:[#allocation3 + $0x158] sm:$0xff]  ;;  %v6441_v49 = vld [vmem:[#allocation3 + $0x160] sm:$0xff] }
 0x3ec   : > { %3155 = vst.msk [vmem:[#allocation2 + $0x150] sm:$0xff] %vm2916_vm1, %v6437_v47  ;;  %3156 = vst.msk [vmem:[#allocation2 + $0x158] sm:$0xff] %vm2916_vm1, %v6439_v48  ;;  %v6449_v50 = vld [vmem:[#allocation3 + $0x168] sm:$0xff]  ;;  %v6451_v51 = vld [vmem:[#allocation3 + $0x170] sm:$0xff] }
 0x3ed   : > { %3157 = vst.msk [vmem:[#allocation2 + $0x160] sm:$0xff] %vm2916_vm1, %v6441_v49  ;;  %v6453_v52 = vld [vmem:[#allocation3 + $0x178] sm:$0xff]  ;;  %3158 = vst.msk [vmem:[#allocation2 + $0x168] sm:$0xff] %vm2916_vm1, %v6449_v50  ;;  %v6461_v3 = vld [vmem:[#allocation3 + $0x180] sm:$0xff] }
 0x3ee   : > { %3159 = vst.msk [vmem:[#allocation2 + $0x170] sm:$0xff] %vm2916_vm1, %v6451_v51  ;;  %3160 = vst.msk [vmem:[#allocation2 + $0x178] sm:$0xff] %vm2916_vm1, %v6453_v52  ;;  %v6463_v53 = vld [vmem:[#allocation3 + $0x188] sm:$0xff]  ;;  %v6465_v54 = vld [vmem:[#allocation3 + $0x190] sm:$0xff] }
 0x3ef   : > { %7663 = vst [vmem:[#allocation8_spill] sm:$0xff] %v6463_v53  ;;  %7664 = vst [vmem:[#allocation9_spill] sm:$0xff] %v6465_v54  ;;  %v6473_v55 = vld [vmem:[#allocation3 + $0x198] sm:$0xff]  ;;  %v6475_v56 = vld [vmem:[#allocation3 + $0x1a0] sm:$0xff] }
 0x3f0   : > { %3161 = vst.msk [vmem:[#allocation2 + $0x180] sm:$0xff] %vm2916_vm1, %v6461_v3  ;;  %3162 = vst.msk [vmem:[#allocation2 + $0x188] sm:$0xff] %vm2916_vm1, %v6463_v53  ;;  %v6477_v57 = vld [vmem:[#allocation3 + $0x1a8] sm:$0xff]  ;;  %v6485_v58 = vld [vmem:[#allocation3 + $0x1b0] sm:$0xff] }
 0x3f1   : > { %3163 = vst.msk [vmem:[#allocation2 + $0x190] sm:$0xff] %vm2916_vm1, %v6465_v54  ;;  %7665 = vst [vmem:[#allocation10_spill] sm:$0xff] %v6473_v55  ;;  %v6487_v59 = vld [vmem:[#allocation3 + $0x1b8] sm:$0xff]  ;;  %v6489_v60 = vld [vmem:[#allocation3 + $0x1c0] sm:$0xff] }
 0x3f2   : > { %7666 = vst [vmem:[#allocation11_spill] sm:$0xff] %v6475_v56  ;;  %7667 = vst [vmem:[#allocation12_spill] sm:$0xff] %v6477_v57  ;;  %v6497_v61 = vld [vmem:[#allocation3 + $0x1c8] sm:$0xff]  ;;  %v6499_v62 = vld [vmem:[#allocation3 + $0x1d0] sm:$0xff] }
 0x3f3   : > { %3164 = vst.msk [vmem:[#allocation2 + $0x198] sm:$0xff] %vm2916_vm1, %v6473_v55  ;;  %3165 = vst.msk [vmem:[#allocation2 + $0x1a0] sm:$0xff] %vm2916_vm1, %v6475_v56  ;;  %v6501_v63 = vld [vmem:[#allocation3 + $0x1d8] sm:$0xff]  ;;  %v6509_v0 = vld [vmem:[#allocation3 + $0x1e0] sm:$0xff] }
 0x3f4   : > { %3166 = vst.msk [vmem:[#allocation2 + $0x1a8] sm:$0xff] %vm2916_vm1, %v6477_v57  ;;  %7668 = vst [vmem:[#allocation13_spill] sm:$0xff] %v6485_v58  ;;  %v6511_v1 = vld [vmem:[#allocation3 + $0x1e8] sm:$0xff]  ;;  %v6513_v2 = vld [vmem:[#allocation3 + $0x1f0] sm:$0xff] }
 0x3f5   : > { %7669 = vst [vmem:[#allocation14_spill] sm:$0xff] %v6487_v59  ;;  %7670 = vst [vmem:[#allocation15_spill] sm:$0xff] %v6489_v60  ;;  %v6521_v4 = vld [vmem:[#allocation3 + $0x1f8] sm:$0xff]  ;;  %v3245_v57 = vld [vmem:[#allocation4 + $0x20] sm:$0xff] }
 0x3f6   : > { %3167 = vst.msk [vmem:[#allocation2 + $0x1b0] sm:$0xff] %vm2916_vm1, %v6485_v58  ;;  %3168 = vst.msk [vmem:[#allocation2 + $0x1b8] sm:$0xff] %vm2916_vm1, %v6487_v59  ;;  %v3244_v59 = vld [vmem:[#allocation4 + $0x18] sm:$0xff]  ;;  %v3246_v56 = vld [vmem:[#allocation4 + $0x28] sm:$0xff] }
 0x3f7   : > { %3169 = vst.msk [vmem:[#allocation2 + $0x1c0] sm:$0xff] %vm2916_vm1, %v6489_v60  ;;  %7671 = vst [vmem:[#allocation16_spill] sm:$0xff] %v6497_v61  ;;  %v3243_v60 = vld [vmem:[#allocation4 + $0x10] sm:$0xff]  ;;  %v3372_v58 = vadd.f32 %v3244_v59, %v6281_v8  ;;  %v3249_v54 = vld [vmem:[#allocation4 + $0x40] sm:$0xff] }
 0x3f8   : > { %7672 = vst [vmem:[#allocation17_spill] sm:$0xff] %v6499_v62  ;;  %7673 = vst [vmem:[#allocation18_spill] sm:$0xff] %v6501_v63  ;;  %v3247_v55 = vld [vmem:[#allocation4 + $0x30] sm:$0xff]  ;;  %v3250_v53 = vld [vmem:[#allocation4 + $0x48] sm:$0xff] }
 0x3f9   : > { %3170 = vst.msk [vmem:[#allocation2 + $0x1c8] sm:$0xff] %vm2916_vm1, %v6497_v61  ;;  %3171 = vst.msk [vmem:[#allocation2 + $0x1d0] sm:$0xff] %vm2916_vm1, %v6499_v62  ;;  %v6523_v62 = vld [vmem:[#allocation3 + $0x200] sm:$0xff]  ;;  %v3378_v8 = vadd.f32 %v3250_v53, %v6305_v14  ;;  %v3258_v59 = vld [vmem:[#allocation4 + $0x88] sm:$0xff] }
 0x3fa   : > { %3172 = vst.msk [vmem:[#allocation2 + $0x1d8] sm:$0xff] %vm2916_vm1, %v6501_v63  ;;  %7674 = vst [vmem:[#allocation19_spill] sm:$0xff] %v6509_v0  ;;  %v6525_v63 = vld [vmem:[#allocation3 + $0x208] sm:$0xff] }
 0x3fb   : > { %7675 = vst [vmem:[#allocation20_spill] sm:$0xff] %v6511_v1  ;;  %7676 = vst [vmem:[#allocation21_spill] sm:$0xff] %v6513_v2 }
 0x3fc   : > { %3173 = vst.msk [vmem:[#allocation2 + $0x1e0] sm:$0xff] %vm2916_vm1, %v6509_v0  ;;  %3174 = vst.msk [vmem:[#allocation2 + $0x1e8] sm:$0xff] %vm2916_vm1, %v6511_v1  ;;  %v6533_v0 = vld [vmem:[#allocation3 + $0x210] sm:$0xff]  ;;  %v6535_v1 = vld [vmem:[#allocation3 + $0x218] sm:$0xff] }
 0x3fd   : > { %3175 = vst.msk [vmem:[#allocation2 + $0x1f0] sm:$0xff] %vm2916_vm1, %v6513_v2  ;;  %7677 = vst [vmem:[#allocation22_spill] sm:$0xff] %v6521_v4  ;;  %v6537_v2 = vld [vmem:[#allocation3 + $0x220] sm:$0xff] }
 0x3fe   : > { %7678 = vst [vmem:[#allocation23_spill] sm:$0xff] %v6523_v62  ;;  %7679 = vst [vmem:[#allocation24_spill] sm:$0xff] %v6525_v63 }
 0x3ff   : > { %3176 = vst.msk [vmem:[#allocation2 + $0x1f8] sm:$0xff] %vm2916_vm1, %v6521_v4  ;;  %3177 = vst.msk [vmem:[#allocation2 + $0x200] sm:$0xff] %vm2916_vm1, %v6523_v62  ;;  %v6545_v4 = vld [vmem:[#allocation3 + $0x228] sm:$0xff]  ;;  %v6547_v62 = vld [vmem:[#allocation3 + $0x230] sm:$0xff] }
 0x400   : > { %3178 = vst.msk [vmem:[#allocation2 + $0x208] sm:$0xff] %vm2916_vm1, %v6525_v63  ;;  %7680 = vst [vmem:[#allocation25_spill] sm:$0xff] %v6533_v0  ;;  %v6549_v63 = vld [vmem:[#allocation3 + $0x238] sm:$0xff] }
 0x401   : > { %7681 = vst [vmem:[#allocation26_spill] sm:$0xff] %v6535_v1  ;;  %7682 = vst [vmem:[#allocation27_spill] sm:$0xff] %v6537_v2 }
 0x402   : > { %3179 = vst.msk [vmem:[#allocation2 + $0x210] sm:$0xff] %vm2916_vm1, %v6533_v0  ;;  %3180 = vst.msk [vmem:[#allocation2 + $0x218] sm:$0xff] %vm2916_vm1, %v6535_v1  ;;  %v6557_v0 = vld [vmem:[#allocation3 + $0x240] sm:$0xff]  ;;  %v6559_v1 = vld [vmem:[#allocation3 + $0x248] sm:$0xff] }
 0x403   : > { %3181 = vst.msk [vmem:[#allocation2 + $0x220] sm:$0xff] %vm2916_vm1, %v6537_v2  ;;  %7683 = vst [vmem:[#allocation28_spill] sm:$0xff] %v6545_v4  ;;  %v6561_v2 = vld [vmem:[#allocation3 + $0x250] sm:$0xff] }
 0x404   : > { %7684 = vst [vmem:[#allocation29_spill] sm:$0xff] %v6547_v62  ;;  %7685 = vst [vmem:[#allocation30_spill] sm:$0xff] %v6549_v63 }
 0x405   : > { %3182 = vst.msk [vmem:[#allocation2 + $0x228] sm:$0xff] %vm2916_vm1, %v6545_v4  ;;  %3183 = vst.msk [vmem:[#allocation2 + $0x230] sm:$0xff] %vm2916_vm1, %v6547_v62  ;;  %v6569_v4 = vld [vmem:[#allocation3 + $0x258] sm:$0xff]  ;;  %v6571_v62 = vld [vmem:[#allocation3 + $0x260] sm:$0xff] }
 0x406   : > { %3184 = vst.msk [vmem:[#allocation2 + $0x238] sm:$0xff] %vm2916_vm1, %v6549_v63  ;;  %7686 = vst [vmem:[#allocation31_spill] sm:$0xff] %v6557_v0  ;;  %v6573_v63 = vld [vmem:[#allocation3 + $0x268] sm:$0xff] }
 0x407   : > { %7687 = vst [vmem:[#allocation32_spill] sm:$0xff] %v6559_v1  ;;  %7688 = vst [vmem:[#allocation33_spill] sm:$0xff] %v6561_v2 }
 0x408   : > { %3185 = vst.msk [vmem:[#allocation2 + $0x240] sm:$0xff] %vm2916_vm1, %v6557_v0  ;;  %3186 = vst.msk [vmem:[#allocation2 + $0x248] sm:$0xff] %vm2916_vm1, %v6559_v1  ;;  %v6581_v0 = vld [vmem:[#allocation3 + $0x270] sm:$0xff]  ;;  %v6583_v1 = vld [vmem:[#allocation3 + $0x278] sm:$0xff] }
 0x409   : > { %3187 = vst.msk [vmem:[#allocation2 + $0x250] sm:$0xff] %vm2916_vm1, %v6561_v2  ;;  %7689 = vst [vmem:[#allocation34_spill] sm:$0xff] %v6569_v4  ;;  %v6585_v2 = vld [vmem:[#allocation3 + $0x280] sm:$0xff] }
 0x40a   : > { %7690 = vst [vmem:[#allocation35_spill] sm:$0xff] %v6571_v62  ;;  %7691 = vst [vmem:[#allocation36_spill] sm:$0xff] %v6573_v63 }
 0x40b   : > { %3188 = vst.msk [vmem:[#allocation2 + $0x258] sm:$0xff] %vm2916_vm1, %v6569_v4  ;;  %3189 = vst.msk [vmem:[#allocation2 + $0x260] sm:$0xff] %vm2916_vm1, %v6571_v62  ;;  %v6593_v4 = vld [vmem:[#allocation3 + $0x288] sm:$0xff]  ;;  %v6595_v62 = vld [vmem:[#allocation3 + $0x290] sm:$0xff] }
 0x40c   : > { %3190 = vst.msk [vmem:[#allocation2 + $0x268] sm:$0xff] %vm2916_vm1, %v6573_v63  ;;  %7692 = vst [vmem:[#allocation37_spill] sm:$0xff] %v6581_v0  ;;  %v6597_v63 = vld [vmem:[#allocation3 + $0x298] sm:$0xff] }
 0x40d   : > { %7693 = vst [vmem:[#allocation38_spill] sm:$0xff] %v6583_v1  ;;  %7694 = vst [vmem:[#allocation39_spill] sm:$0xff] %v6585_v2 }
 0x40e   : > { %3191 = vst.msk [vmem:[#allocation2 + $0x270] sm:$0xff] %vm2916_vm1, %v6581_v0  ;;  %3192 = vst.msk [vmem:[#allocation2 + $0x278] sm:$0xff] %vm2916_vm1, %v6583_v1  ;;  %v6605_v0 = vld [vmem:[#allocation3 + $0x2a0] sm:$0xff]  ;;  %v6607_v1 = vld [vmem:[#allocation3 + $0x2a8] sm:$0xff] }
 0x40f   : > { %3193 = vst.msk [vmem:[#allocation2 + $0x280] sm:$0xff] %vm2916_vm1, %v6585_v2  ;;  %7695 = vst [vmem:[#allocation40_spill] sm:$0xff] %v6593_v4  ;;  %v6609_v2 = vld [vmem:[#allocation3 + $0x2b0] sm:$0xff] }
 0x410   : > { %7696 = vst [vmem:[#allocation41_spill] sm:$0xff] %v6595_v62  ;;  %7697 = vst [vmem:[#allocation42_spill] sm:$0xff] %v6597_v63 }
 0x411   : > { %3194 = vst.msk [vmem:[#allocation2 + $0x288] sm:$0xff] %vm2916_vm1, %v6593_v4  ;;  %3195 = vst.msk [vmem:[#allocation2 + $0x290] sm:$0xff] %vm2916_vm1, %v6595_v62  ;;  %v6617_v4 = vld [vmem:[#allocation3 + $0x2b8] sm:$0xff]  ;;  %v6619_v62 = vld [vmem:[#allocation3 + $0x2c0] sm:$0xff] }
 0x412   : > { %3196 = vst.msk [vmem:[#allocation2 + $0x298] sm:$0xff] %vm2916_vm1, %v6597_v63  ;;  %7698 = vst [vmem:[#allocation43_spill] sm:$0xff] %v6605_v0  ;;  %v6621_v63 = vld [vmem:[#allocation3 + $0x2c8] sm:$0xff] }
 0x413   : > { %7699 = vst [vmem:[#allocation44_spill] sm:$0xff] %v6607_v1  ;;  %7700 = vst [vmem:[#allocation45_spill] sm:$0xff] %v6609_v2 }
 0x414   : > { %3197 = vst.msk [vmem:[#allocation2 + $0x2a0] sm:$0xff] %vm2916_vm1, %v6605_v0  ;;  %3198 = vst.msk [vmem:[#allocation2 + $0x2a8] sm:$0xff] %vm2916_vm1, %v6607_v1  ;;  %v6629_v0 = vld [vmem:[#allocation3 + $0x2d0] sm:$0xff]  ;;  %v6631_v1 = vld [vmem:[#allocation3 + $0x2d8] sm:$0xff] }
 0x415   : > { %3199 = vst.msk [vmem:[#allocation2 + $0x2b0] sm:$0xff] %vm2916_vm1, %v6609_v2  ;;  %7701 = vst [vmem:[#allocation46_spill] sm:$0xff] %v6617_v4  ;;  %v6633_v2 = vld [vmem:[#allocation3 + $0x2e0] sm:$0xff] }
 0x416   : > { %7702 = vst [vmem:[#allocation47_spill] sm:$0xff] %v6619_v62  ;;  %7703 = vst [vmem:[#allocation48_spill] sm:$0xff] %v6621_v63 }
 0x417   : > { %3200 = vst.msk [vmem:[#allocation2 + $0x2b8] sm:$0xff] %vm2916_vm1, %v6617_v4  ;;  %3201 = vst.msk [vmem:[#allocation2 + $0x2c0] sm:$0xff] %vm2916_vm1, %v6619_v62  ;;  %v6641_v4 = vld [vmem:[#allocation3 + $0x2e8] sm:$0xff]  ;;  %v6643_v62 = vld [vmem:[#allocation3 + $0x2f0] sm:$0xff] }
 0x418   : > { %3202 = vst.msk [vmem:[#allocation2 + $0x2c8] sm:$0xff] %vm2916_vm1, %v6621_v63  ;;  %7704 = vst [vmem:[#allocation49_spill] sm:$0xff] %v6629_v0  ;;  %v6645_v63 = vld [vmem:[#allocation3 + $0x2f8] sm:$0xff] }
 0x419   : > { %7705 = vst [vmem:[#allocation50_spill] sm:$0xff] %v6631_v1  ;;  %7706 = vst [vmem:[#allocation51_spill] sm:$0xff] %v6633_v2 }
 0x41a   : > { %3203 = vst.msk [vmem:[#allocation2 + $0x2d0] sm:$0xff] %vm2916_vm1, %v6629_v0  ;;  %3204 = vst.msk [vmem:[#allocation2 + $0x2d8] sm:$0xff] %vm2916_vm1, %v6631_v1  ;;  %v6653_v0 = vld [vmem:[#allocation3 + $0x300] sm:$0xff]  ;;  %v6655_v1 = vld [vmem:[#allocation3 + $0x308] sm:$0xff] }
 0x41b   : > { %3205 = vst.msk [vmem:[#allocation2 + $0x2e0] sm:$0xff] %vm2916_vm1, %v6633_v2  ;;  %7707 = vst [vmem:[#allocation52_spill] sm:$0xff] %v6641_v4  ;;  %v6657_v2 = vld [vmem:[#allocation3 + $0x310] sm:$0xff] }
 0x41c   : > { %7708 = vst [vmem:[#allocation53_spill] sm:$0xff] %v6643_v62  ;;  %7709 = vst [vmem:[#allocation54_spill] sm:$0xff] %v6645_v63 }
 0x41d   : > { %3206 = vst.msk [vmem:[#allocation2 + $0x2e8] sm:$0xff] %vm2916_vm1, %v6641_v4  ;;  %3207 = vst.msk [vmem:[#allocation2 + $0x2f0] sm:$0xff] %vm2916_vm1, %v6643_v62  ;;  %v6665_v4 = vld [vmem:[#allocation3 + $0x318] sm:$0xff]  ;;  %v6667_v62 = vld [vmem:[#allocation3 + $0x320] sm:$0xff] }
 0x41e   : > { %3208 = vst.msk [vmem:[#allocation2 + $0x2f8] sm:$0xff] %vm2916_vm1, %v6645_v63  ;;  %7710 = vst [vmem:[#allocation55_spill] sm:$0xff] %v6653_v0  ;;  %v6669_v63 = vld [vmem:[#allocation3 + $0x328] sm:$0xff] }
 0x41f   : > { %7711 = vst [vmem:[#allocation56_spill] sm:$0xff] %v6655_v1  ;;  %7712 = vst [vmem:[#allocation57_spill] sm:$0xff] %v6657_v2 }
 0x420   : > { %3209 = vst.msk [vmem:[#allocation2 + $0x300] sm:$0xff] %vm2916_vm1, %v6653_v0  ;;  %3210 = vst.msk [vmem:[#allocation2 + $0x308] sm:$0xff] %vm2916_vm1, %v6655_v1  ;;  %v6677_v0 = vld [vmem:[#allocation3 + $0x330] sm:$0xff]  ;;  %v6679_v1 = vld [vmem:[#allocation3 + $0x338] sm:$0xff] }
 0x421   : > { %3211 = vst.msk [vmem:[#allocation2 + $0x310] sm:$0xff] %vm2916_vm1, %v6657_v2  ;;  %7713 = vst [vmem:[#allocation58_spill] sm:$0xff] %v6665_v4  ;;  %v6681_v2 = vld [vmem:[#allocation3 + $0x340] sm:$0xff] }
 0x422   : > { %7714 = vst [vmem:[#allocation59_spill] sm:$0xff] %v6667_v62  ;;  %7715 = vst [vmem:[#allocation60_spill] sm:$0xff] %v6669_v63 }
 0x423   : > { %3212 = vst.msk [vmem:[#allocation2 + $0x318] sm:$0xff] %vm2916_vm1, %v6665_v4  ;;  %3213 = vst.msk [vmem:[#allocation2 + $0x320] sm:$0xff] %vm2916_vm1, %v6667_v62  ;;  %v6689_v4 = vld [vmem:[#allocation3 + $0x348] sm:$0xff]  ;;  %v6691_v62 = vld [vmem:[#allocation3 + $0x350] sm:$0xff] }
 0x424   : > { %3214 = vst.msk [vmem:[#allocation2 + $0x328] sm:$0xff] %vm2916_vm1, %v6669_v63  ;;  %7716 = vst [vmem:[#allocation61_spill] sm:$0xff] %v6677_v0  ;;  %v6693_v63 = vld [vmem:[#allocation3 + $0x358] sm:$0xff] }
 0x425   : > { %7717 = vst [vmem:[#allocation62_spill] sm:$0xff] %v6679_v1  ;;  %7718 = vst [vmem:[#allocation63_spill] sm:$0xff] %v6681_v2 }
 0x426   : > { %3215 = vst.msk [vmem:[#allocation2 + $0x330] sm:$0xff] %vm2916_vm1, %v6677_v0  ;;  %3216 = vst.msk [vmem:[#allocation2 + $0x338] sm:$0xff] %vm2916_vm1, %v6679_v1  ;;  %v6701_v0 = vld [vmem:[#allocation3 + $0x360] sm:$0xff]  ;;  %v6703_v1 = vld [vmem:[#allocation3 + $0x368] sm:$0xff] }
 0x427   : > { %3217 = vst.msk [vmem:[#allocation2 + $0x340] sm:$0xff] %vm2916_vm1, %v6681_v2  ;;  %7719 = vst [vmem:[#allocation64_spill] sm:$0xff] %v6689_v4  ;;  %v6705_v2 = vld [vmem:[#allocation3 + $0x370] sm:$0xff] }
 0x428   : > { %7720 = vst [vmem:[#allocation65_spill] sm:$0xff] %v6691_v62  ;;  %7721 = vst [vmem:[#allocation66_spill] sm:$0xff] %v6693_v63 }
 0x429   : > { %3218 = vst.msk [vmem:[#allocation2 + $0x348] sm:$0xff] %vm2916_vm1, %v6689_v4  ;;  %3219 = vst.msk [vmem:[#allocation2 + $0x350] sm:$0xff] %vm2916_vm1, %v6691_v62  ;;  %v6713_v4 = vld [vmem:[#allocation3 + $0x378] sm:$0xff]  ;;  %v6715_v62 = vld [vmem:[#allocation3 + $0x380] sm:$0xff] }
 0x42a   : > { %3220 = vst.msk [vmem:[#allocation2 + $0x358] sm:$0xff] %vm2916_vm1, %v6693_v63  ;;  %7722 = vst [vmem:[#allocation67_spill] sm:$0xff] %v6701_v0  ;;  %v6717_v63 = vld [vmem:[#allocation3 + $0x388] sm:$0xff] }
 0x42b   : > { %7723 = vst [vmem:[#allocation68_spill] sm:$0xff] %v6703_v1  ;;  %7724 = vst [vmem:[#allocation69_spill] sm:$0xff] %v6705_v2 }
 0x42c   : > { %3221 = vst.msk [vmem:[#allocation2 + $0x360] sm:$0xff] %vm2916_vm1, %v6701_v0  ;;  %3222 = vst.msk [vmem:[#allocation2 + $0x368] sm:$0xff] %vm2916_vm1, %v6703_v1  ;;  %v6725_v0 = vld [vmem:[#allocation3 + $0x390] sm:$0xff]  ;;  %v6727_v1 = vld [vmem:[#allocation3 + $0x398] sm:$0xff] }
 0x42d   : > { %3223 = vst.msk [vmem:[#allocation2 + $0x370] sm:$0xff] %vm2916_vm1, %v6705_v2  ;;  %7725 = vst [vmem:[#allocation70_spill] sm:$0xff] %v6713_v4  ;;  %v6729_v2 = vld [vmem:[#allocation3 + $0x3a0] sm:$0xff] }
 0x42e   : > { %7726 = vst [vmem:[#allocation71_spill] sm:$0xff] %v6715_v62  ;;  %7727 = vst [vmem:[#allocation72_spill] sm:$0xff] %v6717_v63 }
 0x42f   : > { %3224 = vst.msk [vmem:[#allocation2 + $0x378] sm:$0xff] %vm2916_vm1, %v6713_v4  ;;  %3225 = vst.msk [vmem:[#allocation2 + $0x380] sm:$0xff] %vm2916_vm1, %v6715_v62  ;;  %v6737_v4 = vld [vmem:[#allocation3 + $0x3a8] sm:$0xff]  ;;  %v6739_v62 = vld [vmem:[#allocation3 + $0x3b0] sm:$0xff] }
 0x430   : > { %3226 = vst.msk [vmem:[#allocation2 + $0x388] sm:$0xff] %vm2916_vm1, %v6717_v63  ;;  %7728 = vst [vmem:[#allocation73_spill] sm:$0xff] %v6725_v0  ;;  %v6741_v63 = vld [vmem:[#allocation3 + $0x3b8] sm:$0xff] }
 0x431   : > { %7729 = vst [vmem:[#allocation74_spill] sm:$0xff] %v6727_v1  ;;  %7730 = vst [vmem:[#allocation75_spill] sm:$0xff] %v6729_v2 }
 0x432   : > { %3227 = vst.msk [vmem:[#allocation2 + $0x390] sm:$0xff] %vm2916_vm1, %v6725_v0  ;;  %3228 = vst.msk [vmem:[#allocation2 + $0x398] sm:$0xff] %vm2916_vm1, %v6727_v1  ;;  %v6749_v0 = vld [vmem:[#allocation3 + $0x3c0] sm:$0xff]  ;;  %v6751_v1 = vld [vmem:[#allocation3 + $0x3c8] sm:$0xff] }
 0x433   : > { %3229 = vst.msk [vmem:[#allocation2 + $0x3a0] sm:$0xff] %vm2916_vm1, %v6729_v2  ;;  %7731 = vst [vmem:[#allocation76_spill] sm:$0xff] %v6737_v4  ;;  %v6753_v2 = vld [vmem:[#allocation3 + $0x3d0] sm:$0xff] }
 0x434   : > { %7732 = vst [vmem:[#allocation77_spill] sm:$0xff] %v6739_v62  ;;  %7733 = vst [vmem:[#allocation78_spill] sm:$0xff] %v6741_v63 }
 0x435   : > { %3230 = vst.msk [vmem:[#allocation2 + $0x3a8] sm:$0xff] %vm2916_vm1, %v6737_v4  ;;  %3231 = vst.msk [vmem:[#allocation2 + $0x3b0] sm:$0xff] %vm2916_vm1, %v6739_v62  ;;  %v6761_v4 = vld [vmem:[#allocation3 + $0x3d8] sm:$0xff]  ;;  %v6763_v62 = vld [vmem:[#allocation3 + $0x3e0] sm:$0xff] }
 0x436   : > { %3232 = vst.msk [vmem:[#allocation2 + $0x3b8] sm:$0xff] %vm2916_vm1, %v6741_v63  ;;  %7734 = vst [vmem:[#allocation79_spill] sm:$0xff] %v6749_v0  ;;  %v6765_v63 = vld [vmem:[#allocation3 + $0x3e8] sm:$0xff] }
 0x437   : > { %7735 = vst [vmem:[#allocation80_spill] sm:$0xff] %v6751_v1  ;;  %7736 = vst [vmem:[#allocation81_spill] sm:$0xff] %v6753_v2 }
 0x438   : > { %3233 = vst.msk [vmem:[#allocation2 + $0x3c0] sm:$0xff] %vm2916_vm1, %v6749_v0  ;;  %3234 = vst.msk [vmem:[#allocation2 + $0x3c8] sm:$0xff] %vm2916_vm1, %v6751_v1  ;;  %v6773_v0 = vld [vmem:[#allocation3 + $0x3f0] sm:$0xff]  ;;  %v6775_v1 = vld [vmem:[#allocation3 + $0x3f8] sm:$0xff] }
 0x439   : > { %3235 = vst.msk [vmem:[#allocation2 + $0x3d0] sm:$0xff] %vm2916_vm1, %v6753_v2  ;;  %7737 = vst [vmem:[#allocation82_spill] sm:$0xff] %v6761_v4  ;;  %v3241_v2 = vld [vmem:[#allocation4] sm:$0xff] }
 0x43a   : > { %7738 = vst [vmem:[#allocation83_spill] sm:$0xff] %v6763_v62  ;;  %7739 = vst [vmem:[#allocation84_spill] sm:$0xff] %v6765_v63  ;;  %v3369_v61 = vadd.f32 %v3241_v2, %v6269_v5  ;;  %v3375_v5 = vadd.f32 %v3247_v55, %v6293_v11  ;;  %v3248_v2 = vld [vmem:[#allocation4 + $0x38] sm:$0xff] }
 0x43b   : > { %3236 = vst.msk [vmem:[#allocation2 + $0x3d8] sm:$0xff] %vm2916_vm1, %v6761_v4  ;;  %3237 = vst.msk [vmem:[#allocation2 + $0x3e0] sm:$0xff] %vm2916_vm1, %v6763_v62  ;;  %v3242_v4 = vld [vmem:[#allocation4 + $0x8] sm:$0xff] }
 0x43c   : > { %3238 = vst.msk [vmem:[#allocation2 + $0x3e8] sm:$0xff] %vm2916_vm1, %v6765_v63  ;;  %7740 = vst [vmem:[#allocation85_spill] sm:$0xff] %v6773_v0  ;;  %v3370_v62 = vadd.f32 %v3242_v4, %v6271_v6  ;;  %v3371_v63 = vadd.f32 %v3243_v60, %v6273_v7  ;;  %v3376_v6 = vadd.f32 %v3248_v2, %v6295_v12  ;;  %v3254_v12 = vld [vmem:[#allocation4 + $0x68] sm:$0xff]  ;;  %v3267_v2 = vld [vmem:[#allocation4 + $0xd0] sm:$0xff] }
 0x43d   : > { %7741 = vst [vmem:[#allocation86_spill] sm:$0xff] %v6775_v1  ;;  %3239 = vst.msk [vmem:[#allocation2 + $0x3f0] sm:$0xff] %vm2916_vm1, %v6773_v0  ;;  %v3373_v0 = vadd.f32 %v3245_v57, %v6283_v9  ;;  %v3377_v7 = vadd.f32 %v3249_v54, %v6297_v13  ;;  %v3251_v9 = vld [vmem:[#allocation4 + $0x50] sm:$0xff]  ;;  %v3252_v57 = vld [vmem:[#allocation4 + $0x58] sm:$0xff]  ;;  %v3382_v14 = vadd.f32 %v3254_v12, %v6319_v18 }
 0x43e   : > { %3240 = vst.msk [vmem:[#allocation2 + $0x3f8] sm:$0xff] %vm2916_vm1, %v6775_v1  ;;  %3497 = vst.msk [vmem:[#allocation4] sm:$0xff] %vm2916_vm1, %v3369_v61  ;;  %v3374_v1 = vadd.f32 %v3246_v56, %v6285_v10  ;;  %v3253_v10 = vld [vmem:[#allocation4 + $0x60] sm:$0xff]  ;;  %v3379_v11 = vadd.f32 %v3251_v9, %v6307_v15  ;;  %v3380_v55 = vadd.f32 %v3252_v57, %v6309_v16  ;;  %v3256_v13 = vld [vmem:[#allocation4 + $0x78] sm:$0xff] }
 0x43f   : > { %3498 = vst.msk [vmem:[#allocation4 + $0x8] sm:$0xff] %vm2916_vm1, %v3370_v62  ;;  %3499 = vst.msk [vmem:[#allocation4 + $0x10] sm:$0xff] %vm2916_vm1, %v3371_v63  ;;  %v3381_v56 = vadd.f32 %v3253_v10, %v6317_v17  ;;  %v3384_v54 = vadd.f32 %v3256_v13, %v6329_v20  ;;  %v3257_v15 = vld [vmem:[#allocation4 + $0x80] sm:$0xff]  ;;  %v3259_v16 = vld [vmem:[#allocation4 + $0x90] sm:$0xff]  ;;  %v3386_v60 = vadd.f32 %v3258_v59, %v6333_v22 }
 0x440   : > { %3500 = vst.msk [vmem:[#allocation4 + $0x18] sm:$0xff] %vm2916_vm1, %v3372_v58  ;;  %3501 = vst.msk [vmem:[#allocation4 + $0x20] sm:$0xff] %vm2916_vm1, %v3373_v0  ;;  %v3255_v58 = vld [vmem:[#allocation4 + $0x70] sm:$0xff]  ;;  %v3385_v17 = vadd.f32 %v3257_v15, %v6331_v21  ;;  %v3387_v61 = vadd.f32 %v3259_v16, %v6341_v23  ;;  %v3260_v18 = vld [vmem:[#allocation4 + $0x98] sm:$0xff] }
 0x441   : > { %3502 = vst.msk [vmem:[#allocation4 + $0x28] sm:$0xff] %vm2916_vm1, %v3374_v1  ;;  %3503 = vst.msk [vmem:[#allocation4 + $0x30] sm:$0xff] %vm2916_vm1, %v3375_v5  ;;  %v3383_v53 = vadd.f32 %v3255_v58, %v6321_v19  ;;  %v3261_v62 = vld [vmem:[#allocation4 + $0xa0] sm:$0xff]  ;;  %v3262_v19 = vld [vmem:[#allocation4 + $0xa8] sm:$0xff]  ;;  %v3388_v20 = vadd.f32 %v3260_v18, %v6343_v24 }
 0x442   : > { %3504 = vst.msk [vmem:[#allocation4 + $0x38] sm:$0xff] %vm2916_vm1, %v3376_v6  ;;  %3505 = vst.msk [vmem:[#allocation4 + $0x40] sm:$0xff] %vm2916_vm1, %v3377_v7  ;;  %v3389_v63 = vadd.f32 %v3261_v62, %v6345_v25  ;;  %v3390_v0 = vadd.f32 %v3262_v19, %v6353_v26  ;;  %v3263_v21 = vld [vmem:[#allocation4 + $0xb0] sm:$0xff]  ;;  %v3264_v1 = vld [vmem:[#allocation4 + $0xb8] sm:$0xff]  ;;  %v3395_v6 = vadd.f32 %v3267_v2, %v6369_v31 }
 0x443   : > { %3506 = vst.msk [vmem:[#allocation4 + $0x48] sm:$0xff] %vm2916_vm1, %v3378_v8  ;;  %3507 = vst.msk [vmem:[#allocation4 + $0x50] sm:$0xff] %vm2916_vm1, %v3379_v11  ;;  %v3265_v22 = vld [vmem:[#allocation4 + $0xc0] sm:$0xff]  ;;  %v3391_v23 = vadd.f32 %v3263_v21, %v6355_v27  ;;  %v3392_v4 = vadd.f32 %v3264_v1, %v6357_v28  ;;  %v3266_v24 = vld [vmem:[#allocation4 + $0xc8] sm:$0xff] }
 0x444   : > { %3508 = vst.msk [vmem:[#allocation4 + $0x58] sm:$0xff] %vm2916_vm1, %v3380_v55  ;;  %3509 = vst.msk [vmem:[#allocation4 + $0x60] sm:$0xff] %vm2916_vm1, %v3381_v56  ;;  %v3393_v5 = vadd.f32 %v3265_v22, %v6365_v29  ;;  %v3268_v25 = vld [vmem:[#allocation4 + $0xd8] sm:$0xff]  ;;  %v3394_v26 = vadd.f32 %v3266_v24, %v6367_v30  ;;  %v3269_v27 = vld [vmem:[#allocation4 + $0xe0] sm:$0xff] }
 0x445   : > { %3510 = vst.msk [vmem:[#allocation4 + $0x68] sm:$0xff] %vm2916_vm1, %v3382_v14  ;;  %3511 = vst.msk [vmem:[#allocation4 + $0x70] sm:$0xff] %vm2916_vm1, %v3383_v53  ;;  %v3396_v7 = vadd.f32 %v3268_v25, %v6377_v32  ;;  %v3270_v8 = vld [vmem:[#allocation4 + $0xe8] sm:$0xff]  ;;  %v3271_v28 = vld [vmem:[#allocation4 + $0xf0] sm:$0xff]  ;;  %v3397_v29 = vadd.f32 %v3269_v27, %v6379_v33 }
 0x446   : > { %3512 = vst.msk [vmem:[#allocation4 + $0x78] sm:$0xff] %vm2916_vm1, %v3384_v54  ;;  %3513 = vst.msk [vmem:[#allocation4 + $0x80] sm:$0xff] %vm2916_vm1, %v3385_v17  ;;  %v3398_v9 = vadd.f32 %v3270_v8, %v6381_v34  ;;  %v3399_v57 = vadd.f32 %v3271_v28, %v6389_v35  ;;  %v3272_v30 = vld [vmem:[#allocation4 + $0xf8] sm:$0xff]  ;;  %v3273_v10 = vld [vmem:[#allocation4 + $0x100] sm:$0xff] }
 0x447   : > { %3514 = vst.msk [vmem:[#allocation4 + $0x88] sm:$0xff] %vm2916_vm1, %v3386_v60  ;;  %3515 = vst.msk [vmem:[#allocation4 + $0x90] sm:$0xff] %vm2916_vm1, %v3387_v61  ;;  %v3274_v31 = vld [vmem:[#allocation4 + $0x108] sm:$0xff]  ;;  %v3400_v32 = vadd.f32 %v3272_v30, %v6391_v36  ;;  %v3401_v11 = vadd.f32 %v3273_v10, %v6393_v37  ;;  %v3275_v33 = vld [vmem:[#allocation4 + $0x110] sm:$0xff] }
 0x448   : > { %3516 = vst.msk [vmem:[#allocation4 + $0x98] sm:$0xff] %vm2916_vm1, %v3388_v20  ;;  %3517 = vst.msk [vmem:[#allocation4 + $0xa0] sm:$0xff] %vm2916_vm1, %v3389_v63  ;;  %v3402_v55 = vadd.f32 %v3274_v31, %v6401_v38  ;;  %v3276_v56 = vld [vmem:[#allocation4 + $0x118] sm:$0xff]  ;;  %v3277_v34 = vld [vmem:[#allocation4 + $0x120] sm:$0xff]  ;;  %v3403_v35 = vadd.f32 %v3275_v33, %v6403_v39 }
 0x449   : > { %3518 = vst.msk [vmem:[#allocation4 + $0xa8] sm:$0xff] %vm2916_vm1, %v3390_v0  ;;  %3519 = vst.msk [vmem:[#allocation4 + $0xb0] sm:$0xff] %vm2916_vm1, %v3391_v23  ;;  %v3404_v12 = vadd.f32 %v3276_v56, %v6405_v40  ;;  %v3405_v58 = vadd.f32 %v3277_v34, %v6413_v41  ;;  %v3278_v36 = vld [vmem:[#allocation4 + $0x128] sm:$0xff]  ;;  %v3279_v13 = vld [vmem:[#allocation4 + $0x130] sm:$0xff] }
 0x44a   : > { %3520 = vst.msk [vmem:[#allocation4 + $0xb8] sm:$0xff] %vm2916_vm1, %v3392_v4  ;;  %3521 = vst.msk [vmem:[#allocation4 + $0xc0] sm:$0xff] %vm2916_vm1, %v3393_v5  ;;  %v3280_v37 = vld [vmem:[#allocation4 + $0x138] sm:$0xff]  ;;  %v3406_v38 = vadd.f32 %v3278_v36, %v6415_v42  ;;  %v3407_v14 = vadd.f32 %v3279_v13, %v6417_v43  ;;  %v3281_v39 = vld [vmem:[#allocation4 + $0x140] sm:$0xff] }
 0x44b   : > { %3522 = vst.msk [vmem:[#allocation4 + $0xc8] sm:$0xff] %vm2916_vm1, %v3394_v26  ;;  %3523 = vst.msk [vmem:[#allocation4 + $0xd0] sm:$0xff] %vm2916_vm1, %v3395_v6  ;;  %v3408_v53 = vadd.f32 %v3280_v37, %v6425_v44  ;;  %v3282_v54 = vld [vmem:[#allocation4 + $0x148] sm:$0xff]  ;;  %v3283_v40 = vld [vmem:[#allocation4 + $0x150] sm:$0xff]  ;;  %v3409_v41 = vadd.f32 %v3281_v39, %v6427_v45 }
 0x44c   : > { %3524 = vst.msk [vmem:[#allocation4 + $0xd8] sm:$0xff] %vm2916_vm1, %v3396_v7  ;;  %3525 = vst.msk [vmem:[#allocation4 + $0xe0] sm:$0xff] %vm2916_vm1, %v3397_v29  ;;  %v3410_v15 = vadd.f32 %v3282_v54, %v6429_v46  ;;  %v3411_v59 = vadd.f32 %v3283_v40, %v6437_v47  ;;  %v3284_v42 = vld [vmem:[#allocation4 + $0x158] sm:$0xff]  ;;  %v3285_v16 = vld [vmem:[#allocation4 + $0x160] sm:$0xff] }
 0x44d   : > { %3526 = vst.msk [vmem:[#allocation4 + $0xe8] sm:$0xff] %vm2916_vm1, %v3398_v9  ;;  %3527 = vst.msk [vmem:[#allocation4 + $0xf0] sm:$0xff] %vm2916_vm1, %v3399_v57  ;;  %v3286_v43 = vld [vmem:[#allocation4 + $0x168] sm:$0xff]  ;;  %v3412_v44 = vadd.f32 %v3284_v42, %v6439_v48  ;;  %v3413_v17 = vadd.f32 %v3285_v16, %v6441_v49  ;;  %v3287_v45 = vld [vmem:[#allocation4 + $0x170] sm:$0xff] }
 0x44e   : > { %3528 = vst.msk [vmem:[#allocation4 + $0xf8] sm:$0xff] %vm2916_vm1, %v3400_v32  ;;  %3529 = vst.msk [vmem:[#allocation4 + $0x100] sm:$0xff] %vm2916_vm1, %v3401_v11  ;;  %v3414_v60 = vadd.f32 %v3286_v43, %v6449_v50  ;;  %v3288_v61 = vld [vmem:[#allocation4 + $0x178] sm:$0xff]  ;;  %v3289_v46 = vld [vmem:[#allocation4 + $0x180] sm:$0xff]  ;;  %v3415_v47 = vadd.f32 %v3287_v45, %v6451_v51 }
 0x44f   : > { %3530 = vst.msk [vmem:[#allocation4 + $0x108] sm:$0xff] %vm2916_vm1, %v3402_v55  ;;  %3531 = vst.msk [vmem:[#allocation4 + $0x110] sm:$0xff] %vm2916_vm1, %v3403_v35  ;;  %v3416_v18 = vadd.f32 %v3288_v61, %v6453_v52  ;;  %v3417_v62 = vadd.f32 %v3289_v46, %v6461_v3  ;;  %v3290_v48 = vld [vmem:[#allocation4 + $0x188] sm:$0xff]  ;;  %v3291_v19 = vld [vmem:[#allocation4 + $0x190] sm:$0xff] }
 0x450   : > { %3532 = vst.msk [vmem:[#allocation4 + $0x118] sm:$0xff] %vm2916_vm1, %v3404_v12  ;;  %3533 = vst.msk [vmem:[#allocation4 + $0x120] sm:$0xff] %vm2916_vm1, %v3405_v58  ;;  %v3292_v49 = vld [vmem:[#allocation4 + $0x198] sm:$0xff]  ;;  %v7742_v50 = vld [vmem:[#allocation8_spill] sm:$0xff] }
 0x451   : > { %3534 = vst.msk [vmem:[#allocation4 + $0x128] sm:$0xff] %vm2916_vm1, %v3406_v38  ;;  %3535 = vst.msk [vmem:[#allocation4 + $0x130] sm:$0xff] %vm2916_vm1, %v3407_v14  ;;  %v3418_v20 = vadd.f32 %v3290_v48, %v7742_v50  ;;  %v7743_v63 = vld [vmem:[#allocation9_spill] sm:$0xff]  ;;  %v7744_v21 = vld [vmem:[#allocation10_spill] sm:$0xff] }
 0x452   : > { %3536 = vst.msk [vmem:[#allocation4 + $0x138] sm:$0xff] %vm2916_vm1, %v3408_v53  ;;  %3537 = vst.msk [vmem:[#allocation4 + $0x140] sm:$0xff] %vm2916_vm1, %v3409_v41  ;;  %v3419_v0 = vadd.f32 %v3291_v19, %v7743_v63  ;;  %v3420_v1 = vadd.f32 %v3292_v49, %v7744_v21  ;;  %v3293_v51 = vld [vmem:[#allocation4 + $0x1a0] sm:$0xff]  ;;  %v3294_v22 = vld [vmem:[#allocation4 + $0x1a8] sm:$0xff] }
 0x453   : > { %3538 = vst.msk [vmem:[#allocation4 + $0x148] sm:$0xff] %vm2916_vm1, %v3410_v15  ;;  %3539 = vst.msk [vmem:[#allocation4 + $0x150] sm:$0xff] %vm2916_vm1, %v3411_v59  ;;  %v3295_v52 = vld [vmem:[#allocation4 + $0x1b0] sm:$0xff]  ;;  %v7745_v3 = vld [vmem:[#allocation11_spill] sm:$0xff] }
 0x454   : > { %3540 = vst.msk [vmem:[#allocation4 + $0x158] sm:$0xff] %vm2916_vm1, %v3412_v44  ;;  %3541 = vst.msk [vmem:[#allocation4 + $0x160] sm:$0xff] %vm2916_vm1, %v3413_v17  ;;  %v3421_v23 = vadd.f32 %v3293_v51, %v7745_v3  ;;  %v7746_v4 = vld [vmem:[#allocation12_spill] sm:$0xff]  ;;  %v7747_v24 = vld [vmem:[#allocation13_spill] sm:$0xff] }
 0x455   : > { %3542 = vst.msk [vmem:[#allocation4 + $0x168] sm:$0xff] %vm2916_vm1, %v3414_v60  ;;  %3543 = vst.msk [vmem:[#allocation4 + $0x170] sm:$0xff] %vm2916_vm1, %v3415_v47  ;;  %v3422_v5 = vadd.f32 %v3294_v22, %v7746_v4  ;;  %v3423_v2 = vadd.f32 %v3295_v52, %v7747_v24  ;;  %v3296_v25 = vld [vmem:[#allocation4 + $0x1b8] sm:$0xff]  ;;  %v3297_v26 = vld [vmem:[#allocation4 + $0x1c0] sm:$0xff] }
 0x456   : > { %3544 = vst.msk [vmem:[#allocation4 + $0x178] sm:$0xff] %vm2916_vm1, %v3416_v18  ;;  %3545 = vst.msk [vmem:[#allocation4 + $0x180] sm:$0xff] %vm2916_vm1, %v3417_v62  ;;  %v3298_v6 = vld [vmem:[#allocation4 + $0x1c8] sm:$0xff]  ;;  %v7748_v7 = vld [vmem:[#allocation14_spill] sm:$0xff] }
 0x457   : > { %3546 = vst.msk [vmem:[#allocation4 + $0x188] sm:$0xff] %vm2916_vm1, %v3418_v20  ;;  %3547 = vst.msk [vmem:[#allocation4 + $0x190] sm:$0xff] %vm2916_vm1, %v3419_v0  ;;  %v3424_v27 = vadd.f32 %v3296_v25, %v7748_v7  ;;  %v7749_v8 = vld [vmem:[#allocation15_spill] sm:$0xff]  ;;  %v7750_v29 = vld [vmem:[#allocation16_spill] sm:$0xff] }
 0x458   : > { %3548 = vst.msk [vmem:[#allocation4 + $0x198] sm:$0xff] %vm2916_vm1, %v3420_v1  ;;  %v3425_v28 = vadd.f32 %v3297_v26, %v7749_v8  ;;  %v3426_v9 = vadd.f32 %v3298_v6, %v7750_v29  ;;  %v3299_v57 = vld [vmem:[#allocation4 + $0x1d0] sm:$0xff]  ;;  %v3300_v30 = vld [vmem:[#allocation4 + $0x1d8] sm:$0xff]  ;;  %v3301_v10 = vld [vmem:[#allocation4 + $0x1e0] sm:$0xff] }
 0x459   : > { %3549 = vst.msk [vmem:[#allocation4 + $0x1a0] sm:$0xff] %vm2916_vm1, %v3421_v23  ;;  %3550 = vst.msk [vmem:[#allocation4 + $0x1a8] sm:$0xff] %vm2916_vm1, %v3422_v5  ;;  %v7751_v31 = vld [vmem:[#allocation17_spill] sm:$0xff]  ;;  %v7752_v11 = vld [vmem:[#allocation18_spill] sm:$0xff] }
 0x45a   : > { %3551 = vst.msk [vmem:[#allocation4 + $0x1b0] sm:$0xff] %vm2916_vm1, %v3423_v2  ;;  %v3427_v32 = vadd.f32 %v3299_v57, %v7751_v31  ;;  %v3428_v55 = vadd.f32 %v3300_v30, %v7752_v11  ;;  %v7753_v33 = vld [vmem:[#allocation19_spill] sm:$0xff]  ;;  %v3302_v34 = vld [vmem:[#allocation4 + $0x1e8] sm:$0xff]  ;;  %v3303_v35 = vld [vmem:[#allocation4 + $0x1f0] sm:$0xff] }
 0x45b   : > { %v3429_v56 = vadd.f32 %v3301_v10, %v7753_v33  ;;  %v3304_v12 = vld [vmem:[#allocation4 + $0x1f8] sm:$0xff]  ;;  %3552 = vst.msk [vmem:[#allocation4 + $0x1b8] sm:$0xff] %vm2916_vm1, %v3424_v27  ;;  %3553 = vst.msk [vmem:[#allocation4 + $0x1c0] sm:$0xff] %vm2916_vm1, %v3425_v28  ;;  %v7754_v58 = vld [vmem:[#allocation20_spill] sm:$0xff] }
 0x45c   : > { %3554 = vst.msk [vmem:[#allocation4 + $0x1c8] sm:$0xff] %vm2916_vm1, %v3426_v9  ;;  %v3430_v36 = vadd.f32 %v3302_v34, %v7754_v58  ;;  %v7755_v13 = vld [vmem:[#allocation21_spill] sm:$0xff]  ;;  %v7756_v38 = vld [vmem:[#allocation22_spill] sm:$0xff]  ;;  %v3305_v53 = vld [vmem:[#allocation4 + $0x200] sm:$0xff] }
 0x45d   : > { %v3431_v37 = vadd.f32 %v3303_v35, %v7755_v13  ;;  %v3432_v14 = vadd.f32 %v3304_v12, %v7756_v38  ;;  %v3306_v39 = vld [vmem:[#allocation4 + $0x208] sm:$0xff]  ;;  %v3307_v54 = vld [vmem:[#allocation4 + $0x210] sm:$0xff]  ;;  %3555 = vst.msk [vmem:[#allocation4 + $0x1d0] sm:$0xff] %vm2916_vm1, %v3427_v32  ;;  %3556 = vst.msk [vmem:[#allocation4 + $0x1d8] sm:$0xff] %vm2916_vm1, %v3428_v55 }
 0x45e   : > { %3557 = vst.msk [vmem:[#allocation4 + $0x1e0] sm:$0xff] %vm2916_vm1, %v3429_v56  ;;  %v7757_v40 = vld [vmem:[#allocation23_spill] sm:$0xff]  ;;  %v7758_v15 = vld [vmem:[#allocation24_spill] sm:$0xff]  ;;  %v7759_v42 = vld [vmem:[#allocation25_spill] sm:$0xff] }
 0x45f   : > { %v3433_v41 = vadd.f32 %v3305_v53, %v7757_v40  ;;  %v3434_v59 = vadd.f32 %v3306_v39, %v7758_v15  ;;  %v3435_v16 = vadd.f32 %v3307_v54, %v7759_v42  ;;  %v3308_v43 = vld [vmem:[#allocation4 + $0x218] sm:$0xff]  ;;  %v3309_v44 = vld [vmem:[#allocation4 + $0x220] sm:$0xff]  ;;  %v3310_v17 = vld [vmem:[#allocation4 + $0x228] sm:$0xff]  ;;  %3558 = vst.msk [vmem:[#allocation4 + $0x1e8] sm:$0xff] %vm2916_vm1, %v3430_v36 }
 0x460   : > { %3559 = vst.msk [vmem:[#allocation4 + $0x1f0] sm:$0xff] %vm2916_vm1, %v3431_v37  ;;  %3560 = vst.msk [vmem:[#allocation4 + $0x1f8] sm:$0xff] %vm2916_vm1, %v3432_v14  ;;  %v7760_v60 = vld [vmem:[#allocation26_spill] sm:$0xff]  ;;  %v7761_v61 = vld [vmem:[#allocation27_spill] sm:$0xff] }
 0x461   : > { %v3436_v45 = vadd.f32 %v3308_v43, %v7760_v60  ;;  %v3437_v46 = vadd.f32 %v3309_v44, %v7761_v61  ;;  %v7762_v47 = vld [vmem:[#allocation28_spill] sm:$0xff]  ;;  %v3311_v62 = vld [vmem:[#allocation4 + $0x230] sm:$0xff]  ;;  %v3312_v48 = vld [vmem:[#allocation4 + $0x238] sm:$0xff]  ;;  %3561 = vst.msk [vmem:[#allocation4 + $0x200] sm:$0xff] %vm2916_vm1, %v3433_v41 }
 0x462   : > { %v3438_v18 = vadd.f32 %v3310_v17, %v7762_v47  ;;  %v3313_v19 = vld [vmem:[#allocation4 + $0x240] sm:$0xff]  ;;  %3562 = vst.msk [vmem:[#allocation4 + $0x208] sm:$0xff] %vm2916_vm1, %v3434_v59  ;;  %3563 = vst.msk [vmem:[#allocation4 + $0x210] sm:$0xff] %vm2916_vm1, %v3435_v16  ;;  %v7763_v49 = vld [vmem:[#allocation29_spill] sm:$0xff] }
 0x463   : > { %v3439_v50 = vadd.f32 %v3311_v62, %v7763_v49  ;;  %v7764_v20 = vld [vmem:[#allocation30_spill] sm:$0xff]  ;;  %v7765_v0 = vld [vmem:[#allocation31_spill] sm:$0xff]  ;;  %v3314_v1 = vld [vmem:[#allocation4 + $0x248] sm:$0xff]  ;;  %3564 = vst.msk [vmem:[#allocation4 + $0x218] sm:$0xff] %vm2916_vm1, %v3436_v45 }
 0x464   : > { %v3440_v63 = vadd.f32 %v3312_v48, %v7764_v20  ;;  %v3441_v21 = vadd.f32 %v3313_v19, %v7765_v0  ;;  %v3315_v51 = vld [vmem:[#allocation4 + $0x250] sm:$0xff]  ;;  %v3316_v22 = vld [vmem:[#allocation4 + $0x258] sm:$0xff]  ;;  %3565 = vst.msk [vmem:[#allocation4 + $0x220] sm:$0xff] %vm2916_vm1, %v3437_v46  ;;  %3566 = vst.msk [vmem:[#allocation4 + $0x228] sm:$0xff] %vm2916_vm1, %v3438_v18 }
 0x465   : > { %v7766_v52 = vld [vmem:[#allocation32_spill] sm:$0xff]  ;;  %v7767_v23 = vld [vmem:[#allocation33_spill] sm:$0xff]  ;;  %v7768_v5 = vld [vmem:[#allocation34_spill] sm:$0xff]  ;;  %3567 = vst.msk [vmem:[#allocation4 + $0x230] sm:$0xff] %vm2916_vm1, %v3439_v50 }
 0x466   : > { %v3442_v3 = vadd.f32 %v3314_v1, %v7766_v52  ;;  %v3443_v4 = vadd.f32 %v3315_v51, %v7767_v23  ;;  %v3444_v24 = vadd.f32 %v3316_v22, %v7768_v5  ;;  %v3317_v2 = vld [vmem:[#allocation4 + $0x260] sm:$0xff]  ;;  %v3318_v25 = vld [vmem:[#allocation4 + $0x268] sm:$0xff]  ;;  %v3319_v26 = vld [vmem:[#allocation4 + $0x270] sm:$0xff]  ;;  %3568 = vst.msk [vmem:[#allocation4 + $0x238] sm:$0xff] %vm2916_vm1, %v3440_v63 }
 0x467   : > { %3569 = vst.msk [vmem:[#allocation4 + $0x240] sm:$0xff] %vm2916_vm1, %v3441_v21  ;;  %v7769_v6 = vld [vmem:[#allocation35_spill] sm:$0xff]  ;;  %v7770_v27 = vld [vmem:[#allocation36_spill] sm:$0xff]  ;;  %v7771_v28 = vld [vmem:[#allocation37_spill] sm:$0xff] }
 0x468   : > { %v3445_v7 = vadd.f32 %v3317_v2, %v7769_v6  ;;  %v3446_v8 = vadd.f32 %v3318_v25, %v7770_v27  ;;  %v3447_v29 = vadd.f32 %v3319_v26, %v7771_v28  ;;  %v3320_v9 = vld [vmem:[#allocation4 + $0x278] sm:$0xff]  ;;  %v3321_v57 = vld [vmem:[#allocation4 + $0x280] sm:$0xff]  ;;  %v3322_v30 = vld [vmem:[#allocation4 + $0x288] sm:$0xff]  ;;  %3570 = vst.msk [vmem:[#allocation4 + $0x248] sm:$0xff] %vm2916_vm1, %v3442_v3 }
 0x469   : > { %3571 = vst.msk [vmem:[#allocation4 + $0x250] sm:$0xff] %vm2916_vm1, %v3443_v4  ;;  %3572 = vst.msk [vmem:[#allocation4 + $0x258] sm:$0xff] %vm2916_vm1, %v3444_v24  ;;  %v7772_v10 = vld [vmem:[#allocation38_spill] sm:$0xff]  ;;  %v7773_v32 = vld [vmem:[#allocation39_spill] sm:$0xff] }
 0x46a   : > { %v3448_v31 = vadd.f32 %v3320_v9, %v7772_v10  ;;  %v3449_v11 = vadd.f32 %v3321_v57, %v7773_v32  ;;  %v7774_v55 = vld [vmem:[#allocation40_spill] sm:$0xff]  ;;  %v3323_v56 = vld [vmem:[#allocation4 + $0x290] sm:$0xff]  ;;  %v3324_v34 = vld [vmem:[#allocation4 + $0x298] sm:$0xff]  ;;  %3573 = vst.msk [vmem:[#allocation4 + $0x260] sm:$0xff] %vm2916_vm1, %v3445_v7 }
 0x46b   : > { %v3450_v33 = vadd.f32 %v3322_v30, %v7774_v55  ;;  %v3325_v35 = vld [vmem:[#allocation4 + $0x2a0] sm:$0xff]  ;;  %3574 = vst.msk [vmem:[#allocation4 + $0x268] sm:$0xff] %vm2916_vm1, %v3446_v8  ;;  %3575 = vst.msk [vmem:[#allocation4 + $0x270] sm:$0xff] %vm2916_vm1, %v3447_v29  ;;  %v7775_v12 = vld [vmem:[#allocation41_spill] sm:$0xff] }
 0x46c   : > { %v3451_v58 = vadd.f32 %v3323_v56, %v7775_v12  ;;  %v7776_v36 = vld [vmem:[#allocation42_spill] sm:$0xff]  ;;  %v7777_v37 = vld [vmem:[#allocation43_spill] sm:$0xff]  ;;  %v3326_v14 = vld [vmem:[#allocation4 + $0x2a8] sm:$0xff]  ;;  %3576 = vst.msk [vmem:[#allocation4 + $0x278] sm:$0xff] %vm2916_vm1, %v3448_v31 }
 0x46d   : > { %v3452_v13 = vadd.f32 %v3324_v34, %v7776_v36  ;;  %v3453_v38 = vadd.f32 %v3325_v35, %v7777_v37  ;;  %v3327_v53 = vld [vmem:[#allocation4 + $0x2b0] sm:$0xff]  ;;  %v3328_v39 = vld [vmem:[#allocation4 + $0x2b8] sm:$0xff]  ;;  %3577 = vst.msk [vmem:[#allocation4 + $0x280] sm:$0xff] %vm2916_vm1, %v3449_v11  ;;  %3578 = vst.msk [vmem:[#allocation4 + $0x288] sm:$0xff] %vm2916_vm1, %v3450_v33 }
 0x46e   : > { %v7778_v54 = vld [vmem:[#allocation44_spill] sm:$0xff]  ;;  %v7779_v41 = vld [vmem:[#allocation45_spill] sm:$0xff]  ;;  %v7780_v59 = vld [vmem:[#allocation46_spill] sm:$0xff]  ;;  %3579 = vst.msk [vmem:[#allocation4 + $0x290] sm:$0xff] %vm2916_vm1, %v3451_v58 }
 0x46f   : > { %v3454_v40 = vadd.f32 %v3326_v14, %v7778_v54  ;;  %v3455_v15 = vadd.f32 %v3327_v53, %v7779_v41  ;;  %v3456_v42 = vadd.f32 %v3328_v39, %v7780_v59  ;;  %v3329_v16 = vld [vmem:[#allocation4 + $0x2c0] sm:$0xff]  ;;  %v3330_v43 = vld [vmem:[#allocation4 + $0x2c8] sm:$0xff]  ;;  %v3331_v44 = vld [vmem:[#allocation4 + $0x2d0] sm:$0xff]  ;;  %3580 = vst.msk [vmem:[#allocation4 + $0x298] sm:$0xff] %vm2916_vm1, %v3452_v13 }
 0x470   : > { %3581 = vst.msk [vmem:[#allocation4 + $0x2a0] sm:$0xff] %vm2916_vm1, %v3453_v38  ;;  %v7781_v17 = vld [vmem:[#allocation47_spill] sm:$0xff]  ;;  %v7782_v45 = vld [vmem:[#allocation48_spill] sm:$0xff]  ;;  %v7783_v46 = vld [vmem:[#allocation49_spill] sm:$0xff] }
 0x471   : > { %v3457_v60 = vadd.f32 %v3329_v16, %v7781_v17  ;;  %v3458_v61 = vadd.f32 %v3330_v43, %v7782_v45  ;;  %v3459_v47 = vadd.f32 %v3331_v44, %v7783_v46  ;;  %v3332_v18 = vld [vmem:[#allocation4 + $0x2d8] sm:$0xff]  ;;  %v3333_v62 = vld [vmem:[#allocation4 + $0x2e0] sm:$0xff]  ;;  %v3334_v48 = vld [vmem:[#allocation4 + $0x2e8] sm:$0xff]  ;;  %3582 = vst.msk [vmem:[#allocation4 + $0x2a8] sm:$0xff] %vm2916_vm1, %v3454_v40 }
 0x472   : > { %3583 = vst.msk [vmem:[#allocation4 + $0x2b0] sm:$0xff] %vm2916_vm1, %v3455_v15  ;;  %3584 = vst.msk [vmem:[#allocation4 + $0x2b8] sm:$0xff] %vm2916_vm1, %v3456_v42  ;;  %v7784_v19 = vld [vmem:[#allocation50_spill] sm:$0xff]  ;;  %v7785_v50 = vld [vmem:[#allocation51_spill] sm:$0xff] }
 0x473   : > { %v3460_v49 = vadd.f32 %v3332_v18, %v7784_v19  ;;  %v3461_v20 = vadd.f32 %v3333_v62, %v7785_v50  ;;  %v7786_v63 = vld [vmem:[#allocation52_spill] sm:$0xff]  ;;  %v3335_v21 = vld [vmem:[#allocation4 + $0x2f0] sm:$0xff]  ;;  %v3336_v1 = vld [vmem:[#allocation4 + $0x2f8] sm:$0xff]  ;;  %3585 = vst.msk [vmem:[#allocation4 + $0x2c0] sm:$0xff] %vm2916_vm1, %v3457_v60 }
 0x474   : > { %v3462_v0 = vadd.f32 %v3334_v48, %v7786_v63  ;;  %v3337_v51 = vld [vmem:[#allocation4 + $0x300] sm:$0xff]  ;;  %3586 = vst.msk [vmem:[#allocation4 + $0x2c8] sm:$0xff] %vm2916_vm1, %v3458_v61  ;;  %3587 = vst.msk [vmem:[#allocation4 + $0x2d0] sm:$0xff] %vm2916_vm1, %v3459_v47  ;;  %v7787_v22 = vld [vmem:[#allocation53_spill] sm:$0xff] }
 0x475   : > { %v3463_v52 = vadd.f32 %v3335_v21, %v7787_v22  ;;  %v7788_v3 = vld [vmem:[#allocation54_spill] sm:$0xff]  ;;  %v7789_v4 = vld [vmem:[#allocation55_spill] sm:$0xff]  ;;  %v3338_v24 = vld [vmem:[#allocation4 + $0x308] sm:$0xff]  ;;  %3588 = vst.msk [vmem:[#allocation4 + $0x2d8] sm:$0xff] %vm2916_vm1, %v3460_v49 }
 0x476   : > { %v3464_v23 = vadd.f32 %v3336_v1, %v7788_v3  ;;  %v3465_v5 = vadd.f32 %v3337_v51, %v7789_v4  ;;  %v3339_v2 = vld [vmem:[#allocation4 + $0x310] sm:$0xff]  ;;  %v3340_v25 = vld [vmem:[#allocation4 + $0x318] sm:$0xff]  ;;  %3589 = vst.msk [vmem:[#allocation4 + $0x2e0] sm:$0xff] %vm2916_vm1, %v3461_v20  ;;  %3590 = vst.msk [vmem:[#allocation4 + $0x2e8] sm:$0xff] %vm2916_vm1, %v3462_v0 }
 0x477   : > { %v7790_v26 = vld [vmem:[#allocation56_spill] sm:$0xff]  ;;  %v7791_v7 = vld [vmem:[#allocation57_spill] sm:$0xff]  ;;  %v7792_v8 = vld [vmem:[#allocation58_spill] sm:$0xff]  ;;  %3591 = vst.msk [vmem:[#allocation4 + $0x2f0] sm:$0xff] %vm2916_vm1, %v3463_v52 }
 0x478   : > { %v3466_v6 = vadd.f32 %v3338_v24, %v7790_v26  ;;  %v3467_v27 = vadd.f32 %v3339_v2, %v7791_v7  ;;  %v3468_v28 = vadd.f32 %v3340_v25, %v7792_v8  ;;  %v3341_v29 = vld [vmem:[#allocation4 + $0x320] sm:$0xff]  ;;  %v3342_v9 = vld [vmem:[#allocation4 + $0x328] sm:$0xff]  ;;  %v3343_v57 = vld [vmem:[#allocation4 + $0x330] sm:$0xff]  ;;  %3592 = vst.msk [vmem:[#allocation4 + $0x2f8] sm:$0xff] %vm2916_vm1, %v3464_v23 }
 0x479   : > { %3593 = vst.msk [vmem:[#allocation4 + $0x300] sm:$0xff] %vm2916_vm1, %v3465_v5  ;;  %v7793_v30 = vld [vmem:[#allocation59_spill] sm:$0xff]  ;;  %v7794_v31 = vld [vmem:[#allocation60_spill] sm:$0xff]  ;;  %v7795_v11 = vld [vmem:[#allocation61_spill] sm:$0xff] }
 0x47a   : > { %v3469_v10 = vadd.f32 %v3341_v29, %v7793_v30  ;;  %v3470_v32 = vadd.f32 %v3342_v9, %v7794_v31  ;;  %v3471_v55 = vadd.f32 %v3343_v57, %v7795_v11  ;;  %v3344_v33 = vld [vmem:[#allocation4 + $0x338] sm:$0xff]  ;;  %v3345_v56 = vld [vmem:[#allocation4 + $0x340] sm:$0xff]  ;;  %v3346_v34 = vld [vmem:[#allocation4 + $0x348] sm:$0xff]  ;;  %3594 = vst.msk [vmem:[#allocation4 + $0x308] sm:$0xff] %vm2916_vm1, %v3466_v6 }
 0x47b   : > { %3595 = vst.msk [vmem:[#allocation4 + $0x310] sm:$0xff] %vm2916_vm1, %v3467_v27  ;;  %3596 = vst.msk [vmem:[#allocation4 + $0x318] sm:$0xff] %vm2916_vm1, %v3468_v28  ;;  %v7796_v35 = vld [vmem:[#allocation62_spill] sm:$0xff]  ;;  %v7797_v58 = vld [vmem:[#allocation63_spill] sm:$0xff] }
 0x47c   : > { %v3472_v12 = vadd.f32 %v3344_v33, %v7796_v35  ;;  %v3473_v36 = vadd.f32 %v3345_v56, %v7797_v58  ;;  %v7798_v13 = vld [vmem:[#allocation64_spill] sm:$0xff]  ;;  %v3347_v38 = vld [vmem:[#allocation4 + $0x350] sm:$0xff]  ;;  %v3348_v14 = vld [vmem:[#allocation4 + $0x358] sm:$0xff]  ;;  %3597 = vst.msk [vmem:[#allocation4 + $0x320] sm:$0xff] %vm2916_vm1, %v3469_v10 }
 0x47d   : > { %v3474_v37 = vadd.f32 %v3346_v34, %v7798_v13  ;;  %v3349_v53 = vld [vmem:[#allocation4 + $0x360] sm:$0xff]  ;;  %3598 = vst.msk [vmem:[#allocation4 + $0x328] sm:$0xff] %vm2916_vm1, %v3470_v32  ;;  %3599 = vst.msk [vmem:[#allocation4 + $0x330] sm:$0xff] %vm2916_vm1, %v3471_v55  ;;  %v7799_v39 = vld [vmem:[#allocation65_spill] sm:$0xff] }
 0x47e   : > { %v3475_v54 = vadd.f32 %v3347_v38, %v7799_v39  ;;  %v7800_v40 = vld [vmem:[#allocation66_spill] sm:$0xff]  ;;  %v7801_v15 = vld [vmem:[#allocation67_spill] sm:$0xff]  ;;  %v3350_v42 = vld [vmem:[#allocation4 + $0x368] sm:$0xff]  ;;  %3600 = vst.msk [vmem:[#allocation4 + $0x338] sm:$0xff] %vm2916_vm1, %v3472_v12 }
 0x47f   : > { %v3476_v41 = vadd.f32 %v3348_v14, %v7800_v40  ;;  %v3477_v59 = vadd.f32 %v3349_v53, %v7801_v15  ;;  %v3351_v16 = vld [vmem:[#allocation4 + $0x370] sm:$0xff]  ;;  %v3352_v43 = vld [vmem:[#allocation4 + $0x378] sm:$0xff]  ;;  %3601 = vst.msk [vmem:[#allocation4 + $0x340] sm:$0xff] %vm2916_vm1, %v3473_v36  ;;  %3602 = vst.msk [vmem:[#allocation4 + $0x348] sm:$0xff] %vm2916_vm1, %v3474_v37 }
 0x480   : > { %v7802_v44 = vld [vmem:[#allocation68_spill] sm:$0xff]  ;;  %v7803_v60 = vld [vmem:[#allocation69_spill] sm:$0xff]  ;;  %v7804_v61 = vld [vmem:[#allocation70_spill] sm:$0xff]  ;;  %3603 = vst.msk [vmem:[#allocation4 + $0x350] sm:$0xff] %vm2916_vm1, %v3475_v54 }
 0x481   : > { %v3478_v17 = vadd.f32 %v3350_v42, %v7802_v44  ;;  %v3479_v45 = vadd.f32 %v3351_v16, %v7803_v60  ;;  %v3480_v46 = vadd.f32 %v3352_v43, %v7804_v61  ;;  %v3353_v47 = vld [vmem:[#allocation4 + $0x380] sm:$0xff]  ;;  %v3354_v18 = vld [vmem:[#allocation4 + $0x388] sm:$0xff]  ;;  %v3355_v62 = vld [vmem:[#allocation4 + $0x390] sm:$0xff]  ;;  %3604 = vst.msk [vmem:[#allocation4 + $0x358] sm:$0xff] %vm2916_vm1, %v3476_v41 }
 0x482   : > { %3605 = vst.msk [vmem:[#allocation4 + $0x360] sm:$0xff] %vm2916_vm1, %v3477_v59  ;;  %v7805_v48 = vld [vmem:[#allocation71_spill] sm:$0xff]  ;;  %v7806_v49 = vld [vmem:[#allocation72_spill] sm:$0xff]  ;;  %v7807_v20 = vld [vmem:[#allocation73_spill] sm:$0xff] }
 0x483   : > { %v3481_v19 = vadd.f32 %v3353_v47, %v7805_v48  ;;  %v3482_v50 = vadd.f32 %v3354_v18, %v7806_v49  ;;  %v3483_v63 = vadd.f32 %v3355_v62, %v7807_v20  ;;  %v3356_v0 = vld [vmem:[#allocation4 + $0x398] sm:$0xff]  ;;  %v3357_v21 = vld [vmem:[#allocation4 + $0x3a0] sm:$0xff]  ;;  %v3358_v1 = vld [vmem:[#allocation4 + $0x3a8] sm:$0xff]  ;;  %3606 = vst.msk [vmem:[#allocation4 + $0x368] sm:$0xff] %vm2916_vm1, %v3478_v17 }
 0x484   : > { %3607 = vst.msk [vmem:[#allocation4 + $0x370] sm:$0xff] %vm2916_vm1, %v3479_v45  ;;  %3608 = vst.msk [vmem:[#allocation4 + $0x378] sm:$0xff] %vm2916_vm1, %v3480_v46  ;;  %v7808_v51 = vld [vmem:[#allocation74_spill] sm:$0xff]  ;;  %v7809_v52 = vld [vmem:[#allocation75_spill] sm:$0xff] }
 0x485   : > { %v3484_v22 = vadd.f32 %v3356_v0, %v7808_v51  ;;  %v3485_v3 = vadd.f32 %v3357_v21, %v7809_v52  ;;  %v7810_v23 = vld [vmem:[#allocation76_spill] sm:$0xff]  ;;  %v3359_v5 = vld [vmem:[#allocation4 + $0x3b0] sm:$0xff]  ;;  %v3360_v24 = vld [vmem:[#allocation4 + $0x3b8] sm:$0xff]  ;;  %3609 = vst.msk [vmem:[#allocation4 + $0x380] sm:$0xff] %vm2916_vm1, %v3481_v19 }
 0x486   : > { %v3486_v4 = vadd.f32 %v3358_v1, %v7810_v23  ;;  %v3361_v2 = vld [vmem:[#allocation4 + $0x3c0] sm:$0xff]  ;;  %3610 = vst.msk [vmem:[#allocation4 + $0x388] sm:$0xff] %vm2916_vm1, %v3482_v50  ;;  %3611 = vst.msk [vmem:[#allocation4 + $0x390] sm:$0xff] %vm2916_vm1, %v3483_v63  ;;  %v7811_v25 = vld [vmem:[#allocation77_spill] sm:$0xff] }
 0x487   : > { %v3487_v26 = vadd.f32 %v3359_v5, %v7811_v25  ;;  %v7812_v6 = vld [vmem:[#allocation78_spill] sm:$0xff]  ;;  %v7813_v27 = vld [vmem:[#allocation79_spill] sm:$0xff]  ;;  %v3362_v28 = vld [vmem:[#allocation4 + $0x3c8] sm:$0xff]  ;;  %3612 = vst.msk [vmem:[#allocation4 + $0x398] sm:$0xff] %vm2916_vm1, %v3484_v22 }
 0x488   : > { %v3488_v7 = vadd.f32 %v3360_v24, %v7812_v6  ;;  %v3489_v8 = vadd.f32 %v3361_v2, %v7813_v27  ;;  %v3363_v29 = vld [vmem:[#allocation4 + $0x3d0] sm:$0xff]  ;;  %v3364_v9 = vld [vmem:[#allocation4 + $0x3d8] sm:$0xff]  ;;  %3613 = vst.msk [vmem:[#allocation4 + $0x3a0] sm:$0xff] %vm2916_vm1, %v3485_v3  ;;  %3614 = vst.msk [vmem:[#allocation4 + $0x3a8] sm:$0xff] %vm2916_vm1, %v3486_v4 }
 0x489   : > { %v7814_v57 = vld [vmem:[#allocation80_spill] sm:$0xff]  ;;  %v7815_v10 = vld [vmem:[#allocation81_spill] sm:$0xff]  ;;  %v7816_v32 = vld [vmem:[#allocation82_spill] sm:$0xff]  ;;  %3615 = vst.msk [vmem:[#allocation4 + $0x3b0] sm:$0xff] %vm2916_vm1, %v3487_v26 }
 0x48a   : > { %v3490_v30 = vadd.f32 %v3362_v28, %v7814_v57  ;;  %v3491_v31 = vadd.f32 %v3363_v29, %v7815_v10  ;;  %v3492_v11 = vadd.f32 %v3364_v9, %v7816_v32  ;;  %v3365_v55 = vld [vmem:[#allocation4 + $0x3e0] sm:$0xff]  ;;  %v3366_v33 = vld [vmem:[#allocation4 + $0x3e8] sm:$0xff]  ;;  %v3367_v56 = vld [vmem:[#allocation4 + $0x3f0] sm:$0xff]  ;;  %3616 = vst.msk [vmem:[#allocation4 + $0x3b8] sm:$0xff] %vm2916_vm1, %v3488_v7 }
 0x48b   : > { %3617 = vst.msk [vmem:[#allocation4 + $0x3c0] sm:$0xff] %vm2916_vm1, %v3489_v8  ;;  %v7817_v34 = vld [vmem:[#allocation83_spill] sm:$0xff]  ;;  %v7818_v12 = vld [vmem:[#allocation84_spill] sm:$0xff]  ;;  %v7819_v36 = vld [vmem:[#allocation85_spill] sm:$0xff] }
 0x48c   : > { %v3493_v35 = vadd.f32 %v3365_v55, %v7817_v34  ;;  %v3494_v58 = vadd.f32 %v3366_v33, %v7818_v12  ;;  %v3495_v13 = vadd.f32 %v3367_v56, %v7819_v36  ;;  %v3368_v37 = vld [vmem:[#allocation4 + $0x3f8] sm:$0xff]  ;;  %3618 = vst.msk [vmem:[#allocation4 + $0x3c8] sm:$0xff] %vm2916_vm1, %v3490_v30  ;;  %3619 = vst.msk [vmem:[#allocation4 + $0x3d0] sm:$0xff] %vm2916_vm1, %v3491_v31  ;;  %v7820_v38 = vld [vmem:[#allocation86_spill] sm:$0xff] }
 0x48d   : > { %3620 = vst.msk [vmem:[#allocation4 + $0x3d8] sm:$0xff] %vm2916_vm1, %v3492_v11  ;;  %v3496_v14 = vadd.f32 %v3368_v37, %v7820_v38 }
 0x48e   : > { %3621 = vst.msk [vmem:[#allocation4 + $0x3e0] sm:$0xff] %vm2916_vm1, %v3493_v35  ;;  %3622 = vst.msk [vmem:[#allocation4 + $0x3e8] sm:$0xff] %vm2916_vm1, %v3494_v58 }
 0x48f   : > { %3623 = vst.msk [vmem:[#allocation4 + $0x3f0] sm:$0xff] %vm2916_vm1, %v3495_v13  ;;  %3624 = vst.msk [vmem:[#allocation4 + $0x3f8] sm:$0xff] %vm2916_vm1, %v3496_v14 }
 0x490 PF: > { %p3625_p8 = scmp.eq.s32.totalorder %s4758_s19, 1 }
 0x492   : > { %p3626_p11 = pnand %p3625_p8, %p2981_p9 }
 0x493   : > { %v3630_v53 = vld [vmem:[#allocation4] sm:$0xff] (!%p3626_p11)  ;;  %v3631_v39 = vld [vmem:[#allocation4 + $0x8] sm:$0xff] (!%p3626_p11)  ;;  %v3632_v54 = vld [vmem:[#allocation4 + $0x10] sm:$0xff] (!%p3626_p11) }
 0x494   : > { %3629 = sbr.rel (%p3626_p11) target bundleno = 1259 (0x4eb), region = 48  ;;  %v3758_v40 = vmul.f32 (!%p3626_p11), 0.33333334, %v3630_v53  ;;  %v3759_v41 = vmul.f32 (!%p3626_p11), 0.33333334, %v3631_v39  ;;  %v3633_v59 = vld [vmem:[#allocation4 + $0x18] sm:$0xff] (!%p3626_p11) }
 0x495   : > { %v3760_v15 = vmul.f32 (!%p3626_p11), 0.33333334, %v3632_v54  ;;  %v3634_v42 = vld [vmem:[#allocation4 + $0x20] sm:$0xff] (!%p3626_p11)  ;;  %v3635_v16 = vld [vmem:[#allocation4 + $0x28] sm:$0xff] (!%p3626_p11)  ;;  %v3761_v43 = vmul.f32 (!%p3626_p11), 0.33333334, %v3633_v59 }
 0x496   : > { %3886 = vst.msk [vmem:[%s7579_s3] sm:$0xff] (!%p3626_p11), %vm2916_vm1, %v3758_v40  ;;  %3887 = vst.msk [vmem:[%s7579_s3 + $0x8] sm:$0xff] (!%p3626_p11), %vm2916_vm1, %v3759_v41  ;;  %v3762_v44 = vmul.f32 (!%p3626_p11), 0.33333334, %v3634_v42  ;;  %v3763_v17 = vmul.f32 (!%p3626_p11), 0.33333334, %v3635_v16 }
 0x497   : > { %3888 = vst.msk [vmem:[%s7579_s3 + $0x10] sm:$0xff] (!%p3626_p11), %vm2916_vm1, %v3760_v15  ;;  %v3636_v60 = vld [vmem:[#allocation4 + $0x30] sm:$0xff] (!%p3626_p11)  ;;  %v3637_v45 = vld [vmem:[#allocation4 + $0x38] sm:$0xff] (!%p3626_p11)  ;;  %v3638_v61 = vld [vmem:[#allocation4 + $0x40] sm:$0xff] (!%p3626_p11) }
 0x498   : > { %3889 = vst.msk [vmem:[%s7579_s3 + $0x18] sm:$0xff] (!%p3626_p11), %vm2916_vm1, %v3761_v43  ;;  %3890 = vst.msk [vmem:[%s7579_s3 + $0x20] sm:$0xff] (!%p3626_p11), %vm2916_vm1, %v3762_v44  ;;  %v3764_v46 = vmul.f32 (!%p3626_p11), 0.33333334, %v3636_v60  ;;  %v3765_v47 = vmul.f32 (!%p3626_p11), 0.33333334, %v3637_v45 }
 0x499   : > { %3891 = vst.msk [vmem:[%s7579_s3 + $0x28] sm:$0xff] (!%p3626_p11), %vm2916_vm1, %v3763_v17  ;;  %v3766_v18 = vmul.f32 (!%p3626_p11), 0.33333334, %v3638_v61  ;;  %v3639_v62 = vld [vmem:[#allocation4 + $0x48] sm:$0xff] (!%p3626_p11)  ;;  %v3640_v48 = vld [vmem:[#allocation4 + $0x50] sm:$0xff] (!%p3626_p11)  ;;  %v3641_v19 = vld [vmem:[#allocation4 + $0x58] sm:$0xff] (!%p3626_p11) }
 0x49a   : > { %3892 = vst.msk [vmem:[%s7579_s3 + $0x30] sm:$0xff] (!%p3626_p11), %vm2916_vm1, %v3764_v46  ;;  %3893 = vst.msk [vmem:[%s7579_s3 + $0x38] sm:$0xff] (!%p3626_p11), %vm2916_vm1, %v3765_v47  ;;  %v3767_v49 = vmul.f32 (!%p3626_p11), 0.33333334, %v3639_v62  ;;  %v3768_v50 = vmul.f32 (!%p3626_p11), 0.33333334, %v3640_v48 }
 0x49b   : > { %3894 = vst.msk [vmem:[%s7579_s3 + $0x40] sm:$0xff] %vm2916_vm1, %v3766_v18  ;;  %v3769_v20 = vmul.f32 0.33333334, %v3641_v19  ;;  %v3642_v63 = vld [vmem:[#allocation4 + $0x60] sm:$0xff]  ;;  %v3643_v0 = vld [vmem:[#allocation4 + $0x68] sm:$0xff]  ;;  %v3644_v21 = vld [vmem:[#allocation4 + $0x70] sm:$0xff] }
 0x49c   : > { %3895 = vst.msk [vmem:[%s7579_s3 + $0x48] sm:$0xff] %vm2916_vm1, %v3767_v49  ;;  %3896 = vst.msk [vmem:[%s7579_s3 + $0x50] sm:$0xff] %vm2916_vm1, %v3768_v50  ;;  %v3770_v1 = vmul.f32 0.33333334, %v3642_v63  ;;  %v3771_v51 = vmul.f32 0.33333334, %v3643_v0 }
 0x49d   : > { %3897 = vst.msk [vmem:[%s7579_s3 + $0x58] sm:$0xff] %vm2916_vm1, %v3769_v20  ;;  %v3772_v22 = vmul.f32 0.33333334, %v3644_v21  ;;  %v3645_v52 = vld [vmem:[#allocation4 + $0x78] sm:$0xff]  ;;  %v3646_v3 = vld [vmem:[#allocation4 + $0x80] sm:$0xff]  ;;  %v3647_v23 = vld [vmem:[#allocation4 + $0x88] sm:$0xff] }
 0x49e   : > { %3898 = vst.msk [vmem:[%s7579_s3 + $0x60] sm:$0xff] %vm2916_vm1, %v3770_v1  ;;  %3899 = vst.msk [vmem:[%s7579_s3 + $0x68] sm:$0xff] %vm2916_vm1, %v3771_v51  ;;  %v3773_v4 = vmul.f32 0.33333334, %v3645_v52  ;;  %v3774_v5 = vmul.f32 0.33333334, %v3646_v3 }
 0x49f   : > { %3900 = vst.msk [vmem:[%s7579_s3 + $0x70] sm:$0xff] %vm2916_vm1, %v3772_v22  ;;  %v3775_v24 = vmul.f32 0.33333334, %v3647_v23  ;;  %v3648_v2 = vld [vmem:[#allocation4 + $0x90] sm:$0xff]  ;;  %v3649_v25 = vld [vmem:[#allocation4 + $0x98] sm:$0xff]  ;;  %v3650_v26 = vld [vmem:[#allocation4 + $0xa0] sm:$0xff] }
 0x4a0   : > { %3901 = vst.msk [vmem:[%s7579_s3 + $0x78] sm:$0xff] %vm2916_vm1, %v3773_v4  ;;  %3902 = vst.msk [vmem:[%s7579_s3 + $0x80] sm:$0xff] %vm2916_vm1, %v3774_v5  ;;  %v3776_v6 = vmul.f32 0.33333334, %v3648_v2  ;;  %v3777_v7 = vmul.f32 0.33333334, %v3649_v25 }
 0x4a1   : > { %3903 = vst.msk [vmem:[%s7579_s3 + $0x88] sm:$0xff] %vm2916_vm1, %v3775_v24  ;;  %v3778_v27 = vmul.f32 0.33333334, %v3650_v26  ;;  %v3651_v8 = vld [vmem:[#allocation4 + $0xa8] sm:$0xff]  ;;  %v3652_v28 = vld [vmem:[#allocation4 + $0xb0] sm:$0xff]  ;;  %v3653_v29 = vld [vmem:[#allocation4 + $0xb8] sm:$0xff] }
 0x4a2   : > { %3904 = vst.msk [vmem:[%s7579_s3 + $0x90] sm:$0xff] %vm2916_vm1, %v3776_v6  ;;  %3905 = vst.msk [vmem:[%s7579_s3 + $0x98] sm:$0xff] %vm2916_vm1, %v3777_v7  ;;  %v3779_v9 = vmul.f32 0.33333334, %v3651_v8  ;;  %v3780_v57 = vmul.f32 0.33333334, %v3652_v28 }
 0x4a3   : > { %3906 = vst.msk [vmem:[%s7579_s3 + $0xa0] sm:$0xff] %vm2916_vm1, %v3778_v27  ;;  %v3781_v30 = vmul.f32 0.33333334, %v3653_v29  ;;  %v3654_v10 = vld [vmem:[#allocation4 + $0xc0] sm:$0xff]  ;;  %v3655_v31 = vld [vmem:[#allocation4 + $0xc8] sm:$0xff]  ;;  %v3656_v32 = vld [vmem:[#allocation4 + $0xd0] sm:$0xff] }
 0x4a4   : > { %3907 = vst.msk [vmem:[%s7579_s3 + $0xa8] sm:$0xff] %vm2916_vm1, %v3779_v9  ;;  %3908 = vst.msk [vmem:[%s7579_s3 + $0xb0] sm:$0xff] %vm2916_vm1, %v3780_v57  ;;  %v3782_v11 = vmul.f32 0.33333334, %v3654_v10  ;;  %v3783_v55 = vmul.f32 0.33333334, %v3655_v31 }
 0x4a5   : > { %3909 = vst.msk [vmem:[%s7579_s3 + $0xb8] sm:$0xff] %vm2916_vm1, %v3781_v30  ;;  %v3784_v33 = vmul.f32 0.33333334, %v3656_v32  ;;  %v3657_v56 = vld [vmem:[#allocation4 + $0xd8] sm:$0xff]  ;;  %v3658_v34 = vld [vmem:[#allocation4 + $0xe0] sm:$0xff]  ;;  %v3659_v35 = vld [vmem:[#allocation4 + $0xe8] sm:$0xff] }
 0x4a6   : > { %3910 = vst.msk [vmem:[%s7579_s3 + $0xc0] sm:$0xff] %vm2916_vm1, %v3782_v11  ;;  %3911 = vst.msk [vmem:[%s7579_s3 + $0xc8] sm:$0xff] %vm2916_vm1, %v3783_v55  ;;  %v3785_v12 = vmul.f32 0.33333334, %v3657_v56  ;;  %v3786_v58 = vmul.f32 0.33333334, %v3658_v34 }
 0x4a7   : > { %3912 = vst.msk [vmem:[%s7579_s3 + $0xd0] sm:$0xff] %vm2916_vm1, %v3784_v33  ;;  %v3787_v36 = vmul.f32 0.33333334, %v3659_v35  ;;  %v3660_v13 = vld [vmem:[#allocation4 + $0xf0] sm:$0xff]  ;;  %v3661_v37 = vld [vmem:[#allocation4 + $0xf8] sm:$0xff]  ;;  %v3662_v38 = vld [vmem:[#allocation4 + $0x100] sm:$0xff] }
 0x4a8   : > { %3913 = vst.msk [vmem:[%s7579_s3 + $0xd8] sm:$0xff] %vm2916_vm1, %v3785_v12  ;;  %3914 = vst.msk [vmem:[%s7579_s3 + $0xe0] sm:$0xff] %vm2916_vm1, %v3786_v58  ;;  %v3788_v14 = vmul.f32 0.33333334, %v3660_v13  ;;  %v3789_v53 = vmul.f32 0.33333334, %v3661_v37 }
 0x4a9   : > { %3915 = vst.msk [vmem:[%s7579_s3 + $0xe8] sm:$0xff] %vm2916_vm1, %v3787_v36  ;;  %v3790_v39 = vmul.f32 0.33333334, %v3662_v38  ;;  %v3663_v54 = vld [vmem:[#allocation4 + $0x108] sm:$0xff]  ;;  %v3664_v40 = vld [vmem:[#allocation4 + $0x110] sm:$0xff]  ;;  %v3665_v41 = vld [vmem:[#allocation4 + $0x118] sm:$0xff] }
 0x4aa   : > { %3916 = vst.msk [vmem:[%s7579_s3 + $0xf0] sm:$0xff] %vm2916_vm1, %v3788_v14  ;;  %3917 = vst.msk [vmem:[%s7579_s3 + $0xf8] sm:$0xff] %vm2916_vm1, %v3789_v53  ;;  %v3791_v15 = vmul.f32 0.33333334, %v3663_v54  ;;  %v3792_v59 = vmul.f32 0.33333334, %v3664_v40 }
 0x4ab   : > { %3918 = vst.msk [vmem:[%s7579_s3 + $0x100] sm:$0xff] %vm2916_vm1, %v3790_v39  ;;  %v3793_v42 = vmul.f32 0.33333334, %v3665_v41  ;;  %v3666_v16 = vld [vmem:[#allocation4 + $0x120] sm:$0xff]  ;;  %v3667_v43 = vld [vmem:[#allocation4 + $0x128] sm:$0xff]  ;;  %v3668_v44 = vld [vmem:[#allocation4 + $0x130] sm:$0xff] }
 0x4ac   : > { %3919 = vst.msk [vmem:[%s7579_s3 + $0x108] sm:$0xff] %vm2916_vm1, %v3791_v15  ;;  %3920 = vst.msk [vmem:[%s7579_s3 + $0x110] sm:$0xff] %vm2916_vm1, %v3792_v59  ;;  %v3794_v17 = vmul.f32 0.33333334, %v3666_v16  ;;  %v3795_v60 = vmul.f32 0.33333334, %v3667_v43 }
 0x4ad   : > { %3921 = vst.msk [vmem:[%s7579_s3 + $0x118] sm:$0xff] %vm2916_vm1, %v3793_v42  ;;  %v3796_v45 = vmul.f32 0.33333334, %v3668_v44  ;;  %v3669_v61 = vld [vmem:[#allocation4 + $0x138] sm:$0xff]  ;;  %v3670_v46 = vld [vmem:[#allocation4 + $0x140] sm:$0xff]  ;;  %v3671_v47 = vld [vmem:[#allocation4 + $0x148] sm:$0xff] }
 0x4ae   : > { %3922 = vst.msk [vmem:[%s7579_s3 + $0x120] sm:$0xff] %vm2916_vm1, %v3794_v17  ;;  %3923 = vst.msk [vmem:[%s7579_s3 + $0x128] sm:$0xff] %vm2916_vm1, %v3795_v60  ;;  %v3797_v18 = vmul.f32 0.33333334, %v3669_v61  ;;  %v3798_v62 = vmul.f32 0.33333334, %v3670_v46 }
 0x4af   : > { %3924 = vst.msk [vmem:[%s7579_s3 + $0x130] sm:$0xff] %vm2916_vm1, %v3796_v45  ;;  %v3799_v48 = vmul.f32 0.33333334, %v3671_v47  ;;  %v3672_v19 = vld [vmem:[#allocation4 + $0x150] sm:$0xff]  ;;  %v3673_v49 = vld [vmem:[#allocation4 + $0x158] sm:$0xff]  ;;  %v3674_v50 = vld [vmem:[#allocation4 + $0x160] sm:$0xff] }
 0x4b0   : > { %3925 = vst.msk [vmem:[%s7579_s3 + $0x138] sm:$0xff] %vm2916_vm1, %v3797_v18  ;;  %3926 = vst.msk [vmem:[%s7579_s3 + $0x140] sm:$0xff] %vm2916_vm1, %v3798_v62  ;;  %v3800_v20 = vmul.f32 0.33333334, %v3672_v19  ;;  %v3801_v63 = vmul.f32 0.33333334, %v3673_v49 }
 0x4b1   : > { %3927 = vst.msk [vmem:[%s7579_s3 + $0x148] sm:$0xff] %vm2916_vm1, %v3799_v48  ;;  %v3802_v0 = vmul.f32 0.33333334, %v3674_v50  ;;  %v3675_v21 = vld [vmem:[#allocation4 + $0x168] sm:$0xff]  ;;  %v3676_v1 = vld [vmem:[#allocation4 + $0x170] sm:$0xff]  ;;  %v3677_v51 = vld [vmem:[#allocation4 + $0x178] sm:$0xff] }
 0x4b2   : > { %3928 = vst.msk [vmem:[%s7579_s3 + $0x150] sm:$0xff] %vm2916_vm1, %v3800_v20  ;;  %3929 = vst.msk [vmem:[%s7579_s3 + $0x158] sm:$0xff] %vm2916_vm1, %v3801_v63  ;;  %v3803_v22 = vmul.f32 0.33333334, %v3675_v21  ;;  %v3804_v52 = vmul.f32 0.33333334, %v3676_v1 }
 0x4b3   : > { %3930 = vst.msk [vmem:[%s7579_s3 + $0x160] sm:$0xff] %vm2916_vm1, %v3802_v0  ;;  %v3805_v3 = vmul.f32 0.33333334, %v3677_v51  ;;  %v3678_v23 = vld [vmem:[#allocation4 + $0x180] sm:$0xff]  ;;  %v3679_v4 = vld [vmem:[#allocation4 + $0x188] sm:$0xff]  ;;  %v3680_v5 = vld [vmem:[#allocation4 + $0x190] sm:$0xff] }
 0x4b4   : > { %3931 = vst.msk [vmem:[%s7579_s3 + $0x168] sm:$0xff] %vm2916_vm1, %v3803_v22  ;;  %3932 = vst.msk [vmem:[%s7579_s3 + $0x170] sm:$0xff] %vm2916_vm1, %v3804_v52  ;;  %v3806_v24 = vmul.f32 0.33333334, %v3678_v23  ;;  %v3807_v2 = vmul.f32 0.33333334, %v3679_v4 }
 0x4b5   : > { %3933 = vst.msk [vmem:[%s7579_s3 + $0x178] sm:$0xff] %vm2916_vm1, %v3805_v3  ;;  %v3808_v25 = vmul.f32 0.33333334, %v3680_v5  ;;  %v3681_v26 = vld [vmem:[#allocation4 + $0x198] sm:$0xff]  ;;  %v3682_v6 = vld [vmem:[#allocation4 + $0x1a0] sm:$0xff]  ;;  %v3683_v7 = vld [vmem:[#allocation4 + $0x1a8] sm:$0xff] }
 0x4b6   : > { %3934 = vst.msk [vmem:[%s7580_s4] sm:$0xff] %vm2916_vm1, %v3806_v24  ;;  %3935 = vst.msk [vmem:[%s7580_s4 + $0x8] sm:$0xff] %vm2916_vm1, %v3807_v2  ;;  %v3809_v27 = vmul.f32 0.33333334, %v3681_v26  ;;  %v3810_v8 = vmul.f32 0.33333334, %v3682_v6 }
 0x4b7   : > { %3936 = vst.msk [vmem:[%s7580_s4 + $0x10] sm:$0xff] %vm2916_vm1, %v3808_v25  ;;  %v3811_v28 = vmul.f32 0.33333334, %v3683_v7  ;;  %v3684_v29 = vld [vmem:[#allocation4 + $0x1b0] sm:$0xff]  ;;  %v3685_v9 = vld [vmem:[#allocation4 + $0x1b8] sm:$0xff]  ;;  %v3686_v57 = vld [vmem:[#allocation4 + $0x1c0] sm:$0xff] }
 0x4b8   : > { %3937 = vst.msk [vmem:[%s7580_s4 + $0x18] sm:$0xff] %vm2916_vm1, %v3809_v27  ;;  %3938 = vst.msk [vmem:[%s7580_s4 + $0x20] sm:$0xff] %vm2916_vm1, %v3810_v8  ;;  %v3812_v30 = vmul.f32 0.33333334, %v3684_v29  ;;  %v3813_v10 = vmul.f32 0.33333334, %v3685_v9 }
 0x4b9   : > { %3939 = vst.msk [vmem:[%s7580_s4 + $0x28] sm:$0xff] %vm2916_vm1, %v3811_v28  ;;  %v3814_v31 = vmul.f32 0.33333334, %v3686_v57  ;;  %v3687_v32 = vld [vmem:[#allocation4 + $0x1c8] sm:$0xff]  ;;  %v3688_v11 = vld [vmem:[#allocation4 + $0x1d0] sm:$0xff]  ;;  %v3689_v55 = vld [vmem:[#allocation4 + $0x1d8] sm:$0xff] }
 0x4ba   : > { %3940 = vst.msk [vmem:[%s7580_s4 + $0x30] sm:$0xff] %vm2916_vm1, %v3812_v30  ;;  %3941 = vst.msk [vmem:[%s7580_s4 + $0x38] sm:$0xff] %vm2916_vm1, %v3813_v10  ;;  %v3815_v33 = vmul.f32 0.33333334, %v3687_v32  ;;  %v3816_v56 = vmul.f32 0.33333334, %v3688_v11 }
 0x4bb   : > { %3942 = vst.msk [vmem:[%s7580_s4 + $0x40] sm:$0xff] %vm2916_vm1, %v3814_v31  ;;  %v3817_v34 = vmul.f32 0.33333334, %v3689_v55  ;;  %v3690_v35 = vld [vmem:[#allocation4 + $0x1e0] sm:$0xff]  ;;  %v3691_v12 = vld [vmem:[#allocation4 + $0x1e8] sm:$0xff]  ;;  %v3692_v58 = vld [vmem:[#allocation4 + $0x1f0] sm:$0xff] }
 0x4bc   : > { %3943 = vst.msk [vmem:[%s7580_s4 + $0x48] sm:$0xff] %vm2916_vm1, %v3815_v33  ;;  %3944 = vst.msk [vmem:[%s7580_s4 + $0x50] sm:$0xff] %vm2916_vm1, %v3816_v56  ;;  %v3818_v36 = vmul.f32 0.33333334, %v3690_v35  ;;  %v3819_v13 = vmul.f32 0.33333334, %v3691_v12 }
 0x4bd   : > { %3945 = vst.msk [vmem:[%s7580_s4 + $0x58] sm:$0xff] %vm2916_vm1, %v3817_v34  ;;  %v3820_v37 = vmul.f32 0.33333334, %v3692_v58  ;;  %v3693_v38 = vld [vmem:[#allocation4 + $0x1f8] sm:$0xff]  ;;  %v3694_v14 = vld [vmem:[#allocation4 + $0x200] sm:$0xff]  ;;  %v3695_v53 = vld [vmem:[#allocation4 + $0x208] sm:$0xff] }
 0x4be   : > { %3946 = vst.msk [vmem:[%s7580_s4 + $0x60] sm:$0xff] %vm2916_vm1, %v3818_v36  ;;  %3947 = vst.msk [vmem:[%s7580_s4 + $0x68] sm:$0xff] %vm2916_vm1, %v3819_v13  ;;  %v3821_v39 = vmul.f32 0.33333334, %v3693_v38  ;;  %v3822_v54 = vmul.f32 0.33333334, %v3694_v14 }
 0x4bf   : > { %3948 = vst.msk [vmem:[%s7580_s4 + $0x70] sm:$0xff] %vm2916_vm1, %v3820_v37  ;;  %v3823_v40 = vmul.f32 0.33333334, %v3695_v53  ;;  %v3696_v41 = vld [vmem:[#allocation4 + $0x210] sm:$0xff]  ;;  %v3697_v15 = vld [vmem:[#allocation4 + $0x218] sm:$0xff]  ;;  %v3698_v59 = vld [vmem:[#allocation4 + $0x220] sm:$0xff] }
 0x4c0   : > { %3949 = vst.msk [vmem:[%s7580_s4 + $0x78] sm:$0xff] %vm2916_vm1, %v3821_v39  ;;  %3950 = vst.msk [vmem:[%s7580_s4 + $0x80] sm:$0xff] %vm2916_vm1, %v3822_v54  ;;  %v3824_v42 = vmul.f32 0.33333334, %v3696_v41  ;;  %v3825_v16 = vmul.f32 0.33333334, %v3697_v15 }
 0x4c1   : > { %3951 = vst.msk [vmem:[%s7580_s4 + $0x88] sm:$0xff] %vm2916_vm1, %v3823_v40  ;;  %v3826_v43 = vmul.f32 0.33333334, %v3698_v59  ;;  %v3699_v44 = vld [vmem:[#allocation4 + $0x228] sm:$0xff]  ;;  %v3700_v17 = vld [vmem:[#allocation4 + $0x230] sm:$0xff]  ;;  %v3701_v60 = vld [vmem:[#allocation4 + $0x238] sm:$0xff] }
 0x4c2   : > { %3952 = vst.msk [vmem:[%s7580_s4 + $0x90] sm:$0xff] %vm2916_vm1, %v3824_v42  ;;  %3953 = vst.msk [vmem:[%s7580_s4 + $0x98] sm:$0xff] %vm2916_vm1, %v3825_v16  ;;  %v3827_v45 = vmul.f32 0.33333334, %v3699_v44  ;;  %v3828_v61 = vmul.f32 0.33333334, %v3700_v17 }
 0x4c3   : > { %3954 = vst.msk [vmem:[%s7580_s4 + $0xa0] sm:$0xff] %vm2916_vm1, %v3826_v43  ;;  %v3829_v46 = vmul.f32 0.33333334, %v3701_v60  ;;  %v3702_v47 = vld [vmem:[#allocation4 + $0x240] sm:$0xff]  ;;  %v3703_v18 = vld [vmem:[#allocation4 + $0x248] sm:$0xff]  ;;  %v3704_v62 = vld [vmem:[#allocation4 + $0x250] sm:$0xff] }
 0x4c4   : > { %3955 = vst.msk [vmem:[%s7580_s4 + $0xa8] sm:$0xff] %vm2916_vm1, %v3827_v45  ;;  %3956 = vst.msk [vmem:[%s7580_s4 + $0xb0] sm:$0xff] %vm2916_vm1, %v3828_v61  ;;  %v3830_v48 = vmul.f32 0.33333334, %v3702_v47  ;;  %v3831_v19 = vmul.f32 0.33333334, %v3703_v18 }
 0x4c5   : > { %3957 = vst.msk [vmem:[%s7580_s4 + $0xb8] sm:$0xff] %vm2916_vm1, %v3829_v46  ;;  %v3832_v49 = vmul.f32 0.33333334, %v3704_v62  ;;  %v3705_v50 = vld [vmem:[#allocation4 + $0x258] sm:$0xff]  ;;  %v3706_v20 = vld [vmem:[#allocation4 + $0x260] sm:$0xff]  ;;  %v3707_v63 = vld [vmem:[#allocation4 + $0x268] sm:$0xff] }
 0x4c6   : > { %3958 = vst.msk [vmem:[%s7580_s4 + $0xc0] sm:$0xff] %vm2916_vm1, %v3830_v48  ;;  %3959 = vst.msk [vmem:[%s7580_s4 + $0xc8] sm:$0xff] %vm2916_vm1, %v3831_v19  ;;  %v3833_v0 = vmul.f32 0.33333334, %v3705_v50  ;;  %v3834_v21 = vmul.f32 0.33333334, %v3706_v20 }
 0x4c7   : > { %3960 = vst.msk [vmem:[%s7580_s4 + $0xd0] sm:$0xff] %vm2916_vm1, %v3832_v49  ;;  %v3835_v1 = vmul.f32 0.33333334, %v3707_v63  ;;  %v3708_v51 = vld [vmem:[#allocation4 + $0x270] sm:$0xff]  ;;  %v3709_v22 = vld [vmem:[#allocation4 + $0x278] sm:$0xff]  ;;  %v3710_v52 = vld [vmem:[#allocation4 + $0x280] sm:$0xff] }
 0x4c8   : > { %3961 = vst.msk [vmem:[%s7580_s4 + $0xd8] sm:$0xff] %vm2916_vm1, %v3833_v0  ;;  %3962 = vst.msk [vmem:[%s7580_s4 + $0xe0] sm:$0xff] %vm2916_vm1, %v3834_v21  ;;  %v3836_v3 = vmul.f32 0.33333334, %v3708_v51  ;;  %v3837_v23 = vmul.f32 0.33333334, %v3709_v22 }
 0x4c9   : > { %3963 = vst.msk [vmem:[%s7580_s4 + $0xe8] sm:$0xff] %vm2916_vm1, %v3835_v1  ;;  %v3838_v4 = vmul.f32 0.33333334, %v3710_v52  ;;  %v3711_v5 = vld [vmem:[#allocation4 + $0x288] sm:$0xff]  ;;  %v3712_v24 = vld [vmem:[#allocation4 + $0x290] sm:$0xff]  ;;  %v3713_v2 = vld [vmem:[#allocation4 + $0x298] sm:$0xff] }
 0x4ca   : > { %3964 = vst.msk [vmem:[%s7580_s4 + $0xf0] sm:$0xff] %vm2916_vm1, %v3836_v3  ;;  %3965 = vst.msk [vmem:[%s7580_s4 + $0xf8] sm:$0xff] %vm2916_vm1, %v3837_v23  ;;  %v3839_v25 = vmul.f32 0.33333334, %v3711_v5  ;;  %v3840_v26 = vmul.f32 0.33333334, %v3712_v24 }
 0x4cb   : > { %3966 = vst.msk [vmem:[%s7580_s4 + $0x100] sm:$0xff] %vm2916_vm1, %v3838_v4  ;;  %v3841_v6 = vmul.f32 0.33333334, %v3713_v2  ;;  %v3714_v7 = vld [vmem:[#allocation4 + $0x2a0] sm:$0xff]  ;;  %v3715_v27 = vld [vmem:[#allocation4 + $0x2a8] sm:$0xff]  ;;  %v3716_v8 = vld [vmem:[#allocation4 + $0x2b0] sm:$0xff] }
 0x4cc   : > { %3967 = vst.msk [vmem:[%s7580_s4 + $0x108] sm:$0xff] %vm2916_vm1, %v3839_v25  ;;  %3968 = vst.msk [vmem:[%s7580_s4 + $0x110] sm:$0xff] %vm2916_vm1, %v3840_v26  ;;  %v3842_v28 = vmul.f32 0.33333334, %v3714_v7  ;;  %v3843_v29 = vmul.f32 0.33333334, %v3715_v27 }
 0x4cd   : > { %3969 = vst.msk [vmem:[%s7580_s4 + $0x118] sm:$0xff] %vm2916_vm1, %v3841_v6  ;;  %v3844_v9 = vmul.f32 0.33333334, %v3716_v8  ;;  %v3717_v57 = vld [vmem:[#allocation4 + $0x2b8] sm:$0xff]  ;;  %v3718_v30 = vld [vmem:[#allocation4 + $0x2c0] sm:$0xff]  ;;  %v3719_v10 = vld [vmem:[#allocation4 + $0x2c8] sm:$0xff] }
 0x4ce   : > { %3970 = vst.msk [vmem:[%s7580_s4 + $0x120] sm:$0xff] %vm2916_vm1, %v3842_v28  ;;  %3971 = vst.msk [vmem:[%s7580_s4 + $0x128] sm:$0xff] %vm2916_vm1, %v3843_v29  ;;  %v3845_v31 = vmul.f32 0.33333334, %v3717_v57  ;;  %v3846_v32 = vmul.f32 0.33333334, %v3718_v30 }
 0x4cf   : > { %3972 = vst.msk [vmem:[%s7580_s4 + $0x130] sm:$0xff] %vm2916_vm1, %v3844_v9  ;;  %v3847_v11 = vmul.f32 0.33333334, %v3719_v10  ;;  %v3720_v55 = vld [vmem:[#allocation4 + $0x2d0] sm:$0xff]  ;;  %v3721_v33 = vld [vmem:[#allocation4 + $0x2d8] sm:$0xff]  ;;  %v3722_v56 = vld [vmem:[#allocation4 + $0x2e0] sm:$0xff] }
 0x4d0   : > { %3973 = vst.msk [vmem:[%s7580_s4 + $0x138] sm:$0xff] %vm2916_vm1, %v3845_v31  ;;  %3974 = vst.msk [vmem:[%s7580_s4 + $0x140] sm:$0xff] %vm2916_vm1, %v3846_v32  ;;  %v3848_v34 = vmul.f32 0.33333334, %v3720_v55  ;;  %v3849_v35 = vmul.f32 0.33333334, %v3721_v33 }
 0x4d1   : > { %3975 = vst.msk [vmem:[%s7580_s4 + $0x148] sm:$0xff] %vm2916_vm1, %v3847_v11  ;;  %v3850_v12 = vmul.f32 0.33333334, %v3722_v56  ;;  %v3723_v58 = vld [vmem:[#allocation4 + $0x2e8] sm:$0xff]  ;;  %v3724_v36 = vld [vmem:[#allocation4 + $0x2f0] sm:$0xff]  ;;  %v3725_v13 = vld [vmem:[#allocation4 + $0x2f8] sm:$0xff] }
 0x4d2   : > { %3976 = vst.msk [vmem:[%s7580_s4 + $0x150] sm:$0xff] %vm2916_vm1, %v3848_v34  ;;  %3977 = vst.msk [vmem:[%s7580_s4 + $0x158] sm:$0xff] %vm2916_vm1, %v3849_v35  ;;  %v3851_v37 = vmul.f32 0.33333334, %v3723_v58  ;;  %v3852_v38 = vmul.f32 0.33333334, %v3724_v36 }
 0x4d3   : > { %3978 = vst.msk [vmem:[%s7580_s4 + $0x160] sm:$0xff] %vm2916_vm1, %v3850_v12  ;;  %v3853_v14 = vmul.f32 0.33333334, %v3725_v13  ;;  %v3726_v53 = vld [vmem:[#allocation4 + $0x300] sm:$0xff]  ;;  %v3727_v39 = vld [vmem:[#allocation4 + $0x308] sm:$0xff]  ;;  %v3728_v54 = vld [vmem:[#allocation4 + $0x310] sm:$0xff] }
 0x4d4   : > { %3979 = vst.msk [vmem:[%s7580_s4 + $0x168] sm:$0xff] %vm2916_vm1, %v3851_v37  ;;  %3980 = vst.msk [vmem:[%s7580_s4 + $0x170] sm:$0xff] %vm2916_vm1, %v3852_v38  ;;  %v3854_v40 = vmul.f32 0.33333334, %v3726_v53  ;;  %v3855_v41 = vmul.f32 0.33333334, %v3727_v39 }
 0x4d5   : > { %3981 = vst.msk [vmem:[%s7580_s4 + $0x178] sm:$0xff] %vm2916_vm1, %v3853_v14  ;;  %v3856_v15 = vmul.f32 0.33333334, %v3728_v54  ;;  %v3729_v59 = vld [vmem:[#allocation4 + $0x318] sm:$0xff]  ;;  %v3730_v42 = vld [vmem:[#allocation4 + $0x320] sm:$0xff]  ;;  %v3731_v16 = vld [vmem:[#allocation4 + $0x328] sm:$0xff] }
 0x4d6   : > { %3982 = vst.msk [vmem:[%s7580_s4 + $0x180] sm:$0xff] %vm2916_vm1, %v3854_v40  ;;  %3983 = vst.msk [vmem:[%s7580_s4 + $0x188] sm:$0xff] %vm2916_vm1, %v3855_v41  ;;  %v3857_v43 = vmul.f32 0.33333334, %v3729_v59  ;;  %v3858_v44 = vmul.f32 0.33333334, %v3730_v42 }
 0x4d7   : > { %3984 = vst.msk [vmem:[%s7580_s4 + $0x190] sm:$0xff] %vm2916_vm1, %v3856_v15  ;;  %v3859_v17 = vmul.f32 0.33333334, %v3731_v16  ;;  %v3732_v60 = vld [vmem:[#allocation4 + $0x330] sm:$0xff]  ;;  %v3733_v45 = vld [vmem:[#allocation4 + $0x338] sm:$0xff]  ;;  %v3734_v61 = vld [vmem:[#allocation4 + $0x340] sm:$0xff] }
 0x4d8   : > { %3985 = vst.msk [vmem:[%s7580_s4 + $0x198] sm:$0xff] %vm2916_vm1, %v3857_v43  ;;  %3986 = vst.msk [vmem:[%s7580_s4 + $0x1a0] sm:$0xff] %vm2916_vm1, %v3858_v44  ;;  %v3860_v46 = vmul.f32 0.33333334, %v3732_v60  ;;  %v3861_v47 = vmul.f32 0.33333334, %v3733_v45 }
 0x4d9   : > { %3987 = vst.msk [vmem:[%s7580_s4 + $0x1a8] sm:$0xff] %vm2916_vm1, %v3859_v17  ;;  %v3862_v18 = vmul.f32 0.33333334, %v3734_v61  ;;  %v3735_v62 = vld [vmem:[#allocation4 + $0x348] sm:$0xff]  ;;  %v3736_v48 = vld [vmem:[#allocation4 + $0x350] sm:$0xff]  ;;  %v3737_v19 = vld [vmem:[#allocation4 + $0x358] sm:$0xff] }
 0x4da   : > { %3988 = vst.msk [vmem:[%s7580_s4 + $0x1b0] sm:$0xff] %vm2916_vm1, %v3860_v46  ;;  %3989 = vst.msk [vmem:[%s7580_s4 + $0x1b8] sm:$0xff] %vm2916_vm1, %v3861_v47  ;;  %v3863_v49 = vmul.f32 0.33333334, %v3735_v62  ;;  %v3864_v50 = vmul.f32 0.33333334, %v3736_v48 }
 0x4db   : > { %3990 = vst.msk [vmem:[%s7580_s4 + $0x1c0] sm:$0xff] %vm2916_vm1, %v3862_v18  ;;  %v3865_v20 = vmul.f32 0.33333334, %v3737_v19  ;;  %v3738_v63 = vld [vmem:[#allocation4 + $0x360] sm:$0xff]  ;;  %v3739_v0 = vld [vmem:[#allocation4 + $0x368] sm:$0xff]  ;;  %v3740_v21 = vld [vmem:[#allocation4 + $0x370] sm:$0xff] }
 0x4dc   : > { %3991 = vst.msk [vmem:[%s7580_s4 + $0x1c8] sm:$0xff] %vm2916_vm1, %v3863_v49  ;;  %3992 = vst.msk [vmem:[%s7580_s4 + $0x1d0] sm:$0xff] %vm2916_vm1, %v3864_v50  ;;  %v3866_v1 = vmul.f32 0.33333334, %v3738_v63  ;;  %v3867_v51 = vmul.f32 0.33333334, %v3739_v0 }
 0x4dd   : > { %3993 = vst.msk [vmem:[%s7580_s4 + $0x1d8] sm:$0xff] %vm2916_vm1, %v3865_v20  ;;  %v3868_v22 = vmul.f32 0.33333334, %v3740_v21  ;;  %v3741_v52 = vld [vmem:[#allocation4 + $0x378] sm:$0xff]  ;;  %v3742_v3 = vld [vmem:[#allocation4 + $0x380] sm:$0xff]  ;;  %v3743_v23 = vld [vmem:[#allocation4 + $0x388] sm:$0xff] }
 0x4de   : > { %3994 = vst.msk [vmem:[%s7580_s4 + $0x1e0] sm:$0xff] %vm2916_vm1, %v3866_v1  ;;  %3995 = vst.msk [vmem:[%s7580_s4 + $0x1e8] sm:$0xff] %vm2916_vm1, %v3867_v51  ;;  %v3869_v4 = vmul.f32 0.33333334, %v3741_v52  ;;  %v3870_v5 = vmul.f32 0.33333334, %v3742_v3 }
 0x4df   : > { %3996 = vst.msk [vmem:[%s7580_s4 + $0x1f0] sm:$0xff] %vm2916_vm1, %v3868_v22  ;;  %v3871_v24 = vmul.f32 0.33333334, %v3743_v23  ;;  %v3744_v2 = vld [vmem:[#allocation4 + $0x390] sm:$0xff]  ;;  %v3745_v25 = vld [vmem:[#allocation4 + $0x398] sm:$0xff]  ;;  %v3746_v26 = vld [vmem:[#allocation4 + $0x3a0] sm:$0xff] }
 0x4e0   : > { %3997 = vst.msk [vmem:[%s7580_s4 + $0x1f8] sm:$0xff] %vm2916_vm1, %v3869_v4  ;;  %3998 = vst.msk [vmem:[%s7580_s4 + $0x200] sm:$0xff] %vm2916_vm1, %v3870_v5  ;;  %v3872_v6 = vmul.f32 0.33333334, %v3744_v2  ;;  %v3873_v7 = vmul.f32 0.33333334, %v3745_v25 }
 0x4e1   : > { %3999 = vst.msk [vmem:[%s7580_s4 + $0x208] sm:$0xff] %vm2916_vm1, %v3871_v24  ;;  %v3874_v27 = vmul.f32 0.33333334, %v3746_v26  ;;  %v3747_v8 = vld [vmem:[#allocation4 + $0x3a8] sm:$0xff]  ;;  %v3748_v28 = vld [vmem:[#allocation4 + $0x3b0] sm:$0xff]  ;;  %v3749_v29 = vld [vmem:[#allocation4 + $0x3b8] sm:$0xff] }
 0x4e2   : > { %4000 = vst.msk [vmem:[%s7580_s4 + $0x210] sm:$0xff] %vm2916_vm1, %v3872_v6  ;;  %4001 = vst.msk [vmem:[%s7580_s4 + $0x218] sm:$0xff] %vm2916_vm1, %v3873_v7  ;;  %v3875_v9 = vmul.f32 0.33333334, %v3747_v8  ;;  %v3876_v57 = vmul.f32 0.33333334, %v3748_v28 }
 0x4e3   : > { %4002 = vst.msk [vmem:[%s7580_s4 + $0x220] sm:$0xff] %vm2916_vm1, %v3874_v27  ;;  %v3877_v30 = vmul.f32 0.33333334, %v3749_v29  ;;  %v3750_v10 = vld [vmem:[#allocation4 + $0x3c0] sm:$0xff]  ;;  %v3751_v31 = vld [vmem:[#allocation4 + $0x3c8] sm:$0xff]  ;;  %v3752_v32 = vld [vmem:[#allocation4 + $0x3d0] sm:$0xff] }
 0x4e4   : > { %4003 = vst.msk [vmem:[%s7580_s4 + $0x228] sm:$0xff] %vm2916_vm1, %v3875_v9  ;;  %4004 = vst.msk [vmem:[%s7580_s4 + $0x230] sm:$0xff] %vm2916_vm1, %v3876_v57  ;;  %v3878_v11 = vmul.f32 0.33333334, %v3750_v10  ;;  %v3879_v55 = vmul.f32 0.33333334, %v3751_v31 }
 0x4e5   : > { %4005 = vst.msk [vmem:[%s7580_s4 + $0x238] sm:$0xff] %vm2916_vm1, %v3877_v30  ;;  %v3880_v33 = vmul.f32 0.33333334, %v3752_v32  ;;  %v3753_v56 = vld [vmem:[#allocation4 + $0x3d8] sm:$0xff]  ;;  %v3754_v34 = vld [vmem:[#allocation4 + $0x3e0] sm:$0xff]  ;;  %v3755_v35 = vld [vmem:[#allocation4 + $0x3e8] sm:$0xff] }
 0x4e6   : > { %4006 = vst.msk [vmem:[%s7580_s4 + $0x240] sm:$0xff] %vm2916_vm1, %v3878_v11  ;;  %4007 = vst.msk [vmem:[%s7580_s4 + $0x248] sm:$0xff] %vm2916_vm1, %v3879_v55  ;;  %v3881_v12 = vmul.f32 0.33333334, %v3753_v56  ;;  %v3882_v58 = vmul.f32 0.33333334, %v3754_v34 }
 0x4e7   : > { %4008 = vst.msk [vmem:[%s7580_s4 + $0x250] sm:$0xff] %vm2916_vm1, %v3880_v33  ;;  %v3883_v36 = vmul.f32 0.33333334, %v3755_v35  ;;  %v3756_v13 = vld [vmem:[#allocation4 + $0x3f0] sm:$0xff]  ;;  %v3757_v37 = vld [vmem:[#allocation4 + $0x3f8] sm:$0xff] }
 0x4e8   : > { %4009 = vst.msk [vmem:[%s7580_s4 + $0x258] sm:$0xff] %vm2916_vm1, %v3881_v12  ;;  %4010 = vst.msk [vmem:[%s7580_s4 + $0x260] sm:$0xff] %vm2916_vm1, %v3882_v58  ;;  %v3884_v38 = vmul.f32 0.33333334, %v3756_v13  ;;  %v3885_v14 = vmul.f32 0.33333334, %v3757_v37 }
 0x4e9   : > { %4011 = vst.msk [vmem:[%s7580_s4 + $0x268] sm:$0xff] %vm2916_vm1, %v3883_v36 }
 0x4ea   : > { %4012 = vst.msk [vmem:[%s7580_s4 + $0x270] sm:$0xff] %vm2916_vm1, %v3884_v38  ;;  %4013 = vst.msk [vmem:[%s7580_s4 + $0x278] sm:$0xff] %vm2916_vm1, %v3885_v14 }
 0x4eb PF: > { %s18_s22 = sadd.s32 1, %s4770_s22   ;;  %s7821_s15 = smov %s4746_s16 }
 0x4ec   : > { %p15_p13 = scmp.ge.s32.totalorder %s18_s22, 6   ;;  %s7822_s16 = smov %s4750_s17 }
 0x4ed   : > { %s7823_s17 = smov %s4859_s29  ;;  %s7824_s18 = smov %s4762_s20 }
 0x4ee   : > { %s7825_s19 = smov %s4766_s21  ;;  %s7826_s20 = smov %s7829_s24 }
 0x4ef   : > { %s7827_s21 = smov %s7833_s25  ;;  %17 = sbr.rel (!%p15_p13) target bundleno = 5 (0x5), region = 89 }
 0x4f6   :  { %4031 = vsyncpa [#allocation6], 1 }
 0x4f7   :  { %4033 = vsyncpa [#allocation6 + $0x1], 1 }

</bundles_post_ra>
